<compile_context>
chip_gen: v6e
topology: v6e:2x2x1
jax: 0.10.0
libtpu: 0.0.40
codegen_flags: <defaults>
</compile_context>

<pallas_src>
import functools
import math

import jax
import jax.numpy as jnp
from jax import lax
from jax.experimental import pallas as pl
from jax.experimental.pallas import tpu as pltpu


# ----------------------------------------------------------------------------
# Shared helper (used both in-kernel and in the pure-JAX reference)
# ----------------------------------------------------------------------------
def _layer_norm(x, gamma, beta, eps=1e-5):
    """LayerNorm over the last dim (biased variance, torch.nn.LayerNorm)."""
    mu = jnp.mean(x, axis=-1, keepdims=True)
    xc = x - mu
    var = jnp.mean(xc * xc, axis=-1, keepdims=True)
    return xc * lax.rsqrt(var + eps) * gamma + beta


# ----------------------------------------------------------------------------
# Fused kernel: one grid step = (batch block, decoder layer)
# ----------------------------------------------------------------------------
def _decoder_kernel(qe_ref, mem_ref,
                    wqkv_s_ref, bqkv_s_ref, wo_s_ref, bo_s_ref,
                    wqkv_c_ref, bqkv_c_ref, wo_c_ref, bo_c_ref,
                    w1_ref, b1_ref, w2_ref, b2_ref,
                    ln_g_ref, ln_b_ref,
                    out_ref, x_scr, *, n_heads):
    # NOTE: the x_scr layer carry is only valid because the layer axis is the
    # innermost, sequentially executed ("arbitrary") grid axis and the carry
    # is re-initialized at l == 0.  Do NOT reorder the grid axes or mark the
    # layer axis "parallel".
    l = pl.program_id(1)
    n_layers = pl.num_programs(1)
    bblk, T, D = out_ref.shape
    S = mem_ref.shape[1]
    N = bblk * T

    @pl.when(l == 0)
    def _():
        qe = qe_ref[...]                                   # (T, D)
        for b in range(bblk):                              # tgt = query embeds
            x_scr[pl.ds(b * T, T), :] = qe

    x = x_scr[...]                                         # (N, D) running act.

    if bblk == 1:
        memf = mem_ref[0]                                  # (S, D)
    else:
        memf = jnp.concatenate([mem_ref[b] for b in range(bblk)], axis=0)

    def mha(xq, xkv, s_kv, wqkv_ref, bqkv_ref, wo_ref, bo_ref):
        """Multi-head attention over a whole batch block.

        xq:  (bblk*T, D)    flattened queries
        xkv: (bblk*s_kv, D) flattened key/value source
        Weights are head-major: wqkv[l, j*H + h] is the (D, dh) projection of
        q (j=0) / k (j=1) / v (j=2) for head h; wo[l, h] is (dh, D).  The
        1/sqrt(dh) scale is already folded into the q weights/bias.
        """
        # Per-head projections on the full flattened slab (fat MXU M dim);
        # leading-axis weight indexing -> no sub-128-lane slices.
        q_h, k_h, v_h = [], [], []
        for h in range(n_heads):
            q_h.append(jnp.dot(xq, wqkv_ref[l, 0 * n_heads + h],
                               preferred_element_type=jnp.float32)
                       + bqkv_ref[l, 0 * n_heads + h])
            k_h.append(jnp.dot(xkv, wqkv_ref[l, 1 * n_heads + h],
                               preferred_element_type=jnp.float32)
                       + bqkv_ref[l, 1 * n_heads + h])
            v_h.append(jnp.dot(xkv, wqkv_ref[l, 2 * n_heads + h],
                               preferred_element_type=jnp.float32)
                       + bqkv_ref[l, 2 * n_heads + h])

        rows = []
        for b in range(bblk):                              # static, tiny
            acc = jnp.zeros((T, D), jnp.float32)
            for h in range(n_heads):                       # static unroll
                qb = q_h[h][b * T:(b + 1) * T, :]          # (T, dh)
                kb = k_h[h][b * s_kv:(b + 1) * s_kv, :]    # (s_kv, dh)
                vb = v_h[h][b * s_kv:(b + 1) * s_kv, :]    # (s_kv, dh)
                # scores = qb @ kb.T without an explicit transpose
                s = lax.dot_general(qb, kb, (((1,), (1,)), ((), ())),
                                    preferred_element_type=jnp.float32)
                s = s - jnp.max(s, axis=-1, keepdims=True)
                p = jnp.exp(s)
                p = p * pl.reciprocal(jnp.sum(p, axis=-1, keepdims=True),
                                      approx=True)
                ob = jnp.dot(p, vb, preferred_element_type=jnp.float32)
                # concat(heads) @ Wo == sum_h  o_h @ Wo[h*dh:(h+1)*dh, :]
                acc = acc + jnp.dot(ob, wo_ref[l, h],
                                    preferred_element_type=jnp.float32)
            rows.append(acc)
        out = rows[0] if bblk == 1 else jnp.concatenate(rows, axis=0)
        return out + bo_ref[l]

    # --- self-attention + add & norm -----------------------------------------
    sa = mha(x, x, T, wqkv_s_ref, bqkv_s_ref, wo_s_ref, bo_s_ref)
    x = _layer_norm(x + sa, ln_g_ref[l, 0], ln_b_ref[l, 0])

    # --- cross-attention + add & norm ----------------------------------------
    ca = mha(x, memf, S, wqkv_c_ref, bqkv_c_ref, wo_c_ref, bo_c_ref)
    x = _layer_norm(x + ca, ln_g_ref[l, 1], ln_b_ref[l, 1])

    # --- feed-forward (chunked over dim_feedforward) + add & norm ------------
    n_chunks = w1_ref.shape[1]
    ff = jnp.zeros((N, D), jnp.float32)
    for c in range(n_chunks):                              # static unroll
        hc = (jnp.dot(x, w1_ref[l, c], preferred_element_type=jnp.float32)
              + b1_ref[l, c])
        hc = jnp.maximum(hc, 0.0)                          # relu
        ff = ff + jnp.dot(hc, w2_ref[l, c], preferred_element_type=jnp.float32)
    ff = ff + b2_ref[l]
    x = _layer_norm(x + ff, ln_g_ref[l, 2], ln_b_ref[l, 2])

    x_scr[...] = x                                         # carry to next layer

    @pl.when(l == n_layers - 1)
    def _():
        for b in range(bblk):
            out_ref[b] = x[b * T:(b + 1) * T, :]


_KPARAM_ORDER = ("wqkv_self", "bqkv_self", "wo_self", "bo_self",
                 "wqkv_cross", "bqkv_cross", "wo_cross", "bo_cross",
                 "w1", "b1", "w2", "b2", "ln_g", "ln_b")


def _resident_spec(arr):
    """Whole array VMEM-resident: constant index_map -> DMA'd from HBM once."""
    nd = arr.ndim
    return pl.BlockSpec(arr.shape, lambda bb, l: (0,) * nd)


@functools.partial(jax.jit, static_argnames=("n_heads", "num_batch_blocks"))
def transformer_decoder_forward(memory, q_emb, kparams, *, n_heads,
                                num_batch_blocks=None):
    """memory: (B, S, D) f32, q_emb: (T, D) f32.  Returns (B, T, D) f32."""
    B, S, D = memory.shape
    T = q_emb.shape[0]
    L = kparams["ln_g"].shape[0]

    if num_batch_blocks is None:
        # 2 parallel batch blocks keep both v7x TensorCores busy; on v5e/v6e
        # (one TC) the extra grid step costs ~0.35 us and weights are still
        # only fetched once (constant index_map).
        num_batch_blocks = 2 if (B >= 2 and B % 2 == 0) else 1
    assert B % num_batch_blocks == 0
    bblk = B // num_batch_blocks

    weights = [kparams[name] for name in _KPARAM_ORDER]

    in_specs = [
        pl.BlockSpec((T, D), lambda bb, l: (0, 0)),            # query embeds
        pl.BlockSpec((bblk, S, D), lambda bb, l: (bb, 0, 0)),  # memory block
    ] + [_resident_spec(w) for w in weights]

    out_specs = pl.BlockSpec((bblk, T, D), lambda bb, l: (bb, 0, 0))

    # VMEM guard: the whole weight stack is resident.  If it outgrows the most
    # conservative default scoped-VMEM limit (v5e: 16 MiB), raise the limit
    # explicitly instead of letting the compiler shrink tiles.
    resident_bytes = sum(int(w.size) * w.dtype.itemsize for w in weights)
    act_bytes = 4 * (T * D + 2 * bblk * (S + 2 * T) * D)
    vmem_needed = resident_bytes + act_bytes
    vmem_limit = None
    if vmem_needed > 12 * 1024 * 1024:
        vmem_limit = min(int(1.5 * vmem_needed) + (2 << 20), 96 << 20)

    kernel = functools.partial(_decoder_kernel, n_heads=n_heads)

    return pl.pallas_call(
        kernel,
        out_shape=jax.ShapeDtypeStruct((B, T, D), jnp.float32),
        grid_spec=pltpu.PrefetchScalarGridSpec(
            num_scalar_prefetch=0,
            grid=(num_batch_blocks, L),
            in_specs=in_specs,
            out_specs=out_specs,
            scratch_shapes=[pltpu.VMEM((bblk * T, D), jnp.float32)],
        ),
        compiler_params=pltpu.CompilerParams(
            dimension_semantics=("parallel", "arbitrary"),
            vmem_limit_bytes=vmem_limit),
    )(q_emb, memory, *weights)


# ----------------------------------------------------------------------------
# Wrapper-side parameter preparation (torch convention -> kernel layout)
# ----------------------------------------------------------------------------
def prepare_kernel_params(tparams, *, n_heads, ff_chunk=512):
    """Head-major attention weights (leading-axis indexable, no lane slicing),
    1/sqrt(dh) folded into the Q projection, FFN weights pre-chunked."""
    L, D = tparams["norm1_weight"].shape
    F = tparams["linear1_weight"].shape[1]
    dh = D // n_heads
    scale = 1.0 / math.sqrt(dh)
    if F % ff_chunk != 0:
        ff_chunk = F
    nc = F // ff_chunk

    def attn(prefix):
        ipw = tparams[f"in_proj_weight_{prefix}"]              # (L, 3D, D)
        ipb = tparams[f"in_proj_bias_{prefix}"]                # (L, 3D)
        opw = tparams[f"out_proj_weight_{prefix}"]             # (L, D, D)
        opb = tparams[f"out_proj_bias_{prefix}"]               # (L, D)
        w = ipw.reshape(L, 3, n_heads, dh, D).transpose(0, 1, 2, 4, 3)
        b = ipb.reshape(L, 3, n_heads, 1, dh)
        w = w.at[:, 0].multiply(scale)                         # fold q scale
        b = b.at[:, 0].multiply(scale)
        w = w.reshape(L, 3 * n_heads, D, dh)                   # (L, 3H, D, dh)
        b = b.reshape(L, 3 * n_heads, 1, dh)
        wo = opw.transpose(0, 2, 1).reshape(L, n_heads, dh, D)  # (L, H, dh, D)
        bo = opb.reshape(L, 1, D)
        return w, b, wo, bo

    wqkv_s, bqkv_s, wo_s, bo_s = attn("self")
    wqkv_c, bqkv_c, wo_c, bo_c = attn("cross")

    w1 = tparams["linear1_weight"].transpose(0, 2, 1)          # (L, D, F)
    w1 = w1.reshape(L, D, nc, ff_chunk).transpose(0, 2, 1, 3)  # (L, nc, D, FC)
    b1 = tparams["linear1_bias"].reshape(L, nc, 1, ff_chunk)
    w2 = tparams["linear2_weight"].transpose(0, 2, 1)          # (L, F, D)
    w2 = w2.reshape(L, nc, ff_chunk, D)                        # (L, nc, FC, D)
    b2 = tparams["linear2_bias"].reshape(L, 1, D)

    ln_g = jnp.stack([tparams["norm1_weight"], tparams["norm2_weight"],
                      tparams["norm3_weight"]], axis=1)[:, :, None, :]
    ln_b = jnp.stack([tparams["norm1_bias"], tparams["norm2_bias"],
                      tparams["norm3_bias"]], axis=1)[:, :, None, :]

    return {"wqkv_self": wqkv_s, "bqkv_self": bqkv_s,
            "wo_self": wo_s, "bo_self": bo_s,
            "wqkv_cross": wqkv_c, "bqkv_cross": bqkv_c,
            "wo_cross": wo_c, "bo_cross": bo_c,
            "w1": w1, "b1": b1, "w2": w2, "b2": b2,
            "ln_g": ln_g, "ln_b": ln_b}


# ----------------------------------------------------------------------------
# Pure-JAX reference (torch-convention weights, eval-mode post-norm decoder)
# ----------------------------------------------------------------------------
def _ref_mha(xq, xkv, ipw, ipb, opw, opb, n_heads):
    B, T, D = xq.shape
    S = xkv.shape[1]
    dh = D // n_heads
    q = jnp.dot(xq, ipw[:D].T) + ipb[:D]
    k = jnp.dot(xkv, ipw[D:2 * D].T) + ipb[D:2 * D]
    v = jnp.dot(xkv, ipw[2 * D:].T) + ipb[2 * D:]
    q = q.reshape(B, T, n_heads, dh).transpose(0, 2, 1, 3)
    k = k.reshape(B, S, n_heads, dh).transpose(0, 2, 1, 3)
    v = v.reshape(B, S, n_heads, dh).transpose(0, 2, 1, 3)
    s = jnp.einsum("bhtd,bhsd->bhts", q, k) / math.sqrt(dh)
    p = jax.nn.softmax(s, axis=-1)
    o = jnp.einsum("bhts,bhsd->bhtd", p, v)
    o = o.transpose(0, 2, 1, 3).reshape(B, T, D)
    return jnp.dot(o, opw.T) + opb


def _reference_forward(memory, q_emb, tparams, *, n_heads):
    B = memory.shape[0]
    L = tparams["norm1_weight"].shape[0]
    x = jnp.broadcast_to(q_emb[None], (B,) + q_emb.shape)
    p = tparams
    with jax.default_matmul_precision("highest"):
        for l in range(L):
            sa = _ref_mha(x, x,
                          p["in_proj_weight_self"][l], p["in_proj_bias_self"][l],
                          p["out_proj_weight_self"][l], p["out_proj_bias_self"][l],
                          n_heads)
            x = _layer_norm(x + sa, p["norm1_weight"][l], p["norm1_bias"][l])
            ca = _ref_mha(x, memory,
                          p["in_proj_weight_cross"][l], p["in_proj_bias_cross"][l],
                          p["out_proj_weight_cross"][l], p["out_proj_bias_cross"][l],
                          n_heads)
            x = _layer_norm(x + ca, p["norm2_weight"][l], p["norm2_bias"][l])
            h = jax.nn.relu(jnp.dot(x, p["linear1_weight"][l].T) + p["linear1_bias"][l])
            f = jnp.dot(h, p["linear2_weight"][l].T) + p["linear2_bias"][l]
            x = _layer_norm(x + f, p["norm3_weight"][l], p["norm3_bias"][l])
    return x


# ----------------------------------------------------------------------------
# Synthetic torch-convention parameters
# ----------------------------------------------------------------------------
def make_params(key, num_layers, d_model, dim_ff):
    L, D, F = num_layers, d_model, dim_ff
    ks = iter(jax.random.split(key, 18))

    def w(shape, scale=0.05):
        return scale * jax.random.normal(next(ks), shape, jnp.float32)

    return {
        "in_proj_weight_self": w((L, 3 * D, D)),
        "in_proj_bias_self": w((L, 3 * D), 0.02),
        "out_proj_weight_self": w((L, D, D)),
        "out_proj_bias_self": w((L, D), 0.02),
        "in_proj_weight_cross": w((L, 3 * D, D)),
        "in_proj_bias_cross": w((L, 3 * D), 0.02),
        "out_proj_weight_cross": w((L, D, D)),
        "out_proj_bias_cross": w((L, D), 0.02),
        "linear1_weight": w((L, F, D)),
        "linear1_bias": w((L, F), 0.02),
        "linear2_weight": w((L, D, F), 0.02),
        "linear2_bias": w((L, D), 0.02),
        "norm1_weight": 1.0 + w((L, D), 0.1),
        "norm1_bias": w((L, D), 0.02),
        "norm2_weight": 1.0 + w((L, D), 0.1),
        "norm2_bias": w((L, D), 0.02),
        "norm3_weight": 1.0 + w((L, D), 0.1),
        "norm3_bias": w((L, D), 0.02),
    }


if __name__ == "__main__":
    key = jax.random.PRNGKey(0)

    # Small shapes consistent with the module:
    B, S, T = 2, 8, 16        # batch, memory seq len, num_points (queries)
    D, H, L = 32, 4, 2        # embedding_dim, num_heads, num_layers
    F = 2048                  # nn.TransformerDecoderLayer default dim_feedforward

    kmem, kq, kp = jax.random.split(key, 3)
    memory = jax.random.normal(kmem, (B, S, D), jnp.float32)   # forward() input
    q_emb = jax.random.normal(kq, (T, D), jnp.float32)         # query_embeddings
    tparams = make_params(kp, L, D, F)                         # torch convention
    kparams = prepare_kernel_params(tparams, n_heads=H)        # kernel layout

    out = transformer_decoder_forward(memory, q_emb, kparams, n_heads=H)
    out = jax.block_until_ready(out)

    ref = _reference_forward(memory, q_emb, tparams, n_heads=H)
    assert out.shape == (B, T, D)
    max_err = float(jnp.max(jnp.abs(out - ref)))
    # Tolerance covers default-precision MXU f32 matmuls (vs "highest" in the
    # reference) and the approximate EUP reciprocal in the softmax.
    assert max_err < 5e-3, f"max abs err {max_err}"

    print("KERNEL_OK")
</pallas_src>

<mosaic_0001>
module attributes {stable_mosaic.version = 11 : i64} {
  func.func @_decoder_kernel(%arg0: i32, %arg1: i32, %arg2: memref<16x32xf32, #tpu.memory_space<vmem>>, %arg3: memref<1x8x32xf32, #tpu.memory_space<vmem>>, %arg4: memref<2x12x32x8xf32, #tpu.memory_space<vmem>>, %arg5: memref<2x12x1x8xf32, #tpu.memory_space<vmem>>, %arg6: memref<2x4x8x32xf32, #tpu.memory_space<vmem>>, %arg7: memref<2x1x32xf32, #tpu.memory_space<vmem>>, %arg8: memref<2x12x32x8xf32, #tpu.memory_space<vmem>>, %arg9: memref<2x12x1x8xf32, #tpu.memory_space<vmem>>, %arg10: memref<2x4x8x32xf32, #tpu.memory_space<vmem>>, %arg11: memref<2x1x32xf32, #tpu.memory_space<vmem>>, %arg12: memref<2x4x32x512xf32, #tpu.memory_space<vmem>>, %arg13: memref<2x4x1x512xf32, #tpu.memory_space<vmem>>, %arg14: memref<2x4x512x32xf32, #tpu.memory_space<vmem>>, %arg15: memref<2x1x32xf32, #tpu.memory_space<vmem>>, %arg16: memref<2x3x1x32xf32, #tpu.memory_space<vmem>>, %arg17: memref<2x3x1x32xf32, #tpu.memory_space<vmem>>, %arg18: memref<1x16x32xf32, #tpu.memory_space<vmem>>, %arg19: memref<16x32xf32, #tpu.memory_space<vmem>>) attributes {dimension_semantics = [#tpu.dimension_semantics<parallel>, #tpu.dimension_semantics<arbitrary>], iteration_bounds = array<i64: 2, 2>, scalar_prefetch = 0 : i64, scratch_operands = 1 : i64, tpu.core_type = #tpu.core_type<tc>, window_params = [{pipeline_mode = #tpu.pipeline_mode<synchronous>, transform_indices = @transform_0, window_bounds = array<i64: 16, 32>}, {transform_indices = @transform_1, window_bounds = array<i64: 1, 8, 32>}, {pipeline_mode = #tpu.pipeline_mode<synchronous>, transform_indices = @transform_2, window_bounds = array<i64: 2, 12, 32, 8>}, {pipeline_mode = #tpu.pipeline_mode<synchronous>, transform_indices = @transform_3, window_bounds = array<i64: 2, 12, 1, 8>}, {pipeline_mode = #tpu.pipeline_mode<synchronous>, transform_indices = @transform_4, window_bounds = array<i64: 2, 4, 8, 32>}, {pipeline_mode = #tpu.pipeline_mode<synchronous>, transform_indices = @transform_5, window_bounds = array<i64: 2, 1, 32>}, {pipeline_mode = #tpu.pipeline_mode<synchronous>, transform_indices = @transform_6, window_bounds = array<i64: 2, 12, 32, 8>}, {pipeline_mode = #tpu.pipeline_mode<synchronous>, transform_indices = @transform_7, window_bounds = array<i64: 2, 12, 1, 8>}, {pipeline_mode = #tpu.pipeline_mode<synchronous>, transform_indices = @transform_8, window_bounds = array<i64: 2, 4, 8, 32>}, {pipeline_mode = #tpu.pipeline_mode<synchronous>, transform_indices = @transform_9, window_bounds = array<i64: 2, 1, 32>}, {pipeline_mode = #tpu.pipeline_mode<synchronous>, transform_indices = @transform_10, window_bounds = array<i64: 2, 4, 32, 512>}, {pipeline_mode = #tpu.pipeline_mode<synchronous>, transform_indices = @transform_11, window_bounds = array<i64: 2, 4, 1, 512>}, {pipeline_mode = #tpu.pipeline_mode<synchronous>, transform_indices = @transform_12, window_bounds = array<i64: 2, 4, 512, 32>}, {pipeline_mode = #tpu.pipeline_mode<synchronous>, transform_indices = @transform_13, window_bounds = array<i64: 2, 1, 32>}, {pipeline_mode = #tpu.pipeline_mode<synchronous>, transform_indices = @transform_14, window_bounds = array<i64: 2, 3, 1, 32>}, {pipeline_mode = #tpu.pipeline_mode<synchronous>, transform_indices = @transform_15, window_bounds = array<i64: 2, 3, 1, 32>}, {transform_indices = @transform_16, window_bounds = array<i64: 1, 16, 32>}]} {
    %c0_i32 = arith.constant 0 : i32
    %0 = arith.cmpi eq, %arg1, %c0_i32 : i32
    %1 = arith.extui %0 : i1 to i32
    %c0_i32_0 = arith.constant 0 : i32
    %2 = arith.cmpi ne, %1, %c0_i32_0 : i32
    scf.if %2 {
      %c0_318 = arith.constant 0 : index
      %c0_319 = arith.constant 0 : index
      %525 = vector.load %arg2[%c0_318, %c0_319] : memref<16x32xf32, #tpu.memory_space<vmem>>, vector<16x32xf32>
      %c0_320 = arith.constant 0 : index
      %c0_321 = arith.constant 0 : index
      %526 = vector.load %arg19[%c0_320, %c0_321] : memref<16x32xf32, #tpu.memory_space<vmem>>, vector<16x32xf32>
      tpu.vector_store %arg19[%c0_320, %c0_321], %525 {strides = array<i32>} : memref<16x32xf32, #tpu.memory_space<vmem>>, vector<16x32xf32>,
    } else {
    }
    %c0 = arith.constant 0 : index
    %c0_1 = arith.constant 0 : index
    %3 = vector.load %arg19[%c0, %c0_1] : memref<16x32xf32, #tpu.memory_space<vmem>>, vector<16x32xf32>
    %c0_2 = arith.constant 0 : index
    %c0_3 = arith.constant 0 : index
    %c0_4 = arith.constant 0 : index
    %4 = vector.load %arg3[%c0_2, %c0_3, %c0_4] : memref<1x8x32xf32, #tpu.memory_space<vmem>>, vector<1x8x32xf32>
    %5 = vector.shape_cast %4 : vector<1x8x32xf32> to vector<8x32xf32>
    %6 = arith.index_cast %arg1 : i32 to index
    %c0_5 = arith.constant 0 : index
    %c0_6 = arith.constant 0 : index
    %c0_7 = arith.constant 0 : index
    %7 = vector.load %arg4[%6, %c0_5, %c0_6, %c0_7] : memref<2x12x32x8xf32, #tpu.memory_space<vmem>>, vector<1x1x32x8xf32>
    %8 = vector.shape_cast %7 : vector<1x1x32x8xf32> to vector<32x8xf32>
    %cst = arith.constant dense<0.000000e+00> : vector<16x8xf32>
    %9 = tpu.matmul %3, %8, %cst {dimension_numbers = #tpu.dot_dimension_numbers<[1], [0], [0], [1], [0, 0, 1, 1], [], []>} : vector<16x32xf32>, vector<32x8xf32>, vector<16x8xf32> -> vector<16x8xf32>
    %10 = arith.index_cast %arg1 : i32 to index
    %c0_8 = arith.constant 0 : index
    %c0_9 = arith.constant 0 : index
    %c0_10 = arith.constant 0 : index
    %11 = vector.load %arg5[%10, %c0_8, %c0_9, %c0_10] : memref<2x12x1x8xf32, #tpu.memory_space<vmem>>, vector<1x1x1x8xf32>
    %12 = vector.shape_cast %11 : vector<1x1x1x8xf32> to vector<1x8xf32>
    %13 = vector.broadcast %12 : vector<1x8xf32> to vector<16x8xf32>
    %14 = arith.addf %9, %13 : vector<16x8xf32>
    %15 = arith.index_cast %arg1 : i32 to index
    %c4 = arith.constant 4 : index
    %c0_11 = arith.constant 0 : index
    %c0_12 = arith.constant 0 : index
    %16 = vector.load %arg4[%15, %c4, %c0_11, %c0_12] : memref<2x12x32x8xf32, #tpu.memory_space<vmem>>, vector<1x1x32x8xf32>
    %17 = vector.shape_cast %16 : vector<1x1x32x8xf32> to vector<32x8xf32>
    %cst_13 = arith.constant dense<0.000000e+00> : vector<16x8xf32>
    %18 = tpu.matmul %3, %17, %cst_13 {dimension_numbers = #tpu.dot_dimension_numbers<[1], [0], [0], [1], [0, 0, 1, 1], [], []>} : vector<16x32xf32>, vector<32x8xf32>, vector<16x8xf32> -> vector<16x8xf32>
    %19 = arith.index_cast %arg1 : i32 to index
    %c4_14 = arith.constant 4 : index
    %c0_15 = arith.constant 0 : index
    %c0_16 = arith.constant 0 : index
    %20 = vector.load %arg5[%19, %c4_14, %c0_15, %c0_16] : memref<2x12x1x8xf32, #tpu.memory_space<vmem>>, vector<1x1x1x8xf32>
    %21 = vector.shape_cast %20 : vector<1x1x1x8xf32> to vector<1x8xf32>
    %22 = vector.broadcast %21 : vector<1x8xf32> to vector<16x8xf32>
    %23 = arith.addf %18, %22 : vector<16x8xf32>
    %24 = arith.index_cast %arg1 : i32 to index
    %c8 = arith.constant 8 : index
    %c0_17 = arith.constant 0 : index
    %c0_18 = arith.constant 0 : index
    %25 = vector.load %arg4[%24, %c8, %c0_17, %c0_18] : memref<2x12x32x8xf32, #tpu.memory_space<vmem>>, vector<1x1x32x8xf32>
    %26 = vector.shape_cast %25 : vector<1x1x32x8xf32> to vector<32x8xf32>
    %cst_19 = arith.constant dense<0.000000e+00> : vector<16x8xf32>
    %27 = tpu.matmul %3, %26, %cst_19 {dimension_numbers = #tpu.dot_dimension_numbers<[1], [0], [0], [1], [0, 0, 1, 1], [], []>} : vector<16x32xf32>, vector<32x8xf32>, vector<16x8xf32> -> vector<16x8xf32>
    %28 = arith.index_cast %arg1 : i32 to index
    %c8_20 = arith.constant 8 : index
    %c0_21 = arith.constant 0 : index
    %c0_22 = arith.constant 0 : index
    %29 = vector.load %arg5[%28, %c8_20, %c0_21, %c0_22] : memref<2x12x1x8xf32, #tpu.memory_space<vmem>>, vector<1x1x1x8xf32>
    %30 = vector.shape_cast %29 : vector<1x1x1x8xf32> to vector<1x8xf32>
    %31 = vector.broadcast %30 : vector<1x8xf32> to vector<16x8xf32>
    %32 = arith.addf %27, %31 : vector<16x8xf32>
    %33 = arith.index_cast %arg1 : i32 to index
    %c1 = arith.constant 1 : index
    %c0_23 = arith.constant 0 : index
    %c0_24 = arith.constant 0 : index
    %34 = vector.load %arg4[%33, %c1, %c0_23, %c0_24] : memref<2x12x32x8xf32, #tpu.memory_space<vmem>>, vector<1x1x32x8xf32>
    %35 = vector.shape_cast %34 : vector<1x1x32x8xf32> to vector<32x8xf32>
    %cst_25 = arith.constant dense<0.000000e+00> : vector<16x8xf32>
    %36 = tpu.matmul %3, %35, %cst_25 {dimension_numbers = #tpu.dot_dimension_numbers<[1], [0], [0], [1], [0, 0, 1, 1], [], []>} : vector<16x32xf32>, vector<32x8xf32>, vector<16x8xf32> -> vector<16x8xf32>
    %37 = arith.index_cast %arg1 : i32 to index
    %c1_26 = arith.constant 1 : index
    %c0_27 = arith.constant 0 : index
    %c0_28 = arith.constant 0 : index
    %38 = vector.load %arg5[%37, %c1_26, %c0_27, %c0_28] : memref<2x12x1x8xf32, #tpu.memory_space<vmem>>, vector<1x1x1x8xf32>
    %39 = vector.shape_cast %38 : vector<1x1x1x8xf32> to vector<1x8xf32>
    %40 = vector.broadcast %39 : vector<1x8xf32> to vector<16x8xf32>
    %41 = arith.addf %36, %40 : vector<16x8xf32>
    %42 = arith.index_cast %arg1 : i32 to index
    %c5 = arith.constant 5 : index
    %c0_29 = arith.constant 0 : index
    %c0_30 = arith.constant 0 : index
    %43 = vector.load %arg4[%42, %c5, %c0_29, %c0_30] : memref<2x12x32x8xf32, #tpu.memory_space<vmem>>, vector<1x1x32x8xf32>
    %44 = vector.shape_cast %43 : vector<1x1x32x8xf32> to vector<32x8xf32>
    %cst_31 = arith.constant dense<0.000000e+00> : vector<16x8xf32>
    %45 = tpu.matmul %3, %44, %cst_31 {dimension_numbers = #tpu.dot_dimension_numbers<[1], [0], [0], [1], [0, 0, 1, 1], [], []>} : vector<16x32xf32>, vector<32x8xf32>, vector<16x8xf32> -> vector<16x8xf32>
    %46 = arith.index_cast %arg1 : i32 to index
    %c5_32 = arith.constant 5 : index
    %c0_33 = arith.constant 0 : index
    %c0_34 = arith.constant 0 : index
    %47 = vector.load %arg5[%46, %c5_32, %c0_33, %c0_34] : memref<2x12x1x8xf32, #tpu.memory_space<vmem>>, vector<1x1x1x8xf32>
    %48 = vector.shape_cast %47 : vector<1x1x1x8xf32> to vector<1x8xf32>
    %49 = vector.broadcast %48 : vector<1x8xf32> to vector<16x8xf32>
    %50 = arith.addf %45, %49 : vector<16x8xf32>
    %51 = arith.index_cast %arg1 : i32 to index
    %c9 = arith.constant 9 : index
    %c0_35 = arith.constant 0 : index
    %c0_36 = arith.constant 0 : index
    %52 = vector.load %arg4[%51, %c9, %c0_35, %c0_36] : memref<2x12x32x8xf32, #tpu.memory_space<vmem>>, vector<1x1x32x8xf32>
    %53 = vector.shape_cast %52 : vector<1x1x32x8xf32> to vector<32x8xf32>
    %cst_37 = arith.constant dense<0.000000e+00> : vector<16x8xf32>
    %54 = tpu.matmul %3, %53, %cst_37 {dimension_numbers = #tpu.dot_dimension_numbers<[1], [0], [0], [1], [0, 0, 1, 1], [], []>} : vector<16x32xf32>, vector<32x8xf32>, vector<16x8xf32> -> vector<16x8xf32>
    %55 = arith.index_cast %arg1 : i32 to index
    %c9_38 = arith.constant 9 : index
    %c0_39 = arith.constant 0 : index
    %c0_40 = arith.constant 0 : index
    %56 = vector.load %arg5[%55, %c9_38, %c0_39, %c0_40] : memref<2x12x1x8xf32, #tpu.memory_space<vmem>>, vector<1x1x1x8xf32>
    %57 = vector.shape_cast %56 : vector<1x1x1x8xf32> to vector<1x8xf32>
    %58 = vector.broadcast %57 : vector<1x8xf32> to vector<16x8xf32>
    %59 = arith.addf %54, %58 : vector<16x8xf32>
    %60 = arith.index_cast %arg1 : i32 to index
    %c2 = arith.constant 2 : index
    %c0_41 = arith.constant 0 : index
    %c0_42 = arith.constant 0 : index
    %61 = vector.load %arg4[%60, %c2, %c0_41, %c0_42] : memref<2x12x32x8xf32, #tpu.memory_space<vmem>>, vector<1x1x32x8xf32>
    %62 = vector.shape_cast %61 : vector<1x1x32x8xf32> to vector<32x8xf32>
    %cst_43 = arith.constant dense<0.000000e+00> : vector<16x8xf32>
    %63 = tpu.matmul %3, %62, %cst_43 {dimension_numbers = #tpu.dot_dimension_numbers<[1], [0], [0], [1], [0, 0, 1, 1], [], []>} : vector<16x32xf32>, vector<32x8xf32>, vector<16x8xf32> -> vector<16x8xf32>
    %64 = arith.index_cast %arg1 : i32 to index
    %c2_44 = arith.constant 2 : index
    %c0_45 = arith.constant 0 : index
    %c0_46 = arith.constant 0 : index
    %65 = vector.load %arg5[%64, %c2_44, %c0_45, %c0_46] : memref<2x12x1x8xf32, #tpu.memory_space<vmem>>, vector<1x1x1x8xf32>
    %66 = vector.shape_cast %65 : vector<1x1x1x8xf32> to vector<1x8xf32>
    %67 = vector.broadcast %66 : vector<1x8xf32> to vector<16x8xf32>
    %68 = arith.addf %63, %67 : vector<16x8xf32>
    %69 = arith.index_cast %arg1 : i32 to index
    %c6 = arith.constant 6 : index
    %c0_47 = arith.constant 0 : index
    %c0_48 = arith.constant 0 : index
    %70 = vector.load %arg4[%69, %c6, %c0_47, %c0_48] : memref<2x12x32x8xf32, #tpu.memory_space<vmem>>, vector<1x1x32x8xf32>
    %71 = vector.shape_cast %70 : vector<1x1x32x8xf32> to vector<32x8xf32>
    %cst_49 = arith.constant dense<0.000000e+00> : vector<16x8xf32>
    %72 = tpu.matmul %3, %71, %cst_49 {dimension_numbers = #tpu.dot_dimension_numbers<[1], [0], [0], [1], [0, 0, 1, 1], [], []>} : vector<16x32xf32>, vector<32x8xf32>, vector<16x8xf32> -> vector<16x8xf32>
    %73 = arith.index_cast %arg1 : i32 to index
    %c6_50 = arith.constant 6 : index
    %c0_51 = arith.constant 0 : index
    %c0_52 = arith.constant 0 : index
    %74 = vector.load %arg5[%73, %c6_50, %c0_51, %c0_52] : memref<2x12x1x8xf32, #tpu.memory_space<vmem>>, vector<1x1x1x8xf32>
    %75 = vector.shape_cast %74 : vector<1x1x1x8xf32> to vector<1x8xf32>
    %76 = vector.broadcast %75 : vector<1x8xf32> to vector<16x8xf32>
    %77 = arith.addf %72, %76 : vector<16x8xf32>
    %78 = arith.index_cast %arg1 : i32 to index
    %c10 = arith.constant 10 : index
    %c0_53 = arith.constant 0 : index
    %c0_54 = arith.constant 0 : index
    %79 = vector.load %arg4[%78, %c10, %c0_53, %c0_54] : memref<2x12x32x8xf32, #tpu.memory_space<vmem>>, vector<1x1x32x8xf32>
    %80 = vector.shape_cast %79 : vector<1x1x32x8xf32> to vector<32x8xf32>
    %cst_55 = arith.constant dense<0.000000e+00> : vector<16x8xf32>
    %81 = tpu.matmul %3, %80, %cst_55 {dimension_numbers = #tpu.dot_dimension_numbers<[1], [0], [0], [1], [0, 0, 1, 1], [], []>} : vector<16x32xf32>, vector<32x8xf32>, vector<16x8xf32> -> vector<16x8xf32>
    %82 = arith.index_cast %arg1 : i32 to index
    %c10_56 = arith.constant 10 : index
    %c0_57 = arith.constant 0 : index
    %c0_58 = arith.constant 0 : index
    %83 = vector.load %arg5[%82, %c10_56, %c0_57, %c0_58] : memref<2x12x1x8xf32, #tpu.memory_space<vmem>>, vector<1x1x1x8xf32>
    %84 = vector.shape_cast %83 : vector<1x1x1x8xf32> to vector<1x8xf32>
    %85 = vector.broadcast %84 : vector<1x8xf32> to vector<16x8xf32>
    %86 = arith.addf %81, %85 : vector<16x8xf32>
    %87 = arith.index_cast %arg1 : i32 to index
    %c3 = arith.constant 3 : index
    %c0_59 = arith.constant 0 : index
    %c0_60 = arith.constant 0 : index
    %88 = vector.load %arg4[%87, %c3, %c0_59, %c0_60] : memref<2x12x32x8xf32, #tpu.memory_space<vmem>>, vector<1x1x32x8xf32>
    %89 = vector.shape_cast %88 : vector<1x1x32x8xf32> to vector<32x8xf32>
    %cst_61 = arith.constant dense<0.000000e+00> : vector<16x8xf32>
    %90 = tpu.matmul %3, %89, %cst_61 {dimension_numbers = #tpu.dot_dimension_numbers<[1], [0], [0], [1], [0, 0, 1, 1], [], []>} : vector<16x32xf32>, vector<32x8xf32>, vector<16x8xf32> -> vector<16x8xf32>
    %91 = arith.index_cast %arg1 : i32 to index
    %c3_62 = arith.constant 3 : index
    %c0_63 = arith.constant 0 : index
    %c0_64 = arith.constant 0 : index
    %92 = vector.load %arg5[%91, %c3_62, %c0_63, %c0_64] : memref<2x12x1x8xf32, #tpu.memory_space<vmem>>, vector<1x1x1x8xf32>
    %93 = vector.shape_cast %92 : vector<1x1x1x8xf32> to vector<1x8xf32>
    %94 = vector.broadcast %93 : vector<1x8xf32> to vector<16x8xf32>
    %95 = arith.addf %90, %94 : vector<16x8xf32>
    %96 = arith.index_cast %arg1 : i32 to index
    %c7 = arith.constant 7 : index
    %c0_65 = arith.constant 0 : index
    %c0_66 = arith.constant 0 : index
    %97 = vector.load %arg4[%96, %c7, %c0_65, %c0_66] : memref<2x12x32x8xf32, #tpu.memory_space<vmem>>, vector<1x1x32x8xf32>
    %98 = vector.shape_cast %97 : vector<1x1x32x8xf32> to vector<32x8xf32>
    %cst_67 = arith.constant dense<0.000000e+00> : vector<16x8xf32>
    %99 = tpu.matmul %3, %98, %cst_67 {dimension_numbers = #tpu.dot_dimension_numbers<[1], [0], [0], [1], [0, 0, 1, 1], [], []>} : vector<16x32xf32>, vector<32x8xf32>, vector<16x8xf32> -> vector<16x8xf32>
    %100 = arith.index_cast %arg1 : i32 to index
    %c7_68 = arith.constant 7 : index
    %c0_69 = arith.constant 0 : index
    %c0_70 = arith.constant 0 : index
    %101 = vector.load %arg5[%100, %c7_68, %c0_69, %c0_70] : memref<2x12x1x8xf32, #tpu.memory_space<vmem>>, vector<1x1x1x8xf32>
    %102 = vector.shape_cast %101 : vector<1x1x1x8xf32> to vector<1x8xf32>
    %103 = vector.broadcast %102 : vector<1x8xf32> to vector<16x8xf32>
    %104 = arith.addf %99, %103 : vector<16x8xf32>
    %105 = arith.index_cast %arg1 : i32 to index
    %c11 = arith.constant 11 : index
    %c0_71 = arith.constant 0 : index
    %c0_72 = arith.constant 0 : index
    %106 = vector.load %arg4[%105, %c11, %c0_71, %c0_72] : memref<2x12x32x8xf32, #tpu.memory_space<vmem>>, vector<1x1x32x8xf32>
    %107 = vector.shape_cast %106 : vector<1x1x32x8xf32> to vector<32x8xf32>
    %cst_73 = arith.constant dense<0.000000e+00> : vector<16x8xf32>
    %108 = tpu.matmul %3, %107, %cst_73 {dimension_numbers = #tpu.dot_dimension_numbers<[1], [0], [0], [1], [0, 0, 1, 1], [], []>} : vector<16x32xf32>, vector<32x8xf32>, vector<16x8xf32> -> vector<16x8xf32>
    %109 = arith.index_cast %arg1 : i32 to index
    %c11_74 = arith.constant 11 : index
    %c0_75 = arith.constant 0 : index
    %c0_76 = arith.constant 0 : index
    %110 = vector.load %arg5[%109, %c11_74, %c0_75, %c0_76] : memref<2x12x1x8xf32, #tpu.memory_space<vmem>>, vector<1x1x1x8xf32>
    %111 = vector.shape_cast %110 : vector<1x1x1x8xf32> to vector<1x8xf32>
    %112 = vector.broadcast %111 : vector<1x8xf32> to vector<16x8xf32>
    %113 = arith.addf %108, %112 : vector<16x8xf32>
    %cst_77 = arith.constant 0.000000e+00 : f32
    %114 = vector.broadcast %cst_77 : f32 to vector<16x32xf32>
    %cst_78 = arith.constant dense<0.000000e+00> : vector<16x16xf32>
    %115 = tpu.matmul %14, %23, %cst_78 {dimension_numbers = #tpu.dot_dimension_numbers<[1], [1], [0], [0], [0, 0, 1, 0], [], []>} : vector<16x8xf32>, vector<16x8xf32>, vector<16x16xf32> -> vector<16x16xf32>
    %cst_79 = arith.constant dense<0xFF800000> : vector<16xf32>
    %116 = vector.multi_reduction <maximumf>, %115, %cst_79 [1] : vector<16x16xf32> to vector<16xf32>
    %117 = vector.shape_cast %116 : vector<16xf32> to vector<16x1xf32>
    %118 = vector.broadcast %117 : vector<16x1xf32> to vector<16x16xf32>
    %119 = arith.subf %115, %118 : vector<16x16xf32>
    %120 = math.exp %119 : vector<16x16xf32>
    %cst_80 = arith.constant dense<0.000000e+00> : vector<16xf32>
    %121 = vector.multi_reduction <add>, %120, %cst_80 [1] : vector<16x16xf32> to vector<16xf32>
    %122 = vector.shape_cast %121 : vector<16xf32> to vector<16x1xf32>
    %123 = tpu.reciprocal %122 {approx = true} : vector<16x1xf32> -> vector<16x1xf32>
    %124 = vector.broadcast %123 : vector<16x1xf32> to vector<16x16xf32>
    %125 = arith.mulf %120, %124 : vector<16x16xf32>
    %cst_81 = arith.constant dense<0.000000e+00> : vector<16x8xf32>
    %126 = tpu.matmul %125, %32, %cst_81 {dimension_numbers = #tpu.dot_dimension_numbers<[1], [0], [0], [1], [0, 0, 1, 1], [], []>} : vector<16x16xf32>, vector<16x8xf32>, vector<16x8xf32> -> vector<16x8xf32>
    %127 = arith.index_cast %arg1 : i32 to index
    %c0_82 = arith.constant 0 : index
    %c0_83 = arith.constant 0 : index
    %c0_84 = arith.constant 0 : index
    %128 = vector.load %arg6[%127, %c0_82, %c0_83, %c0_84] : memref<2x4x8x32xf32, #tpu.memory_space<vmem>>, vector<1x1x8x32xf32>
    %129 = vector.shape_cast %128 : vector<1x1x8x32xf32> to vector<8x32xf32>
    %cst_85 = arith.constant dense<0.000000e+00> : vector<16x32xf32>
    %130 = tpu.matmul %126, %129, %cst_85 {dimension_numbers = #tpu.dot_dimension_numbers<[1], [0], [0], [1], [0, 0, 1, 1], [], []>} : vector<16x8xf32>, vector<8x32xf32>, vector<16x32xf32> -> vector<16x32xf32>
    %131 = arith.addf %114, %130 : vector<16x32xf32>
    %cst_86 = arith.constant dense<0.000000e+00> : vector<16x16xf32>
    %132 = tpu.matmul %41, %50, %cst_86 {dimension_numbers = #tpu.dot_dimension_numbers<[1], [1], [0], [0], [0, 0, 1, 0], [], []>} : vector<16x8xf32>, vector<16x8xf32>, vector<16x16xf32> -> vector<16x16xf32>
    %cst_87 = arith.constant dense<0xFF800000> : vector<16xf32>
    %133 = vector.multi_reduction <maximumf>, %132, %cst_87 [1] : vector<16x16xf32> to vector<16xf32>
    %134 = vector.shape_cast %133 : vector<16xf32> to vector<16x1xf32>
    %135 = vector.broadcast %134 : vector<16x1xf32> to vector<16x16xf32>
    %136 = arith.subf %132, %135 : vector<16x16xf32>
    %137 = math.exp %136 : vector<16x16xf32>
    %cst_88 = arith.constant dense<0.000000e+00> : vector<16xf32>
    %138 = vector.multi_reduction <add>, %137, %cst_88 [1] : vector<16x16xf32> to vector<16xf32>
    %139 = vector.shape_cast %138 : vector<16xf32> to vector<16x1xf32>
    %140 = tpu.reciprocal %139 {approx = true} : vector<16x1xf32> -> vector<16x1xf32>
    %141 = vector.broadcast %140 : vector<16x1xf32> to vector<16x16xf32>
    %142 = arith.mulf %137, %141 : vector<16x16xf32>
    %cst_89 = arith.constant dense<0.000000e+00> : vector<16x8xf32>
    %143 = tpu.matmul %142, %59, %cst_89 {dimension_numbers = #tpu.dot_dimension_numbers<[1], [0], [0], [1], [0, 0, 1, 1], [], []>} : vector<16x16xf32>, vector<16x8xf32>, vector<16x8xf32> -> vector<16x8xf32>
    %144 = arith.index_cast %arg1 : i32 to index
    %c1_90 = arith.constant 1 : index
    %c0_91 = arith.constant 0 : index
    %c0_92 = arith.constant 0 : index
    %145 = vector.load %arg6[%144, %c1_90, %c0_91, %c0_92] : memref<2x4x8x32xf32, #tpu.memory_space<vmem>>, vector<1x1x8x32xf32>
    %146 = vector.shape_cast %145 : vector<1x1x8x32xf32> to vector<8x32xf32>
    %cst_93 = arith.constant dense<0.000000e+00> : vector<16x32xf32>
    %147 = tpu.matmul %143, %146, %cst_93 {dimension_numbers = #tpu.dot_dimension_numbers<[1], [0], [0], [1], [0, 0, 1, 1], [], []>} : vector<16x8xf32>, vector<8x32xf32>, vector<16x32xf32> -> vector<16x32xf32>
    %148 = arith.addf %131, %147 : vector<16x32xf32>
    %cst_94 = arith.constant dense<0.000000e+00> : vector<16x16xf32>
    %149 = tpu.matmul %68, %77, %cst_94 {dimension_numbers = #tpu.dot_dimension_numbers<[1], [1], [0], [0], [0, 0, 1, 0], [], []>} : vector<16x8xf32>, vector<16x8xf32>, vector<16x16xf32> -> vector<16x16xf32>
    %cst_95 = arith.constant dense<0xFF800000> : vector<16xf32>
    %150 = vector.multi_reduction <maximumf>, %149, %cst_95 [1] : vector<16x16xf32> to vector<16xf32>
    %151 = vector.shape_cast %150 : vector<16xf32> to vector<16x1xf32>
    %152 = vector.broadcast %151 : vector<16x1xf32> to vector<16x16xf32>
    %153 = arith.subf %149, %152 : vector<16x16xf32>
    %154 = math.exp %153 : vector<16x16xf32>
    %cst_96 = arith.constant dense<0.000000e+00> : vector<16xf32>
    %155 = vector.multi_reduction <add>, %154, %cst_96 [1] : vector<16x16xf32> to vector<16xf32>
    %156 = vector.shape_cast %155 : vector<16xf32> to vector<16x1xf32>
    %157 = tpu.reciprocal %156 {approx = true} : vector<16x1xf32> -> vector<16x1xf32>
    %158 = vector.broadcast %157 : vector<16x1xf32> to vector<16x16xf32>
    %159 = arith.mulf %154, %158 : vector<16x16xf32>
    %cst_97 = arith.constant dense<0.000000e+00> : vector<16x8xf32>
    %160 = tpu.matmul %159, %86, %cst_97 {dimension_numbers = #tpu.dot_dimension_numbers<[1], [0], [0], [1], [0, 0, 1, 1], [], []>} : vector<16x16xf32>, vector<16x8xf32>, vector<16x8xf32> -> vector<16x8xf32>
    %161 = arith.index_cast %arg1 : i32 to index
    %c2_98 = arith.constant 2 : index
    %c0_99 = arith.constant 0 : index
    %c0_100 = arith.constant 0 : index
    %162 = vector.load %arg6[%161, %c2_98, %c0_99, %c0_100] : memref<2x4x8x32xf32, #tpu.memory_space<vmem>>, vector<1x1x8x32xf32>
    %163 = vector.shape_cast %162 : vector<1x1x8x32xf32> to vector<8x32xf32>
    %cst_101 = arith.constant dense<0.000000e+00> : vector<16x32xf32>
    %164 = tpu.matmul %160, %163, %cst_101 {dimension_numbers = #tpu.dot_dimension_numbers<[1], [0], [0], [1], [0, 0, 1, 1], [], []>} : vector<16x8xf32>, vector<8x32xf32>, vector<16x32xf32> -> vector<16x32xf32>
    %165 = arith.addf %148, %164 : vector<16x32xf32>
    %cst_102 = arith.constant dense<0.000000e+00> : vector<16x16xf32>
    %166 = tpu.matmul %95, %104, %cst_102 {dimension_numbers = #tpu.dot_dimension_numbers<[1], [1], [0], [0], [0, 0, 1, 0], [], []>} : vector<16x8xf32>, vector<16x8xf32>, vector<16x16xf32> -> vector<16x16xf32>
    %cst_103 = arith.constant dense<0xFF800000> : vector<16xf32>
    %167 = vector.multi_reduction <maximumf>, %166, %cst_103 [1] : vector<16x16xf32> to vector<16xf32>
    %168 = vector.shape_cast %167 : vector<16xf32> to vector<16x1xf32>
    %169 = vector.broadcast %168 : vector<16x1xf32> to vector<16x16xf32>
    %170 = arith.subf %166, %169 : vector<16x16xf32>
    %171 = math.exp %170 : vector<16x16xf32>
    %cst_104 = arith.constant dense<0.000000e+00> : vector<16xf32>
    %172 = vector.multi_reduction <add>, %171, %cst_104 [1] : vector<16x16xf32> to vector<16xf32>
    %173 = vector.shape_cast %172 : vector<16xf32> to vector<16x1xf32>
    %174 = tpu.reciprocal %173 {approx = true} : vector<16x1xf32> -> vector<16x1xf32>
    %175 = vector.broadcast %174 : vector<16x1xf32> to vector<16x16xf32>
    %176 = arith.mulf %171, %175 : vector<16x16xf32>
    %cst_105 = arith.constant dense<0.000000e+00> : vector<16x8xf32>
    %177 = tpu.matmul %176, %113, %cst_105 {dimension_numbers = #tpu.dot_dimension_numbers<[1], [0], [0], [1], [0, 0, 1, 1], [], []>} : vector<16x16xf32>, vector<16x8xf32>, vector<16x8xf32> -> vector<16x8xf32>
    %178 = arith.index_cast %arg1 : i32 to index
    %c3_106 = arith.constant 3 : index
    %c0_107 = arith.constant 0 : index
    %c0_108 = arith.constant 0 : index
    %179 = vector.load %arg6[%178, %c3_106, %c0_107, %c0_108] : memref<2x4x8x32xf32, #tpu.memory_space<vmem>>, vector<1x1x8x32xf32>
    %180 = vector.shape_cast %179 : vector<1x1x8x32xf32> to vector<8x32xf32>
    %cst_109 = arith.constant dense<0.000000e+00> : vector<16x32xf32>
    %181 = tpu.matmul %177, %180, %cst_109 {dimension_numbers = #tpu.dot_dimension_numbers<[1], [0], [0], [1], [0, 0, 1, 1], [], []>} : vector<16x8xf32>, vector<8x32xf32>, vector<16x32xf32> -> vector<16x32xf32>
    %182 = arith.addf %165, %181 : vector<16x32xf32>
    %183 = arith.index_cast %arg1 : i32 to index
    %c0_110 = arith.constant 0 : index
    %c0_111 = arith.constant 0 : index
    %184 = vector.load %arg7[%183, %c0_110, %c0_111] : memref<2x1x32xf32, #tpu.memory_space<vmem>>, vector<1x1x32xf32>
    %185 = vector.shape_cast %184 : vector<1x1x32xf32> to vector<1x32xf32>
    %186 = vector.broadcast %185 : vector<1x32xf32> to vector<16x32xf32>
    %187 = arith.addf %182, %186 : vector<16x32xf32>
    %188 = arith.addf %3, %187 : vector<16x32xf32>
    %189 = arith.index_cast %arg1 : i32 to index
    %c0_112 = arith.constant 0 : index
    %c0_113 = arith.constant 0 : index
    %c0_114 = arith.constant 0 : index
    %190 = vector.load %arg16[%189, %c0_112, %c0_113, %c0_114] : memref<2x3x1x32xf32, #tpu.memory_space<vmem>>, vector<1x1x1x32xf32>
    %191 = vector.shape_cast %190 : vector<1x1x1x32xf32> to vector<1x32xf32>
    %192 = arith.index_cast %arg1 : i32 to index
    %c0_115 = arith.constant 0 : index
    %c0_116 = arith.constant 0 : index
    %c0_117 = arith.constant 0 : index
    %193 = vector.load %arg17[%192, %c0_115, %c0_116, %c0_117] : memref<2x3x1x32xf32, #tpu.memory_space<vmem>>, vector<1x1x1x32xf32>
    %194 = vector.shape_cast %193 : vector<1x1x1x32xf32> to vector<1x32xf32>
    %cst_118 = arith.constant dense<0.000000e+00> : vector<16xf32>
    %195 = vector.multi_reduction <add>, %188, %cst_118 [1] : vector<16x32xf32> to vector<16xf32>
    %196 = vector.shape_cast %195 : vector<16xf32> to vector<16x1xf32>
    %cst_119 = arith.constant 3.200000e+01 : f32
    %197 = vector.broadcast %cst_119 : f32 to vector<16x1xf32>
    %198 = arith.divf %196, %197 : vector<16x1xf32>
    %199 = vector.broadcast %198 : vector<16x1xf32> to vector<16x32xf32>
    %200 = arith.subf %188, %199 : vector<16x32xf32>
    %201 = arith.mulf %200, %200 : vector<16x32xf32>
    %cst_120 = arith.constant dense<0.000000e+00> : vector<16xf32>
    %202 = vector.multi_reduction <add>, %201, %cst_120 [1] : vector<16x32xf32> to vector<16xf32>
    %203 = vector.shape_cast %202 : vector<16xf32> to vector<16x1xf32>
    %cst_121 = arith.constant 3.200000e+01 : f32
    %204 = vector.broadcast %cst_121 : f32 to vector<16x1xf32>
    %205 = arith.divf %203, %204 : vector<16x1xf32>
    %cst_122 = arith.constant 9.99999974E-6 : f32
    %206 = vector.broadcast %cst_122 : f32 to vector<16x1xf32>
    %207 = arith.addf %205, %206 : vector<16x1xf32>
    %208 = math.rsqrt %207 : vector<16x1xf32>
    %209 = vector.broadcast %208 : vector<16x1xf32> to vector<16x32xf32>
    %210 = arith.mulf %200, %209 : vector<16x32xf32>
    %211 = vector.broadcast %191 : vector<1x32xf32> to vector<16x32xf32>
    %212 = arith.mulf %210, %211 : vector<16x32xf32>
    %213 = vector.broadcast %194 : vector<1x32xf32> to vector<16x32xf32>
    %214 = arith.addf %212, %213 : vector<16x32xf32>
    %215 = arith.index_cast %arg1 : i32 to index
    %c0_123 = arith.constant 0 : index
    %c0_124 = arith.constant 0 : index
    %c0_125 = arith.constant 0 : index
    %216 = vector.load %arg8[%215, %c0_123, %c0_124, %c0_125] : memref<2x12x32x8xf32, #tpu.memory_space<vmem>>, vector<1x1x32x8xf32>
    %217 = vector.shape_cast %216 : vector<1x1x32x8xf32> to vector<32x8xf32>
    %cst_126 = arith.constant dense<0.000000e+00> : vector<16x8xf32>
    %218 = tpu.matmul %214, %217, %cst_126 {dimension_numbers = #tpu.dot_dimension_numbers<[1], [0], [0], [1], [0, 0, 1, 1], [], []>} : vector<16x32xf32>, vector<32x8xf32>, vector<16x8xf32> -> vector<16x8xf32>
    %219 = arith.index_cast %arg1 : i32 to index
    %c0_127 = arith.constant 0 : index
    %c0_128 = arith.constant 0 : index
    %c0_129 = arith.constant 0 : index
    %220 = vector.load %arg9[%219, %c0_127, %c0_128, %c0_129] : memref<2x12x1x8xf32, #tpu.memory_space<vmem>>, vector<1x1x1x8xf32>
    %221 = vector.shape_cast %220 : vector<1x1x1x8xf32> to vector<1x8xf32>
    %222 = vector.broadcast %221 : vector<1x8xf32> to vector<16x8xf32>
    %223 = arith.addf %218, %222 : vector<16x8xf32>
    %224 = arith.index_cast %arg1 : i32 to index
    %c4_130 = arith.constant 4 : index
    %c0_131 = arith.constant 0 : index
    %c0_132 = arith.constant 0 : index
    %225 = vector.load %arg8[%224, %c4_130, %c0_131, %c0_132] : memref<2x12x32x8xf32, #tpu.memory_space<vmem>>, vector<1x1x32x8xf32>
    %226 = vector.shape_cast %225 : vector<1x1x32x8xf32> to vector<32x8xf32>
    %cst_133 = arith.constant dense<0.000000e+00> : vector<8x8xf32>
    %227 = tpu.matmul %5, %226, %cst_133 {dimension_numbers = #tpu.dot_dimension_numbers<[1], [0], [0], [1], [0, 0, 1, 1], [], []>} : vector<8x32xf32>, vector<32x8xf32>, vector<8x8xf32> -> vector<8x8xf32>
    %228 = arith.index_cast %arg1 : i32 to index
    %c4_134 = arith.constant 4 : index
    %c0_135 = arith.constant 0 : index
    %c0_136 = arith.constant 0 : index
    %229 = vector.load %arg9[%228, %c4_134, %c0_135, %c0_136] : memref<2x12x1x8xf32, #tpu.memory_space<vmem>>, vector<1x1x1x8xf32>
    %230 = vector.shape_cast %229 : vector<1x1x1x8xf32> to vector<1x8xf32>
    %231 = vector.broadcast %230 : vector<1x8xf32> to vector<8x8xf32>
    %232 = arith.addf %227, %231 : vector<8x8xf32>
    %233 = arith.index_cast %arg1 : i32 to index
    %c8_137 = arith.constant 8 : index
    %c0_138 = arith.constant 0 : index
    %c0_139 = arith.constant 0 : index
    %234 = vector.load %arg8[%233, %c8_137, %c0_138, %c0_139] : memref<2x12x32x8xf32, #tpu.memory_space<vmem>>, vector<1x1x32x8xf32>
    %235 = vector.shape_cast %234 : vector<1x1x32x8xf32> to vector<32x8xf32>
    %cst_140 = arith.constant dense<0.000000e+00> : vector<8x8xf32>
    %236 = tpu.matmul %5, %235, %cst_140 {dimension_numbers = #tpu.dot_dimension_numbers<[1], [0], [0], [1], [0, 0, 1, 1], [], []>} : vector<8x32xf32>, vector<32x8xf32>, vector<8x8xf32> -> vector<8x8xf32>
    %237 = arith.index_cast %arg1 : i32 to index
    %c8_141 = arith.constant 8 : index
    %c0_142 = arith.constant 0 : index
    %c0_143 = arith.constant 0 : index
    %238 = vector.load %arg9[%237, %c8_141, %c0_142, %c0_143] : memref<2x12x1x8xf32, #tpu.memory_space<vmem>>, vector<1x1x1x8xf32>
    %239 = vector.shape_cast %238 : vector<1x1x1x8xf32> to vector<1x8xf32>
    %240 = vector.broadcast %239 : vector<1x8xf32> to vector<8x8xf32>
    %241 = arith.addf %236, %240 : vector<8x8xf32>
    %242 = arith.index_cast %arg1 : i32 to index
    %c1_144 = arith.constant 1 : index
    %c0_145 = arith.constant 0 : index
    %c0_146 = arith.constant 0 : index
    %243 = vector.load %arg8[%242, %c1_144, %c0_145, %c0_146] : memref<2x12x32x8xf32, #tpu.memory_space<vmem>>, vector<1x1x32x8xf32>
    %244 = vector.shape_cast %243 : vector<1x1x32x8xf32> to vector<32x8xf32>
    %cst_147 = arith.constant dense<0.000000e+00> : vector<16x8xf32>
    %245 = tpu.matmul %214, %244, %cst_147 {dimension_numbers = #tpu.dot_dimension_numbers<[1], [0], [0], [1], [0, 0, 1, 1], [], []>} : vector<16x32xf32>, vector<32x8xf32>, vector<16x8xf32> -> vector<16x8xf32>
    %246 = arith.index_cast %arg1 : i32 to index
    %c1_148 = arith.constant 1 : index
    %c0_149 = arith.constant 0 : index
    %c0_150 = arith.constant 0 : index
    %247 = vector.load %arg9[%246, %c1_148, %c0_149, %c0_150] : memref<2x12x1x8xf32, #tpu.memory_space<vmem>>, vector<1x1x1x8xf32>
    %248 = vector.shape_cast %247 : vector<1x1x1x8xf32> to vector<1x8xf32>
    %249 = vector.broadcast %248 : vector<1x8xf32> to vector<16x8xf32>
    %250 = arith.addf %245, %249 : vector<16x8xf32>
    %251 = arith.index_cast %arg1 : i32 to index
    %c5_151 = arith.constant 5 : index
    %c0_152 = arith.constant 0 : index
    %c0_153 = arith.constant 0 : index
    %252 = vector.load %arg8[%251, %c5_151, %c0_152, %c0_153] : memref<2x12x32x8xf32, #tpu.memory_space<vmem>>, vector<1x1x32x8xf32>
    %253 = vector.shape_cast %252 : vector<1x1x32x8xf32> to vector<32x8xf32>
    %cst_154 = arith.constant dense<0.000000e+00> : vector<8x8xf32>
    %254 = tpu.matmul %5, %253, %cst_154 {dimension_numbers = #tpu.dot_dimension_numbers<[1], [0], [0], [1], [0, 0, 1, 1], [], []>} : vector<8x32xf32>, vector<32x8xf32>, vector<8x8xf32> -> vector<8x8xf32>
    %255 = arith.index_cast %arg1 : i32 to index
    %c5_155 = arith.constant 5 : index
    %c0_156 = arith.constant 0 : index
    %c0_157 = arith.constant 0 : index
    %256 = vector.load %arg9[%255, %c5_155, %c0_156, %c0_157] : memref<2x12x1x8xf32, #tpu.memory_space<vmem>>, vector<1x1x1x8xf32>
    %257 = vector.shape_cast %256 : vector<1x1x1x8xf32> to vector<1x8xf32>
    %258 = vector.broadcast %257 : vector<1x8xf32> to vector<8x8xf32>
    %259 = arith.addf %254, %258 : vector<8x8xf32>
    %260 = arith.index_cast %arg1 : i32 to index
    %c9_158 = arith.constant 9 : index
    %c0_159 = arith.constant 0 : index
    %c0_160 = arith.constant 0 : index
    %261 = vector.load %arg8[%260, %c9_158, %c0_159, %c0_160] : memref<2x12x32x8xf32, #tpu.memory_space<vmem>>, vector<1x1x32x8xf32>
    %262 = vector.shape_cast %261 : vector<1x1x32x8xf32> to vector<32x8xf32>
    %cst_161 = arith.constant dense<0.000000e+00> : vector<8x8xf32>
    %263 = tpu.matmul %5, %262, %cst_161 {dimension_numbers = #tpu.dot_dimension_numbers<[1], [0], [0], [1], [0, 0, 1, 1], [], []>} : vector<8x32xf32>, vector<32x8xf32>, vector<8x8xf32> -> vector<8x8xf32>
    %264 = arith.index_cast %arg1 : i32 to index
    %c9_162 = arith.constant 9 : index
    %c0_163 = arith.constant 0 : index
    %c0_164 = arith.constant 0 : index
    %265 = vector.load %arg9[%264, %c9_162, %c0_163, %c0_164] : memref<2x12x1x8xf32, #tpu.memory_space<vmem>>, vector<1x1x1x8xf32>
    %266 = vector.shape_cast %265 : vector<1x1x1x8xf32> to vector<1x8xf32>
    %267 = vector.broadcast %266 : vector<1x8xf32> to vector<8x8xf32>
    %268 = arith.addf %263, %267 : vector<8x8xf32>
    %269 = arith.index_cast %arg1 : i32 to index
    %c2_165 = arith.constant 2 : index
    %c0_166 = arith.constant 0 : index
    %c0_167 = arith.constant 0 : index
    %270 = vector.load %arg8[%269, %c2_165, %c0_166, %c0_167] : memref<2x12x32x8xf32, #tpu.memory_space<vmem>>, vector<1x1x32x8xf32>
    %271 = vector.shape_cast %270 : vector<1x1x32x8xf32> to vector<32x8xf32>
    %cst_168 = arith.constant dense<0.000000e+00> : vector<16x8xf32>
    %272 = tpu.matmul %214, %271, %cst_168 {dimension_numbers = #tpu.dot_dimension_numbers<[1], [0], [0], [1], [0, 0, 1, 1], [], []>} : vector<16x32xf32>, vector<32x8xf32>, vector<16x8xf32> -> vector<16x8xf32>
    %273 = arith.index_cast %arg1 : i32 to index
    %c2_169 = arith.constant 2 : index
    %c0_170 = arith.constant 0 : index
    %c0_171 = arith.constant 0 : index
    %274 = vector.load %arg9[%273, %c2_169, %c0_170, %c0_171] : memref<2x12x1x8xf32, #tpu.memory_space<vmem>>, vector<1x1x1x8xf32>
    %275 = vector.shape_cast %274 : vector<1x1x1x8xf32> to vector<1x8xf32>
    %276 = vector.broadcast %275 : vector<1x8xf32> to vector<16x8xf32>
    %277 = arith.addf %272, %276 : vector<16x8xf32>
    %278 = arith.index_cast %arg1 : i32 to index
    %c6_172 = arith.constant 6 : index
    %c0_173 = arith.constant 0 : index
    %c0_174 = arith.constant 0 : index
    %279 = vector.load %arg8[%278, %c6_172, %c0_173, %c0_174] : memref<2x12x32x8xf32, #tpu.memory_space<vmem>>, vector<1x1x32x8xf32>
    %280 = vector.shape_cast %279 : vector<1x1x32x8xf32> to vector<32x8xf32>
    %cst_175 = arith.constant dense<0.000000e+00> : vector<8x8xf32>
    %281 = tpu.matmul %5, %280, %cst_175 {dimension_numbers = #tpu.dot_dimension_numbers<[1], [0], [0], [1], [0, 0, 1, 1], [], []>} : vector<8x32xf32>, vector<32x8xf32>, vector<8x8xf32> -> vector<8x8xf32>
    %282 = arith.index_cast %arg1 : i32 to index
    %c6_176 = arith.constant 6 : index
    %c0_177 = arith.constant 0 : index
    %c0_178 = arith.constant 0 : index
    %283 = vector.load %arg9[%282, %c6_176, %c0_177, %c0_178] : memref<2x12x1x8xf32, #tpu.memory_space<vmem>>, vector<1x1x1x8xf32>
    %284 = vector.shape_cast %283 : vector<1x1x1x8xf32> to vector<1x8xf32>
    %285 = vector.broadcast %284 : vector<1x8xf32> to vector<8x8xf32>
    %286 = arith.addf %281, %285 : vector<8x8xf32>
    %287 = arith.index_cast %arg1 : i32 to index
    %c10_179 = arith.constant 10 : index
    %c0_180 = arith.constant 0 : index
    %c0_181 = arith.constant 0 : index
    %288 = vector.load %arg8[%287, %c10_179, %c0_180, %c0_181] : memref<2x12x32x8xf32, #tpu.memory_space<vmem>>, vector<1x1x32x8xf32>
    %289 = vector.shape_cast %288 : vector<1x1x32x8xf32> to vector<32x8xf32>
    %cst_182 = arith.constant dense<0.000000e+00> : vector<8x8xf32>
    %290 = tpu.matmul %5, %289, %cst_182 {dimension_numbers = #tpu.dot_dimension_numbers<[1], [0], [0], [1], [0, 0, 1, 1], [], []>} : vector<8x32xf32>, vector<32x8xf32>, vector<8x8xf32> -> vector<8x8xf32>
    %291 = arith.index_cast %arg1 : i32 to index
    %c10_183 = arith.constant 10 : index
    %c0_184 = arith.constant 0 : index
    %c0_185 = arith.constant 0 : index
    %292 = vector.load %arg9[%291, %c10_183, %c0_184, %c0_185] : memref<2x12x1x8xf32, #tpu.memory_space<vmem>>, vector<1x1x1x8xf32>
    %293 = vector.shape_cast %292 : vector<1x1x1x8xf32> to vector<1x8xf32>
    %294 = vector.broadcast %293 : vector<1x8xf32> to vector<8x8xf32>
    %295 = arith.addf %290, %294 : vector<8x8xf32>
    %296 = arith.index_cast %arg1 : i32 to index
    %c3_186 = arith.constant 3 : index
    %c0_187 = arith.constant 0 : index
    %c0_188 = arith.constant 0 : index
    %297 = vector.load %arg8[%296, %c3_186, %c0_187, %c0_188] : memref<2x12x32x8xf32, #tpu.memory_space<vmem>>, vector<1x1x32x8xf32>
    %298 = vector.shape_cast %297 : vector<1x1x32x8xf32> to vector<32x8xf32>
    %cst_189 = arith.constant dense<0.000000e+00> : vector<16x8xf32>
    %299 = tpu.matmul %214, %298, %cst_189 {dimension_numbers = #tpu.dot_dimension_numbers<[1], [0], [0], [1], [0, 0, 1, 1], [], []>} : vector<16x32xf32>, vector<32x8xf32>, vector<16x8xf32> -> vector<16x8xf32>
    %300 = arith.index_cast %arg1 : i32 to index
    %c3_190 = arith.constant 3 : index
    %c0_191 = arith.constant 0 : index
    %c0_192 = arith.constant 0 : index
    %301 = vector.load %arg9[%300, %c3_190, %c0_191, %c0_192] : memref<2x12x1x8xf32, #tpu.memory_space<vmem>>, vector<1x1x1x8xf32>
    %302 = vector.shape_cast %301 : vector<1x1x1x8xf32> to vector<1x8xf32>
    %303 = vector.broadcast %302 : vector<1x8xf32> to vector<16x8xf32>
    %304 = arith.addf %299, %303 : vector<16x8xf32>
    %305 = arith.index_cast %arg1 : i32 to index
    %c7_193 = arith.constant 7 : index
    %c0_194 = arith.constant 0 : index
    %c0_195 = arith.constant 0 : index
    %306 = vector.load %arg8[%305, %c7_193, %c0_194, %c0_195] : memref<2x12x32x8xf32, #tpu.memory_space<vmem>>, vector<1x1x32x8xf32>
    %307 = vector.shape_cast %306 : vector<1x1x32x8xf32> to vector<32x8xf32>
    %cst_196 = arith.constant dense<0.000000e+00> : vector<8x8xf32>
    %308 = tpu.matmul %5, %307, %cst_196 {dimension_numbers = #tpu.dot_dimension_numbers<[1], [0], [0], [1], [0, 0, 1, 1], [], []>} : vector<8x32xf32>, vector<32x8xf32>, vector<8x8xf32> -> vector<8x8xf32>
    %309 = arith.index_cast %arg1 : i32 to index
    %c7_197 = arith.constant 7 : index
    %c0_198 = arith.constant 0 : index
    %c0_199 = arith.constant 0 : index
    %310 = vector.load %arg9[%309, %c7_197, %c0_198, %c0_199] : memref<2x12x1x8xf32, #tpu.memory_space<vmem>>, vector<1x1x1x8xf32>
    %311 = vector.shape_cast %310 : vector<1x1x1x8xf32> to vector<1x8xf32>
    %312 = vector.broadcast %311 : vector<1x8xf32> to vector<8x8xf32>
    %313 = arith.addf %308, %312 : vector<8x8xf32>
    %314 = arith.index_cast %arg1 : i32 to index
    %c11_200 = arith.constant 11 : index
    %c0_201 = arith.constant 0 : index
    %c0_202 = arith.constant 0 : index
    %315 = vector.load %arg8[%314, %c11_200, %c0_201, %c0_202] : memref<2x12x32x8xf32, #tpu.memory_space<vmem>>, vector<1x1x32x8xf32>
    %316 = vector.shape_cast %315 : vector<1x1x32x8xf32> to vector<32x8xf32>
    %cst_203 = arith.constant dense<0.000000e+00> : vector<8x8xf32>
    %317 = tpu.matmul %5, %316, %cst_203 {dimension_numbers = #tpu.dot_dimension_numbers<[1], [0], [0], [1], [0, 0, 1, 1], [], []>} : vector<8x32xf32>, vector<32x8xf32>, vector<8x8xf32> -> vector<8x8xf32>
    %318 = arith.index_cast %arg1 : i32 to index
    %c11_204 = arith.constant 11 : index
    %c0_205 = arith.constant 0 : index
    %c0_206 = arith.constant 0 : index
    %319 = vector.load %arg9[%318, %c11_204, %c0_205, %c0_206] : memref<2x12x1x8xf32, #tpu.memory_space<vmem>>, vector<1x1x1x8xf32>
    %320 = vector.shape_cast %319 : vector<1x1x1x8xf32> to vector<1x8xf32>
    %321 = vector.broadcast %320 : vector<1x8xf32> to vector<8x8xf32>
    %322 = arith.addf %317, %321 : vector<8x8xf32>
    %cst_207 = arith.constant 0.000000e+00 : f32
    %323 = vector.broadcast %cst_207 : f32 to vector<16x32xf32>
    %cst_208 = arith.constant dense<0.000000e+00> : vector<16x8xf32>
    %324 = tpu.matmul %223, %232, %cst_208 {dimension_numbers = #tpu.dot_dimension_numbers<[1], [1], [0], [0], [0, 0, 1, 0], [], []>} : vector<16x8xf32>, vector<8x8xf32>, vector<16x8xf32> -> vector<16x8xf32>
    %cst_209 = arith.constant dense<0xFF800000> : vector<16xf32>
    %325 = vector.multi_reduction <maximumf>, %324, %cst_209 [1] : vector<16x8xf32> to vector<16xf32>
    %326 = vector.shape_cast %325 : vector<16xf32> to vector<16x1xf32>
    %327 = vector.broadcast %326 : vector<16x1xf32> to vector<16x8xf32>
    %328 = arith.subf %324, %327 : vector<16x8xf32>
    %329 = math.exp %328 : vector<16x8xf32>
    %cst_210 = arith.constant dense<0.000000e+00> : vector<16xf32>
    %330 = vector.multi_reduction <add>, %329, %cst_210 [1] : vector<16x8xf32> to vector<16xf32>
    %331 = vector.shape_cast %330 : vector<16xf32> to vector<16x1xf32>
    %332 = tpu.reciprocal %331 {approx = true} : vector<16x1xf32> -> vector<16x1xf32>
    %333 = vector.broadcast %332 : vector<16x1xf32> to vector<16x8xf32>
    %334 = arith.mulf %329, %333 : vector<16x8xf32>
    %cst_211 = arith.constant dense<0.000000e+00> : vector<16x8xf32>
    %335 = tpu.matmul %334, %241, %cst_211 {dimension_numbers = #tpu.dot_dimension_numbers<[1], [0], [0], [1], [0, 0, 1, 1], [], []>} : vector<16x8xf32>, vector<8x8xf32>, vector<16x8xf32> -> vector<16x8xf32>
    %336 = arith.index_cast %arg1 : i32 to index
    %c0_212 = arith.constant 0 : index
    %c0_213 = arith.constant 0 : index
    %c0_214 = arith.constant 0 : index
    %337 = vector.load %arg10[%336, %c0_212, %c0_213, %c0_214] : memref<2x4x8x32xf32, #tpu.memory_space<vmem>>, vector<1x1x8x32xf32>
    %338 = vector.shape_cast %337 : vector<1x1x8x32xf32> to vector<8x32xf32>
    %cst_215 = arith.constant dense<0.000000e+00> : vector<16x32xf32>
    %339 = tpu.matmul %335, %338, %cst_215 {dimension_numbers = #tpu.dot_dimension_numbers<[1], [0], [0], [1], [0, 0, 1, 1], [], []>} : vector<16x8xf32>, vector<8x32xf32>, vector<16x32xf32> -> vector<16x32xf32>
    %340 = arith.addf %323, %339 : vector<16x32xf32>
    %cst_216 = arith.constant dense<0.000000e+00> : vector<16x8xf32>
    %341 = tpu.matmul %250, %259, %cst_216 {dimension_numbers = #tpu.dot_dimension_numbers<[1], [1], [0], [0], [0, 0, 1, 0], [], []>} : vector<16x8xf32>, vector<8x8xf32>, vector<16x8xf32> -> vector<16x8xf32>
    %cst_217 = arith.constant dense<0xFF800000> : vector<16xf32>
    %342 = vector.multi_reduction <maximumf>, %341, %cst_217 [1] : vector<16x8xf32> to vector<16xf32>
    %343 = vector.shape_cast %342 : vector<16xf32> to vector<16x1xf32>
    %344 = vector.broadcast %343 : vector<16x1xf32> to vector<16x8xf32>
    %345 = arith.subf %341, %344 : vector<16x8xf32>
    %346 = math.exp %345 : vector<16x8xf32>
    %cst_218 = arith.constant dense<0.000000e+00> : vector<16xf32>
    %347 = vector.multi_reduction <add>, %346, %cst_218 [1] : vector<16x8xf32> to vector<16xf32>
    %348 = vector.shape_cast %347 : vector<16xf32> to vector<16x1xf32>
    %349 = tpu.reciprocal %348 {approx = true} : vector<16x1xf32> -> vector<16x1xf32>
    %350 = vector.broadcast %349 : vector<16x1xf32> to vector<16x8xf32>
    %351 = arith.mulf %346, %350 : vector<16x8xf32>
    %cst_219 = arith.constant dense<0.000000e+00> : vector<16x8xf32>
    %352 = tpu.matmul %351, %268, %cst_219 {dimension_numbers = #tpu.dot_dimension_numbers<[1], [0], [0], [1], [0, 0, 1, 1], [], []>} : vector<16x8xf32>, vector<8x8xf32>, vector<16x8xf32> -> vector<16x8xf32>
    %353 = arith.index_cast %arg1 : i32 to index
    %c1_220 = arith.constant 1 : index
    %c0_221 = arith.constant 0 : index
    %c0_222 = arith.constant 0 : index
    %354 = vector.load %arg10[%353, %c1_220, %c0_221, %c0_222] : memref<2x4x8x32xf32, #tpu.memory_space<vmem>>, vector<1x1x8x32xf32>
    %355 = vector.shape_cast %354 : vector<1x1x8x32xf32> to vector<8x32xf32>
    %cst_223 = arith.constant dense<0.000000e+00> : vector<16x32xf32>
    %356 = tpu.matmul %352, %355, %cst_223 {dimension_numbers = #tpu.dot_dimension_numbers<[1], [0], [0], [1], [0, 0, 1, 1], [], []>} : vector<16x8xf32>, vector<8x32xf32>, vector<16x32xf32> -> vector<16x32xf32>
    %357 = arith.addf %340, %356 : vector<16x32xf32>
    %cst_224 = arith.constant dense<0.000000e+00> : vector<16x8xf32>
    %358 = tpu.matmul %277, %286, %cst_224 {dimension_numbers = #tpu.dot_dimension_numbers<[1], [1], [0], [0], [0, 0, 1, 0], [], []>} : vector<16x8xf32>, vector<8x8xf32>, vector<16x8xf32> -> vector<16x8xf32>
    %cst_225 = arith.constant dense<0xFF800000> : vector<16xf32>
    %359 = vector.multi_reduction <maximumf>, %358, %cst_225 [1] : vector<16x8xf32> to vector<16xf32>
    %360 = vector.shape_cast %359 : vector<16xf32> to vector<16x1xf32>
    %361 = vector.broadcast %360 : vector<16x1xf32> to vector<16x8xf32>
    %362 = arith.subf %358, %361 : vector<16x8xf32>
    %363 = math.exp %362 : vector<16x8xf32>
    %cst_226 = arith.constant dense<0.000000e+00> : vector<16xf32>
    %364 = vector.multi_reduction <add>, %363, %cst_226 [1] : vector<16x8xf32> to vector<16xf32>
    %365 = vector.shape_cast %364 : vector<16xf32> to vector<16x1xf32>
    %366 = tpu.reciprocal %365 {approx = true} : vector<16x1xf32> -> vector<16x1xf32>
    %367 = vector.broadcast %366 : vector<16x1xf32> to vector<16x8xf32>
    %368 = arith.mulf %363, %367 : vector<16x8xf32>
    %cst_227 = arith.constant dense<0.000000e+00> : vector<16x8xf32>
    %369 = tpu.matmul %368, %295, %cst_227 {dimension_numbers = #tpu.dot_dimension_numbers<[1], [0], [0], [1], [0, 0, 1, 1], [], []>} : vector<16x8xf32>, vector<8x8xf32>, vector<16x8xf32> -> vector<16x8xf32>
    %370 = arith.index_cast %arg1 : i32 to index
    %c2_228 = arith.constant 2 : index
    %c0_229 = arith.constant 0 : index
    %c0_230 = arith.constant 0 : index
    %371 = vector.load %arg10[%370, %c2_228, %c0_229, %c0_230] : memref<2x4x8x32xf32, #tpu.memory_space<vmem>>, vector<1x1x8x32xf32>
    %372 = vector.shape_cast %371 : vector<1x1x8x32xf32> to vector<8x32xf32>
    %cst_231 = arith.constant dense<0.000000e+00> : vector<16x32xf32>
    %373 = tpu.matmul %369, %372, %cst_231 {dimension_numbers = #tpu.dot_dimension_numbers<[1], [0], [0], [1], [0, 0, 1, 1], [], []>} : vector<16x8xf32>, vector<8x32xf32>, vector<16x32xf32> -> vector<16x32xf32>
    %374 = arith.addf %357, %373 : vector<16x32xf32>
    %cst_232 = arith.constant dense<0.000000e+00> : vector<16x8xf32>
    %375 = tpu.matmul %304, %313, %cst_232 {dimension_numbers = #tpu.dot_dimension_numbers<[1], [1], [0], [0], [0, 0, 1, 0], [], []>} : vector<16x8xf32>, vector<8x8xf32>, vector<16x8xf32> -> vector<16x8xf32>
    %cst_233 = arith.constant dense<0xFF800000> : vector<16xf32>
    %376 = vector.multi_reduction <maximumf>, %375, %cst_233 [1] : vector<16x8xf32> to vector<16xf32>
    %377 = vector.shape_cast %376 : vector<16xf32> to vector<16x1xf32>
    %378 = vector.broadcast %377 : vector<16x1xf32> to vector<16x8xf32>
    %379 = arith.subf %375, %378 : vector<16x8xf32>
    %380 = math.exp %379 : vector<16x8xf32>
    %cst_234 = arith.constant dense<0.000000e+00> : vector<16xf32>
    %381 = vector.multi_reduction <add>, %380, %cst_234 [1] : vector<16x8xf32> to vector<16xf32>
    %382 = vector.shape_cast %381 : vector<16xf32> to vector<16x1xf32>
    %383 = tpu.reciprocal %382 {approx = true} : vector<16x1xf32> -> vector<16x1xf32>
    %384 = vector.broadcast %383 : vector<16x1xf32> to vector<16x8xf32>
    %385 = arith.mulf %380, %384 : vector<16x8xf32>
    %cst_235 = arith.constant dense<0.000000e+00> : vector<16x8xf32>
    %386 = tpu.matmul %385, %322, %cst_235 {dimension_numbers = #tpu.dot_dimension_numbers<[1], [0], [0], [1], [0, 0, 1, 1], [], []>} : vector<16x8xf32>, vector<8x8xf32>, vector<16x8xf32> -> vector<16x8xf32>
    %387 = arith.index_cast %arg1 : i32 to index
    %c3_236 = arith.constant 3 : index
    %c0_237 = arith.constant 0 : index
    %c0_238 = arith.constant 0 : index
    %388 = vector.load %arg10[%387, %c3_236, %c0_237, %c0_238] : memref<2x4x8x32xf32, #tpu.memory_space<vmem>>, vector<1x1x8x32xf32>
    %389 = vector.shape_cast %388 : vector<1x1x8x32xf32> to vector<8x32xf32>
    %cst_239 = arith.constant dense<0.000000e+00> : vector<16x32xf32>
    %390 = tpu.matmul %386, %389, %cst_239 {dimension_numbers = #tpu.dot_dimension_numbers<[1], [0], [0], [1], [0, 0, 1, 1], [], []>} : vector<16x8xf32>, vector<8x32xf32>, vector<16x32xf32> -> vector<16x32xf32>
    %391 = arith.addf %374, %390 : vector<16x32xf32>
    %392 = arith.index_cast %arg1 : i32 to index
    %c0_240 = arith.constant 0 : index
    %c0_241 = arith.constant 0 : index
    %393 = vector.load %arg11[%392, %c0_240, %c0_241] : memref<2x1x32xf32, #tpu.memory_space<vmem>>, vector<1x1x32xf32>
    %394 = vector.shape_cast %393 : vector<1x1x32xf32> to vector<1x32xf32>
    %395 = vector.broadcast %394 : vector<1x32xf32> to vector<16x32xf32>
    %396 = arith.addf %391, %395 : vector<16x32xf32>
    %397 = arith.addf %214, %396 : vector<16x32xf32>
    %398 = arith.index_cast %arg1 : i32 to index
    %c1_242 = arith.constant 1 : index
    %c0_243 = arith.constant 0 : index
    %c0_244 = arith.constant 0 : index
    %399 = vector.load %arg16[%398, %c1_242, %c0_243, %c0_244] : memref<2x3x1x32xf32, #tpu.memory_space<vmem>>, vector<1x1x1x32xf32>
    %400 = vector.shape_cast %399 : vector<1x1x1x32xf32> to vector<1x32xf32>
    %401 = arith.index_cast %arg1 : i32 to index
    %c1_245 = arith.constant 1 : index
    %c0_246 = arith.constant 0 : index
    %c0_247 = arith.constant 0 : index
    %402 = vector.load %arg17[%401, %c1_245, %c0_246, %c0_247] : memref<2x3x1x32xf32, #tpu.memory_space<vmem>>, vector<1x1x1x32xf32>
    %403 = vector.shape_cast %402 : vector<1x1x1x32xf32> to vector<1x32xf32>
    %cst_248 = arith.constant dense<0.000000e+00> : vector<16xf32>
    %404 = vector.multi_reduction <add>, %397, %cst_248 [1] : vector<16x32xf32> to vector<16xf32>
    %405 = vector.shape_cast %404 : vector<16xf32> to vector<16x1xf32>
    %cst_249 = arith.constant 3.200000e+01 : f32
    %406 = vector.broadcast %cst_249 : f32 to vector<16x1xf32>
    %407 = arith.divf %405, %406 : vector<16x1xf32>
    %408 = vector.broadcast %407 : vector<16x1xf32> to vector<16x32xf32>
    %409 = arith.subf %397, %408 : vector<16x32xf32>
    %410 = arith.mulf %409, %409 : vector<16x32xf32>
    %cst_250 = arith.constant dense<0.000000e+00> : vector<16xf32>
    %411 = vector.multi_reduction <add>, %410, %cst_250 [1] : vector<16x32xf32> to vector<16xf32>
    %412 = vector.shape_cast %411 : vector<16xf32> to vector<16x1xf32>
    %cst_251 = arith.constant 3.200000e+01 : f32
    %413 = vector.broadcast %cst_251 : f32 to vector<16x1xf32>
    %414 = arith.divf %412, %413 : vector<16x1xf32>
    %cst_252 = arith.constant 9.99999974E-6 : f32
    %415 = vector.broadcast %cst_252 : f32 to vector<16x1xf32>
    %416 = arith.addf %414, %415 : vector<16x1xf32>
    %417 = math.rsqrt %416 : vector<16x1xf32>
    %418 = vector.broadcast %417 : vector<16x1xf32> to vector<16x32xf32>
    %419 = arith.mulf %409, %418 : vector<16x32xf32>
    %420 = vector.broadcast %400 : vector<1x32xf32> to vector<16x32xf32>
    %421 = arith.mulf %419, %420 : vector<16x32xf32>
    %422 = vector.broadcast %403 : vector<1x32xf32> to vector<16x32xf32>
    %423 = arith.addf %421, %422 : vector<16x32xf32>
    %cst_253 = arith.constant 0.000000e+00 : f32
    %424 = vector.broadcast %cst_253 : f32 to vector<16x32xf32>
    %425 = arith.index_cast %arg1 : i32 to index
    %c0_254 = arith.constant 0 : index
    %c0_255 = arith.constant 0 : index
    %c0_256 = arith.constant 0 : index
    %426 = vector.load %arg12[%425, %c0_254, %c0_255, %c0_256] : memref<2x4x32x512xf32, #tpu.memory_space<vmem>>, vector<1x1x32x512xf32>
    %427 = vector.shape_cast %426 : vector<1x1x32x512xf32> to vector<32x512xf32>
    %cst_257 = arith.constant dense<0.000000e+00> : vector<16x512xf32>
    %428 = tpu.matmul %423, %427, %cst_257 {dimension_numbers = #tpu.dot_dimension_numbers<[1], [0], [0], [1], [0, 0, 1, 1], [], []>} : vector<16x32xf32>, vector<32x512xf32>, vector<16x512xf32> -> vector<16x512xf32>
    %429 = arith.index_cast %arg1 : i32 to index
    %c0_258 = arith.constant 0 : index
    %c0_259 = arith.constant 0 : index
    %c0_260 = arith.constant 0 : index
    %430 = vector.load %arg13[%429, %c0_258, %c0_259, %c0_260] : memref<2x4x1x512xf32, #tpu.memory_space<vmem>>, vector<1x1x1x512xf32>
    %431 = vector.shape_cast %430 : vector<1x1x1x512xf32> to vector<1x512xf32>
    %432 = vector.broadcast %431 : vector<1x512xf32> to vector<16x512xf32>
    %433 = arith.addf %428, %432 : vector<16x512xf32>
    %cst_261 = arith.constant 0.000000e+00 : f32
    %434 = vector.broadcast %cst_261 : f32 to vector<16x512xf32>
    %435 = arith.maximumf %433, %434 : vector<16x512xf32>
    %436 = arith.index_cast %arg1 : i32 to index
    %c0_262 = arith.constant 0 : index
    %c0_263 = arith.constant 0 : index
    %c0_264 = arith.constant 0 : index
    %437 = vector.load %arg14[%436, %c0_262, %c0_263, %c0_264] : memref<2x4x512x32xf32, #tpu.memory_space<vmem>>, vector<1x1x512x32xf32>
    %438 = vector.shape_cast %437 : vector<1x1x512x32xf32> to vector<512x32xf32>
    %cst_265 = arith.constant dense<0.000000e+00> : vector<16x32xf32>
    %439 = tpu.matmul %435, %438, %cst_265 {dimension_numbers = #tpu.dot_dimension_numbers<[1], [0], [0], [1], [0, 0, 1, 1], [], []>} : vector<16x512xf32>, vector<512x32xf32>, vector<16x32xf32> -> vector<16x32xf32>
    %440 = arith.addf %424, %439 : vector<16x32xf32>
    %441 = arith.index_cast %arg1 : i32 to index
    %c1_266 = arith.constant 1 : index
    %c0_267 = arith.constant 0 : index
    %c0_268 = arith.constant 0 : index
    %442 = vector.load %arg12[%441, %c1_266, %c0_267, %c0_268] : memref<2x4x32x512xf32, #tpu.memory_space<vmem>>, vector<1x1x32x512xf32>
    %443 = vector.shape_cast %442 : vector<1x1x32x512xf32> to vector<32x512xf32>
    %cst_269 = arith.constant dense<0.000000e+00> : vector<16x512xf32>
    %444 = tpu.matmul %423, %443, %cst_269 {dimension_numbers = #tpu.dot_dimension_numbers<[1], [0], [0], [1], [0, 0, 1, 1], [], []>} : vector<16x32xf32>, vector<32x512xf32>, vector<16x512xf32> -> vector<16x512xf32>
    %445 = arith.index_cast %arg1 : i32 to index
    %c1_270 = arith.constant 1 : index
    %c0_271 = arith.constant 0 : index
    %c0_272 = arith.constant 0 : index
    %446 = vector.load %arg13[%445, %c1_270, %c0_271, %c0_272] : memref<2x4x1x512xf32, #tpu.memory_space<vmem>>, vector<1x1x1x512xf32>
    %447 = vector.shape_cast %446 : vector<1x1x1x512xf32> to vector<1x512xf32>
    %448 = vector.broadcast %447 : vector<1x512xf32> to vector<16x512xf32>
    %449 = arith.addf %444, %448 : vector<16x512xf32>
    %cst_273 = arith.constant 0.000000e+00 : f32
    %450 = vector.broadcast %cst_273 : f32 to vector<16x512xf32>
    %451 = arith.maximumf %449, %450 : vector<16x512xf32>
    %452 = arith.index_cast %arg1 : i32 to index
    %c1_274 = arith.constant 1 : index
    %c0_275 = arith.constant 0 : index
    %c0_276 = arith.constant 0 : index
    %453 = vector.load %arg14[%452, %c1_274, %c0_275, %c0_276] : memref<2x4x512x32xf32, #tpu.memory_space<vmem>>, vector<1x1x512x32xf32>
    %454 = vector.shape_cast %453 : vector<1x1x512x32xf32> to vector<512x32xf32>
    %cst_277 = arith.constant dense<0.000000e+00> : vector<16x32xf32>
    %455 = tpu.matmul %451, %454, %cst_277 {dimension_numbers = #tpu.dot_dimension_numbers<[1], [0], [0], [1], [0, 0, 1, 1], [], []>} : vector<16x512xf32>, vector<512x32xf32>, vector<16x32xf32> -> vector<16x32xf32>
    %456 = arith.addf %440, %455 : vector<16x32xf32>
    %457 = arith.index_cast %arg1 : i32 to index
    %c2_278 = arith.constant 2 : index
    %c0_279 = arith.constant 0 : index
    %c0_280 = arith.constant 0 : index
    %458 = vector.load %arg12[%457, %c2_278, %c0_279, %c0_280] : memref<2x4x32x512xf32, #tpu.memory_space<vmem>>, vector<1x1x32x512xf32>
    %459 = vector.shape_cast %458 : vector<1x1x32x512xf32> to vector<32x512xf32>
    %cst_281 = arith.constant dense<0.000000e+00> : vector<16x512xf32>
    %460 = tpu.matmul %423, %459, %cst_281 {dimension_numbers = #tpu.dot_dimension_numbers<[1], [0], [0], [1], [0, 0, 1, 1], [], []>} : vector<16x32xf32>, vector<32x512xf32>, vector<16x512xf32> -> vector<16x512xf32>
    %461 = arith.index_cast %arg1 : i32 to index
    %c2_282 = arith.constant 2 : index
    %c0_283 = arith.constant 0 : index
    %c0_284 = arith.constant 0 : index
    %462 = vector.load %arg13[%461, %c2_282, %c0_283, %c0_284] : memref<2x4x1x512xf32, #tpu.memory_space<vmem>>, vector<1x1x1x512xf32>
    %463 = vector.shape_cast %462 : vector<1x1x1x512xf32> to vector<1x512xf32>
    %464 = vector.broadcast %463 : vector<1x512xf32> to vector<16x512xf32>
    %465 = arith.addf %460, %464 : vector<16x512xf32>
    %cst_285 = arith.constant 0.000000e+00 : f32
    %466 = vector.broadcast %cst_285 : f32 to vector<16x512xf32>
    %467 = arith.maximumf %465, %466 : vector<16x512xf32>
    %468 = arith.index_cast %arg1 : i32 to index
    %c2_286 = arith.constant 2 : index
    %c0_287 = arith.constant 0 : index
    %c0_288 = arith.constant 0 : index
    %469 = vector.load %arg14[%468, %c2_286, %c0_287, %c0_288] : memref<2x4x512x32xf32, #tpu.memory_space<vmem>>, vector<1x1x512x32xf32>
    %470 = vector.shape_cast %469 : vector<1x1x512x32xf32> to vector<512x32xf32>
    %cst_289 = arith.constant dense<0.000000e+00> : vector<16x32xf32>
    %471 = tpu.matmul %467, %470, %cst_289 {dimension_numbers = #tpu.dot_dimension_numbers<[1], [0], [0], [1], [0, 0, 1, 1], [], []>} : vector<16x512xf32>, vector<512x32xf32>, vector<16x32xf32> -> vector<16x32xf32>
    %472 = arith.addf %456, %471 : vector<16x32xf32>
    %473 = arith.index_cast %arg1 : i32 to index
    %c3_290 = arith.constant 3 : index
    %c0_291 = arith.constant 0 : index
    %c0_292 = arith.constant 0 : index
    %474 = vector.load %arg12[%473, %c3_290, %c0_291, %c0_292] : memref<2x4x32x512xf32, #tpu.memory_space<vmem>>, vector<1x1x32x512xf32>
    %475 = vector.shape_cast %474 : vector<1x1x32x512xf32> to vector<32x512xf32>
    %cst_293 = arith.constant dense<0.000000e+00> : vector<16x512xf32>
    %476 = tpu.matmul %423, %475, %cst_293 {dimension_numbers = #tpu.dot_dimension_numbers<[1], [0], [0], [1], [0, 0, 1, 1], [], []>} : vector<16x32xf32>, vector<32x512xf32>, vector<16x512xf32> -> vector<16x512xf32>
    %477 = arith.index_cast %arg1 : i32 to index
    %c3_294 = arith.constant 3 : index
    %c0_295 = arith.constant 0 : index
    %c0_296 = arith.constant 0 : index
    %478 = vector.load %arg13[%477, %c3_294, %c0_295, %c0_296] : memref<2x4x1x512xf32, #tpu.memory_space<vmem>>, vector<1x1x1x512xf32>
    %479 = vector.shape_cast %478 : vector<1x1x1x512xf32> to vector<1x512xf32>
    %480 = vector.broadcast %479 : vector<1x512xf32> to vector<16x512xf32>
    %481 = arith.addf %476, %480 : vector<16x512xf32>
    %cst_297 = arith.constant 0.000000e+00 : f32
    %482 = vector.broadcast %cst_297 : f32 to vector<16x512xf32>
    %483 = arith.maximumf %481, %482 : vector<16x512xf32>
    %484 = arith.index_cast %arg1 : i32 to index
    %c3_298 = arith.constant 3 : index
    %c0_299 = arith.constant 0 : index
    %c0_300 = arith.constant 0 : index
    %485 = vector.load %arg14[%484, %c3_298, %c0_299, %c0_300] : memref<2x4x512x32xf32, #tpu.memory_space<vmem>>, vector<1x1x512x32xf32>
    %486 = vector.shape_cast %485 : vector<1x1x512x32xf32> to vector<512x32xf32>
    %cst_301 = arith.constant dense<0.000000e+00> : vector<16x32xf32>
    %487 = tpu.matmul %483, %486, %cst_301 {dimension_numbers = #tpu.dot_dimension_numbers<[1], [0], [0], [1], [0, 0, 1, 1], [], []>} : vector<16x512xf32>, vector<512x32xf32>, vector<16x32xf32> -> vector<16x32xf32>
    %488 = arith.addf %472, %487 : vector<16x32xf32>
    %489 = arith.index_cast %arg1 : i32 to index
    %c0_302 = arith.constant 0 : index
    %c0_303 = arith.constant 0 : index
    %490 = vector.load %arg15[%489, %c0_302, %c0_303] : memref<2x1x32xf32, #tpu.memory_space<vmem>>, vector<1x1x32xf32>
    %491 = vector.shape_cast %490 : vector<1x1x32xf32> to vector<1x32xf32>
    %492 = vector.broadcast %491 : vector<1x32xf32> to vector<16x32xf32>
    %493 = arith.addf %488, %492 : vector<16x32xf32>
    %494 = arith.addf %423, %493 : vector<16x32xf32>
    %495 = arith.index_cast %arg1 : i32 to index
    %c2_304 = arith.constant 2 : index
    %c0_305 = arith.constant 0 : index
    %c0_306 = arith.constant 0 : index
    %496 = vector.load %arg16[%495, %c2_304, %c0_305, %c0_306] : memref<2x3x1x32xf32, #tpu.memory_space<vmem>>, vector<1x1x1x32xf32>
    %497 = vector.shape_cast %496 : vector<1x1x1x32xf32> to vector<1x32xf32>
    %498 = arith.index_cast %arg1 : i32 to index
    %c2_307 = arith.constant 2 : index
    %c0_308 = arith.constant 0 : index
    %c0_309 = arith.constant 0 : index
    %499 = vector.load %arg17[%498, %c2_307, %c0_308, %c0_309] : memref<2x3x1x32xf32, #tpu.memory_space<vmem>>, vector<1x1x1x32xf32>
    %500 = vector.shape_cast %499 : vector<1x1x1x32xf32> to vector<1x32xf32>
    %cst_310 = arith.constant dense<0.000000e+00> : vector<16xf32>
    %501 = vector.multi_reduction <add>, %494, %cst_310 [1] : vector<16x32xf32> to vector<16xf32>
    %502 = vector.shape_cast %501 : vector<16xf32> to vector<16x1xf32>
    %cst_311 = arith.constant 3.200000e+01 : f32
    %503 = vector.broadcast %cst_311 : f32 to vector<16x1xf32>
    %504 = arith.divf %502, %503 : vector<16x1xf32>
    %505 = vector.broadcast %504 : vector<16x1xf32> to vector<16x32xf32>
    %506 = arith.subf %494, %505 : vector<16x32xf32>
    %507 = arith.mulf %506, %506 : vector<16x32xf32>
    %cst_312 = arith.constant dense<0.000000e+00> : vector<16xf32>
    %508 = vector.multi_reduction <add>, %507, %cst_312 [1] : vector<16x32xf32> to vector<16xf32>
    %509 = vector.shape_cast %508 : vector<16xf32> to vector<16x1xf32>
    %cst_313 = arith.constant 3.200000e+01 : f32
    %510 = vector.broadcast %cst_313 : f32 to vector<16x1xf32>
    %511 = arith.divf %509, %510 : vector<16x1xf32>
    %cst_314 = arith.constant 9.99999974E-6 : f32
    %512 = vector.broadcast %cst_314 : f32 to vector<16x1xf32>
    %513 = arith.addf %511, %512 : vector<16x1xf32>
    %514 = math.rsqrt %513 : vector<16x1xf32>
    %515 = vector.broadcast %514 : vector<16x1xf32> to vector<16x32xf32>
    %516 = arith.mulf %506, %515 : vector<16x32xf32>
    %517 = vector.broadcast %497 : vector<1x32xf32> to vector<16x32xf32>
    %518 = arith.mulf %516, %517 : vector<16x32xf32>
    %519 = vector.broadcast %500 : vector<1x32xf32> to vector<16x32xf32>
    %520 = arith.addf %518, %519 : vector<16x32xf32>
    %c0_315 = arith.constant 0 : index
    %c0_316 = arith.constant 0 : index
    %521 = vector.load %arg19[%c0_315, %c0_316] : memref<16x32xf32, #tpu.memory_space<vmem>>, vector<16x32xf32>
    tpu.vector_store %arg19[%c0_315, %c0_316], %520 {strides = array<i32>} : memref<16x32xf32, #tpu.memory_space<vmem>>, vector<16x32xf32>,
    %c1_i32 = arith.constant 1 : i32
    %522 = arith.cmpi eq, %arg1, %c1_i32 : i32
    %523 = arith.extui %522 : i1 to i32
    %c0_i32_317 = arith.constant 0 : i32
    %524 = arith.cmpi ne, %523, %c0_i32_317 : i32
    scf.if %524 {
      %c0_318 = arith.constant 0 : index
      %c0_319 = arith.constant 0 : index
      %c0_320 = arith.constant 0 : index
      %525 = vector.load %arg18[%c0_318, %c0_319, %c0_320] : memref<1x16x32xf32, #tpu.memory_space<vmem>>, vector<1x16x32xf32>
      %526 = vector.shape_cast %525 : vector<1x16x32xf32> to vector<16x32xf32>
      %527 = vector.shape_cast %520 : vector<16x32xf32> to vector<1x16x32xf32>
      tpu.vector_store %arg18[%c0_318, %c0_319, %c0_320], %527 {strides = array<i32>} : memref<1x16x32xf32, #tpu.memory_space<vmem>>, vector<1x16x32xf32>,
    } else {
    }
    return
  }
  func.func @transform_0(%arg0: i32, %arg1: i32) -> (i32, i32) {
    %c0_i32 = arith.constant 0 : i32
    %c0_i32_0 = arith.constant 0 : i32
    %c0_i32_1 = arith.constant 0 : i32
    return %c0_i32, %c0_i32_0 : i32, i32
  }
  func.func @transform_1(%arg0: i32, %arg1: i32) -> (i32, i32, i32) {
    %c0_i32 = arith.constant 0 : i32
    %c0_i32_0 = arith.constant 0 : i32
    %c0_i32_1 = arith.constant 0 : i32
    return %arg0, %c0_i32, %c0_i32_0 : i32, i32, i32
  }
  func.func @transform_2(%arg0: i32, %arg1: i32) -> (i32, i32, i32, i32) {
    %c0_i32 = arith.constant 0 : i32
    %c0_i32_0 = arith.constant 0 : i32
    %c0_i32_1 = arith.constant 0 : i32
    %c0_i32_2 = arith.constant 0 : i32
    %c0_i32_3 = arith.constant 0 : i32
    return %c0_i32, %c0_i32_0, %c0_i32_1, %c0_i32_2 : i32, i32, i32, i32
  }
  func.func @transform_3(%arg0: i32, %arg1: i32) -> (i32, i32, i32, i32) {
    %c0_i32 = arith.constant 0 : i32
    %c0_i32_0 = arith.constant 0 : i32
    %c0_i32_1 = arith.constant 0 : i32
    %c0_i32_2 = arith.constant 0 : i32
    %c0_i32_3 = arith.constant 0 : i32
    return %c0_i32, %c0_i32_0, %c0_i32_1, %c0_i32_2 : i32, i32, i32, i32
  }
  func.func @transform_4(%arg0: i32, %arg1: i32) -> (i32, i32, i32, i32) {
    %c0_i32 = arith.constant 0 : i32
    %c0_i32_0 = arith.constant 0 : i32
    %c0_i32_1 = arith.constant 0 : i32
    %c0_i32_2 = arith.constant 0 : i32
    %c0_i32_3 = arith.constant 0 : i32
    return %c0_i32, %c0_i32_0, %c0_i32_1, %c0_i32_2 : i32, i32, i32, i32
  }
  func.func @transform_5(%arg0: i32, %arg1: i32) -> (i32, i32, i32) {
    %c0_i32 = arith.constant 0 : i32
    %c0_i32_0 = arith.constant 0 : i32
    %c0_i32_1 = arith.constant 0 : i32
    %c0_i32_2 = arith.constant 0 : i32
    return %c0_i32, %c0_i32_0, %c0_i32_1 : i32, i32, i32
  }
  func.func @transform_6(%arg0: i32, %arg1: i32) -> (i32, i32, i32, i32) {
    %c0_i32 = arith.constant 0 : i32
    %c0_i32_0 = arith.constant 0 : i32
    %c0_i32_1 = arith.constant 0 : i32
    %c0_i32_2 = arith.constant 0 : i32
    %c0_i32_3 = arith.constant 0 : i32
    return %c0_i32, %c0_i32_0, %c0_i32_1, %c0_i32_2 : i32, i32, i32, i32
  }
  func.func @transform_7(%arg0: i32, %arg1: i32) -> (i32, i32, i32, i32) {
    %c0_i32 = arith.constant 0 : i32
    %c0_i32_0 = arith.constant 0 : i32
    %c0_i32_1 = arith.constant 0 : i32
    %c0_i32_2 = arith.constant 0 : i32
    %c0_i32_3 = arith.constant 0 : i32
    return %c0_i32, %c0_i32_0, %c0_i32_1, %c0_i32_2 : i32, i32, i32, i32
  }
  func.func @transform_8(%arg0: i32, %arg1: i32) -> (i32, i32, i32, i32) {
    %c0_i32 = arith.constant 0 : i32
    %c0_i32_0 = arith.constant 0 : i32
    %c0_i32_1 = arith.constant 0 : i32
    %c0_i32_2 = arith.constant 0 : i32
    %c0_i32_3 = arith.constant 0 : i32
    return %c0_i32, %c0_i32_0, %c0_i32_1, %c0_i32_2 : i32, i32, i32, i32
  }
  func.func @transform_9(%arg0: i32, %arg1: i32) -> (i32, i32, i32) {
    %c0_i32 = arith.constant 0 : i32
    %c0_i32_0 = arith.constant 0 : i32
    %c0_i32_1 = arith.constant 0 : i32
    %c0_i32_2 = arith.constant 0 : i32
    return %c0_i32, %c0_i32_0, %c0_i32_1 : i32, i32, i32
  }
  func.func @transform_10(%arg0: i32, %arg1: i32) -> (i32, i32, i32, i32) {
    %c0_i32 = arith.constant 0 : i32
    %c0_i32_0 = arith.constant 0 : i32
    %c0_i32_1 = arith.constant 0 : i32
    %c0_i32_2 = arith.constant 0 : i32
    %c0_i32_3 = arith.constant 0 : i32
    return %c0_i32, %c0_i32_0, %c0_i32_1, %c0_i32_2 : i32, i32, i32, i32
  }
  func.func @transform_11(%arg0: i32, %arg1: i32) -> (i32, i32, i32, i32) {
    %c0_i32 = arith.constant 0 : i32
    %c0_i32_0 = arith.constant 0 : i32
    %c0_i32_1 = arith.constant 0 : i32
    %c0_i32_2 = arith.constant 0 : i32
    %c0_i32_3 = arith.constant 0 : i32
    return %c0_i32, %c0_i32_0, %c0_i32_1, %c0_i32_2 : i32, i32, i32, i32
  }
  func.func @transform_12(%arg0: i32, %arg1: i32) -> (i32, i32, i32, i32) {
    %c0_i32 = arith.constant 0 : i32
    %c0_i32_0 = arith.constant 0 : i32
    %c0_i32_1 = arith.constant 0 : i32
    %c0_i32_2 = arith.constant 0 : i32
    %c0_i32_3 = arith.constant 0 : i32
    return %c0_i32, %c0_i32_0, %c0_i32_1, %c0_i32_2 : i32, i32, i32, i32
  }
  func.func @transform_13(%arg0: i32, %arg1: i32) -> (i32, i32, i32) {
    %c0_i32 = arith.constant 0 : i32
    %c0_i32_0 = arith.constant 0 : i32
    %c0_i32_1 = arith.constant 0 : i32
    %c0_i32_2 = arith.constant 0 : i32
    return %c0_i32, %c0_i32_0, %c0_i32_1 : i32, i32, i32
  }
  func.func @transform_14(%arg0: i32, %arg1: i32) -> (i32, i32, i32, i32) {
    %c0_i32 = arith.constant 0 : i32
    %c0_i32_0 = arith.constant 0 : i32
    %c0_i32_1 = arith.constant 0 : i32
    %c0_i32_2 = arith.constant 0 : i32
    %c0_i32_3 = arith.constant 0 : i32
    return %c0_i32, %c0_i32_0, %c0_i32_1, %c0_i32_2 : i32, i32, i32, i32
  }
  func.func @transform_15(%arg0: i32, %arg1: i32) -> (i32, i32, i32, i32) {
    %c0_i32 = arith.constant 0 : i32
    %c0_i32_0 = arith.constant 0 : i32
    %c0_i32_1 = arith.constant 0 : i32
    %c0_i32_2 = arith.constant 0 : i32
    %c0_i32_3 = arith.constant 0 : i32
    return %c0_i32, %c0_i32_0, %c0_i32_1, %c0_i32_2 : i32, i32, i32, i32
  }
  func.func @transform_16(%arg0: i32, %arg1: i32) -> (i32, i32, i32) {
    %c0_i32 = arith.constant 0 : i32
    %c0_i32_0 = arith.constant 0 : i32
    %c0_i32_1 = arith.constant 0 : i32
    return %arg0, %c0_i32, %c0_i32_0 : i32, i32, i32
  }
}

</mosaic_0001>

<bundles_post_ra>
// kernel: transformer_decoder_forward.1
= control target key start
LH: loop header
LB: loop body
LE: loop exit
PB: predicated region body
PF: predicated region fallthrough
CT: control target
= control target key end

     0   :  { %s9995_s0 = inlined_call_operand.vmem [shape: f32[16,32], index: 0, kind: input, shape index: {}]   ;;  %s9996_s1 = inlined_call_operand.vmem [shape: f32[2,8,32], index: 1, kind: input, shape index: {}]   ;;  %s9997_s2 = inlined_call_operand.vmem [shape: f32[2,12,32,8], index: 2, kind: input, shape index: {}]   ;;  %s9998_s3 = inlined_call_operand.vmem [shape: f32[2,12,1,8], index: 3, kind: input, shape index: {}]   ;;  %s9999_s4 = inlined_call_operand.vmem [shape: f32[2,4,8,32], index: 4, kind: input, shape index: {}]   ;;  %s10000_s5 = inlined_call_operand.vmem [shape: f32[2,1,32], index: 5, kind: input, shape index: {}]   ;;  %s10001_s6 = inlined_call_operand.vmem [shape: f32[2,12,32,8], index: 6, kind: input, shape index: {}]   ;;  %s10002_s7 = inlined_call_operand.vmem [shape: f32[2,12,1,8], index: 7, kind: input, shape index: {}]   ;;  %s10003_s8 = inlined_call_operand.vmem [shape: f32[2,4,8,32], index: 8, kind: input, shape index: {}]   ;;  %s10004_s9 = inlined_call_operand.vmem [shape: f32[2,1,32], index: 9, kind: input, shape index: {}]   ;;  %s10005_s10 = inlined_call_operand.vmem [shape: f32[2,4,32,512], index: 10, kind: input, shape index: {}]   ;;  %s10006_s11 = inlined_call_operand.vmem [shape: f32[2,4,1,512], index: 11, kind: input, shape index: {}]   ;;  %s10007_s12 = inlined_call_operand.vmem [shape: f32[2,4,512,32], index: 12, kind: input, shape index: {}]   ;;  %s10008_s13 = inlined_call_operand.vmem [shape: f32[2,1,32], index: 13, kind: input, shape index: {}]   ;;  %s10009_s14 = inlined_call_operand.vmem [shape: f32[2,3,1,32], index: 14, kind: input, shape index: {}]   ;;  %s10010_s15 = inlined_call_operand.vmem [shape: f32[2,3,1,32], index: 15, kind: input, shape index: {}]   ;;  %s10011_s16 = inlined_call_operand.hbm [shape: f32[2,16,32], index: 16, kind: output, shape index: {}]  }
   0x1   :  { %10025 = sst [smem:[#allocation17_spill]] %s9995_s0 }
   0x2   :  { %10026 = sst [smem:[#allocation18_spill]] %s10011_s16 }
   0x3   :  { %21 = vsyncpa [#allocation4], 0 }
   0x4   :  { %23 = vsyncpa [#allocation4 + $0x1], 0  ;;  %s8832_s21 = smov 0   ;;  %s8834_s22 = smov 0  }
   0x5   :  { %s8836_s23 = smov 0   ;;  %s8838_s24 = smov 0  }
   0x6   :  { %s8840_s25 = smov 0   ;;  %s8842_s26 = smov 0  }
   0x7   :  { %s8844_s27 = smov 0   ;;  %s8846_s28 = smov 0  }
   0x8 LB: > { %10027 = sst [smem:[#allocation6_spill]] %s8712_s21  ;;  %s7023_s29 = sadd.s32 4294967295, %s8740_s28   ;;  %s8740_s28 = sphi %s8846_s28, %s29_s28   ;;  %s8736_s27 = sphi %s8844_s27, %s10054_s27   ;;  %s8732_s26 = sphi %s8842_s26, %s10053_s26   ;;  %s8728_s25 = sphi %s8840_s25, %s10052_s25   ;;  %s8724_s24 = sphi %s8838_s24, %s10051_s24   ;;  %s8720_s23 = sphi %s8836_s23, %s10050_s23   ;;  %s8716_s22 = sphi %s8834_s22, %s10049_s22   ;;  %s8712_s21 = sphi %s8832_s21, %s10048_s21  }
   0x9   : > { %10028 = sst [smem:[#allocation7_spill]] %s8716_s22  ;;  %s7024_s30 = sadd.s32 4294967294, %s8740_s28  }
   0xa   : > { %10029 = sst [smem:[#allocation8_spill]] %s8720_s23  ;;  %s38_s0 = sadd.s32 1, %s8732_s26 }
   0xb   : > { %10030 = sst [smem:[#allocation9_spill]] %s8732_s26  ;;  %p39_p0 = scmp.ge.s32.totalorder %s38_s0, 2 }
   0xc   : > { %10031 = sst [smem:[#allocation10_spill]] %s8736_s27  ;;  %s41_s17 = sadd.s32 1, %s8736_s27 }
   0xd   : > { %10032 = sst [smem:[#allocation11_spill]] %s8740_s28  ;;  %p399_p1 = scmp.ne.s32.totalorder %s8720_s23, %s8716_s22 }
   0xe   : > { %p400_p2 = scmp.eq.s32.totalorder %s7023_s29, 3  ;;  %s10056_s0 = smov (%p39_p0, %s38_s0), 0 }
   0xf   : > { %10033 = sst [smem:[#allocation12_spill]] %s10056_s0  ;;  %s10058_s17 = smov (!%p39_p0, %s41_s17), %s8736_s27 }
  0x10   : > { %p8881_p3 = por %p400_p2, %p399_p1  ;;  %p405_p4 = scmp.ne.s32.totalorder %s8716_s22, %s8712_s21 }
  0x11   : > { %p43_p5 = scmp.ge.s32.totalorder %s10058_s17, 2  ;;  %p406_p6 = scmp.eq.s32.totalorder %s7024_s30, 3 }
  0x12   : > { %s10034_s18 = scalar_select %p8881_p3, 1, 0 }
  0x13   : > { %p7027_p7 = scmp.ge.s32.totalorder %s8740_s28, 1  ;;  %p476_p8 = scmp.lt.s32.totalorder %s8740_s28, 5 }
  0x14   : > { %10035 = sst [smem:[#allocation13_spill]] %s10034_s18  ;;  %s10060_s17 = smov (%p43_p5, %s10058_s17), 0 }
  0x15   : > { %10036 = sst [smem:[#allocation14_spill]] %s10060_s17  ;;  %p8891_p9 = por %p406_p6, %p405_p4 }
  0x16   : > { %p477_p10 = pnand %p7027_p7, %p476_p8  ;;  %s386_s20 = ssub.s32 %s8736_s27, %s10060_s17 }
  0x17   : > { %s10037_s19 = scalar_select %p8891_p9, 1, 0 }
  0x18   : > { %s389_s29 = sadd.s32 1, %s8720_s23  ;;  %p387_p11 = scmp.eq.s32.totalorder %s386_s20, 0 }
  0x19   : > { %10038 = sst [smem:[#allocation15_spill]] %s10037_s19  ;;  %480 = sbr.rel (%p477_p10) target bundleno = 6764 (0x1a6c), region = 84 }
  0x1a   : > { %s8899_s0 = scalar_select %p387_p11, %s8720_s23, %s389_s29  }
  0x1b   : > { %s522_s30 = sand.u32 (!%p477_p10), 1, %s8716_s22   ;;  %p525_p12 = scmp.lt.s32.totalorder (!%p477_p10), %s8728_s25, 1 }
  0x1c   : > { %10039 = sst [smem:[#allocation16_spill]] %s8899_s0  ;;  %s7028_s26 = sshll.u32 (!%p477_p10), %s522_s30, 4 }
  0x1d   : > { %s8911_s17 = scalar_lea.vmem (!%p477_p10), [#allocation3], %s7028_s26  ;;  %p7030_p13 = scmp.ne.s32.totalorder (!%p477_p10), %s8724_s24, 0 }
  0x1e   : > { %s526_s21 = scalar_select %p525_p12, %s8728_s25, 1 }
  0x1f   : > { %532 = sbr.rel (%p7030_p13) target bundleno = 40 (0x28), region = 88  ;;  %s10040_s27 = sld [smem:[#allocation17_spill]] (!%p7030_p13) }
  0x20   : > { %s7029_s28 = sshll.u32 %s526_s21, 3 }
  0x21   : > { %s8909_s19 = scalar_lea.vmem %s9996_s1, %s7029_s28 }
  0x24   : > { %vm535_vm0 = vcmask 261120  }
  0x25   : > { %s10041_s0 = smov %s10040_s27  ;;  %v533_v0 = vld [vmem:[%s10040_s27] sm:$0xff] }
  0x26   : > { %v534_v1 = vld [vmem:[%s10041_s0 + $0x8] sm:$0xff]  ;;  %536 = vst.msk [vmem:[#allocation2] sm:$0xff] %vm535_vm0, %v533_v0 }
  0x27   : > { %537 = vst.msk [vmem:[#allocation2 + $0x8] sm:$0xff] %vm535_vm0, %v534_v1 }
  0x28 PF: > { %s541_s16 = smul.u32 384, %s8724_s24  ;;  %vm556_vm1 = vcmask 261120   ;;  %vm1628_vm2 = vcmask 64512   ;;  %vm1716_vm3 = vcmask 130048   ;;  %s7128_s20 = sshll.u32 %s8724_s24, 5  ;;  %vm8743_vm4 = vmmov 0  }
  0x29   : > { %s547_s23 = smul.u32 12, %s8724_s24  ;;  %s9084_s26 = scalar_lea.vmem %s9999_s4, %s7128_s20 }
  0x2a   : > { %s8932_s22 = scalar_lea.vmem %s9997_s2, %s541_s16  ;;  %s2730_s28 = scalar_lea.vmem %s10000_s5, %s8724_s24 }
  0x2b   : > { %v7037_v3 = vld [vmem:[%s8932_s22 + $0x98] sm:$0xff]  ;;  %v7036_v4 = vld [vmem:[%s8932_s22 + $0x90] sm:$0xff]  ;;  %v7035_v7 = vld [vmem:[%s8932_s22 + $0x88] sm:$0xff]  ;;  %s9034_s18 = scalar_lea.vmem %s9998_s3, %s547_s23  ;;  %s9188_s21 = scalar_lea.vmem %s10001_s6, %s541_s16 }
  0x2c   : > { %v546_v5 = vld [vmem:[%s8932_s22 + $0x18] sm:$0xff]  ;;  %8108 = vmatprep.subr.mxu1 %v7037_v3  ;;  %v545_v6 = vld [vmem:[%s8932_s22 + $0x10] sm:$0xff]  ;;  %v544_v8 = vld [vmem:[%s8932_s22 + $0x8] sm:$0xff]  ;;  %s9333_s16 = scalar_lea.vmem %s10002_s7, %s547_s23  ;;  %s7572_s29 = sshll.u32 %s8724_s24, 9 }
  0x2d   : > { %v8921_v2 = vld [vmem:[#allocation2] sm:$0xff]  ;;  %8097 = vmatprep.subr.mxu0 %v546_v5  ;;  %8109 = vmatpush3.msra.mxu1 %v7037_v3  ;;  %v7045_v12 = vld [vmem:[%s8932_s22 + $0x118] sm:$0xff]  ;;  %v7044_v13 = vld [vmem:[%s8932_s22 + $0x110] sm:$0xff]  ;;  %s9462_s23 = scalar_lea.vmem %s10005_s10, %s7572_s29  ;;  %p7566_p0 = scmp.ne.s32.totalorder %s8724_s24, 1 }
  0x2e   : > { %8116 = vmatprep.mubr.msk.f32.mxu1 %vm556_vm1, %v8921_v2  ;;  %8105 = vmatprep.mubr.msk.f32.mxu0 %vm556_vm1, %v8921_v2  ;;  %v7034_v9 = vld [vmem:[%s8932_s22 + $0x80] sm:$0xff]  ;;  %v8942_v11 = vld [vmem:[#allocation2 + $0x8] sm:$0xff]  ;;  %v7061_v16 = vld [vmem:[%s8932_s22 + $0xb8] sm:$0xff] }
  0x2f   : > { %8098 = vmatpush3.msra.mxu0 %v546_v5  ;;  %8110 = vmatprep.subr.mxu1 %v7036_v4  ;;  %v543_v10 = vld [vmem:[%s8932_s22] sm:$0xff]  ;;  %v7043_v14 = vld [vmem:[%s8932_s22 + $0x108] sm:$0xff]  ;;  %v7060_v17 = vld [vmem:[%s8932_s22 + $0xb0] sm:$0xff] }
  0x30   : > { %8099 = vmatprep.subr.mxu0 %v545_v6  ;;  %8111 = vmatpush3.msra.mxu1 %v7036_v4  ;;  %v7042_v15 = vld [vmem:[%s8932_s22 + $0x100] sm:$0xff]  ;;  %v7059_v18 = vld [vmem:[%s8932_s22 + $0xa8] sm:$0xff]  ;;  %v7077_v20 = vld [vmem:[%s8932_s22 + $0x58] sm:$0xff] }
  0x31   : > { %8100 = vmatpush3.msra.mxu0 %v545_v6  ;;  %8112 = vmatprep.subr.mxu1 %v7035_v7  ;;  %v7058_v19 = vld [vmem:[%s8932_s22 + $0xa0] sm:$0xff]  ;;  %v7076_v21 = vld [vmem:[%s8932_s22 + $0x50] sm:$0xff]  ;;  %v7075_v22 = vld [vmem:[%s8932_s22 + $0x48] sm:$0xff] }
  0x32   : > { %8101 = vmatprep.subr.mxu0 %v544_v8  ;;  %8113 = vmatpush3.msra.mxu1 %v7035_v7  ;;  %v7074_v23 = vld [vmem:[%s8932_s22 + $0x40] sm:$0xff]  ;;  %v7093_v24 = vld [vmem:[%s8932_s22 + $0x158] sm:$0xff]  ;;  %v7092_v25 = vld [vmem:[%s8932_s22 + $0x150] sm:$0xff] }
  0x33   : > { %8102 = vmatpush3.msra.mxu0 %v544_v8  ;;  %8114 = vmatprep.subr.mxu1 %v7034_v9  ;;  %v7091_v26 = vld [vmem:[%s8932_s22 + $0x148] sm:$0xff]  ;;  %v7090_v27 = vld [vmem:[%s8932_s22 + $0x140] sm:$0xff]  ;;  %v7109_v28 = vld [vmem:[%s8932_s22 + $0xf8] sm:$0xff] }
  0x34   : > { %8103 = vmatprep.subr.mxu0 %v543_v10  ;;  %8115 = vmatpush3.msra.mxu1 %v7034_v9  ;;  %v7108_v29 = vld [vmem:[%s8932_s22 + $0xf0] sm:$0xff]  ;;  %v7107_v30 = vld [vmem:[%s8932_s22 + $0xe8] sm:$0xff]  ;;  %v7106_v31 = vld [vmem:[%s8932_s22 + $0xe0] sm:$0xff] }
  0x35   : > { %8104 = vmatpush3.msra.mxu0 %v543_v10  ;;  %8117 = vmatmul.mubr.msk.f32.vlgmr.msra.gmra.mxu1 %vm556_vm1, %v8942_v11  ;;  %v7053_v32 = vld [vmem:[%s8932_s22 + $0x38] sm:$0xff]  ;;  %v7052_v33 = vld [vmem:[%s8932_s22 + $0x30] sm:$0xff]  ;;  %v7051_v34 = vld [vmem:[%s8932_s22 + $0x28] sm:$0xff] }
  0x36   : > { %8106 = vmatmul.mubr.msk.f32.vlgmr.msra.gmra.mxu0 %vm556_vm1, %v8942_v11  ;;  %8119 = vmatprep.subr.mxu0 %v7045_v12  ;;  %v7050_v35 = vld [vmem:[%s8932_s22 + $0x20] sm:$0xff]  ;;  %v7069_v36 = vld [vmem:[%s8932_s22 + $0x138] sm:$0xff]  ;;  %v7068_v37 = vld [vmem:[%s8932_s22 + $0x130] sm:$0xff] }
  0x37   : > { %8127 = vmatprep.mubr.msk.f32.mxu0 %vm556_vm1, %v8921_v2  ;;  %8120 = vmatpush3.msra.mxu0 %v7045_v12  ;;  %v7067_v38 = vld [vmem:[%s8932_s22 + $0x128] sm:$0xff]  ;;  %v7066_v39 = vld [vmem:[%s8932_s22 + $0x120] sm:$0xff]  ;;  %v7085_v40 = vld [vmem:[%s8932_s22 + $0xd8] sm:$0xff] }
  0x38   : > { %8138 = vmatprep.mubr.msk.f32.mxu1 %vm556_vm1, %v8921_v2  ;;  %8121 = vmatprep.subr.mxu0 %v7044_v13  ;;  %v7084_v41 = vld [vmem:[%s8932_s22 + $0xd0] sm:$0xff]  ;;  %v7083_v42 = vld [vmem:[%s8932_s22 + $0xc8] sm:$0xff]  ;;  %v7082_v43 = vld [vmem:[%s8932_s22 + $0xc0] sm:$0xff] }
  0x39   : > { %8122 = vmatpush3.msra.mxu0 %v7044_v13  ;;  %8130 = vmatprep.subr.mxu1 %v7053_v32  ;;  %v7101_v44 = vld [vmem:[%s8932_s22 + $0x78] sm:$0xff]  ;;  %v7100_v45 = vld [vmem:[%s8932_s22 + $0x70] sm:$0xff]  ;;  %v7099_v46 = vld [vmem:[%s8932_s22 + $0x68] sm:$0xff] }
  0x3a   : > { %8123 = vmatprep.subr.mxu0 %v7043_v14  ;;  %8131 = vmatpush3.msra.mxu1 %v7053_v32  ;;  %v7098_v47 = vld [vmem:[%s8932_s22 + $0x60] sm:$0xff]  ;;  %v7117_v48 = vld [vmem:[%s8932_s22 + $0x178] sm:$0xff]  ;;  %v7116_v49 = vld [vmem:[%s8932_s22 + $0x170] sm:$0xff] }
  0x3b   : > { %8124 = vmatpush3.msra.mxu0 %v7043_v14  ;;  %8132 = vmatprep.subr.mxu1 %v7052_v33  ;;  %v7115_v50 = vld [vmem:[%s8932_s22 + $0x168] sm:$0xff]  ;;  %v7114_v51 = vld [vmem:[%s8932_s22 + $0x160] sm:$0xff] }
  0x3c   : > { %8125 = vmatprep.subr.mxu0 %v7042_v15  ;;  %8133 = vmatpush3.msra.mxu1 %v7052_v33  ;;  %v7039_v52 = vld [vmem:[%s9034_s18 + $0x4] ss:$0 sm:$0xff]  ;;  %v7031_v55 = vld [vmem:[%s9034_s18] ss:$0 sm:$0xff]  ;;  %v7047_v61 = vld [vmem:[%s9034_s18 + $0x8] ss:$0 sm:$0xff] }
  0x3d   : > { %8126 = vmatpush3.msra.mxu0 %v7042_v15  ;;  %8134 = vmatprep.subr.mxu1 %v7051_v34  ;;  %v7063_v4 = vld [vmem:[%s9034_s18 + $0x5] ss:$0 sm:$0xff]  ;;  %v7095_v13 = vld [vmem:[%s9034_s18 + $0xa] ss:$0 sm:$0xff] }
  0x3e   : > { %8128 = vmatmul.mubr.msk.f32.vlgmr.msra.gmra.mxu0 %vm556_vm1, %v8942_v11  ;;  %8141 = vmatprep.subr.mxu0 %v7061_v16 }
  0x3f   : > { %8142 = vmatpush3.msra.mxu0 %v7061_v16  ;;  %8149 = vmatprep.mubr.msk.f32.mxu0 %vm556_vm1, %v8921_v2 }
  0x40   : > { %8143 = vmatprep.subr.mxu0 %v7060_v17  ;;  %8135 = vmatpush3.msra.mxu1 %v7051_v34 }
  0x41   : > { %8144 = vmatpush3.msra.mxu0 %v7060_v17  ;;  %8136 = vmatprep.subr.mxu1 %v7050_v35 }
  0x42   : > { %8145 = vmatprep.subr.mxu0 %v7059_v18  ;;  %8137 = vmatpush3.msra.mxu1 %v7050_v35  ;;  %v7071_v35 = vld [vmem:[%s9034_s18 + $0x9] ss:$0 sm:$0xff] }
  0x43   : > { %8146 = vmatpush3.msra.mxu0 %v7059_v18  ;;  %8152 = vmatprep.subr.mxu1 %v7069_v36 }
  0x44   : > { %8147 = vmatprep.subr.mxu0 %v7058_v19  ;;  %8139 = vmatmul.mubr.msk.f32.vlgmr.msra.gmra.mxu1 %vm556_vm1, %v8942_v11 }
  0x45   : > { %8148 = vmatpush3.msra.mxu0 %v7058_v19  ;;  %8153 = vmatpush3.msra.mxu1 %v7069_v36 }
  0x46   : > { %8150 = vmatmul.mubr.msk.f32.vlgmr.msra.gmra.mxu0 %vm556_vm1, %v8942_v11  ;;  %8163 = vmatprep.subr.mxu0 %v7077_v20 }
  0x47   : > { %8164 = vmatpush3.msra.mxu0 %v7077_v20  ;;  %8171 = vmatprep.mubr.msk.f32.mxu0 %vm556_vm1, %v8921_v2 }
  0x48   : > { %8165 = vmatprep.subr.mxu0 %v7076_v21  ;;  %8160 = vmatprep.mubr.msk.f32.mxu1 %vm556_vm1, %v8921_v2 }
  0x49   : > { %8166 = vmatpush3.msra.mxu0 %v7076_v21  ;;  %8154 = vmatprep.subr.mxu1 %v7068_v37 }
  0x4a   : > { %8167 = vmatprep.subr.mxu0 %v7075_v22  ;;  %8155 = vmatpush3.msra.mxu1 %v7068_v37 }
  0x4b   : > { %8168 = vmatpush3.msra.mxu0 %v7075_v22  ;;  %8156 = vmatprep.subr.mxu1 %v7067_v38 }
  0x4c   : > { %8169 = vmatprep.subr.mxu0 %v7074_v23  ;;  %8157 = vmatpush3.msra.mxu1 %v7067_v38 }
  0x4d   : > { %8170 = vmatpush3.msra.mxu0 %v7074_v23  ;;  %8158 = vmatprep.subr.mxu1 %v7066_v39 }
  0x4e   : > { %8172 = vmatmul.mubr.msk.f32.vlgmr.msra.gmra.mxu0 %vm556_vm1, %v8942_v11  ;;  %8185 = vmatprep.subr.mxu0 %v7093_v24 }
  0x4f   : > { %8186 = vmatpush3.msra.mxu0 %v7093_v24  ;;  %8193 = vmatprep.mubr.msk.f32.mxu0 %vm556_vm1, %v8921_v2 }
  0x50   : > { %8187 = vmatprep.subr.mxu0 %v7092_v25  ;;  %8159 = vmatpush3.msra.mxu1 %v7066_v39 }
  0x51   : > { %8188 = vmatpush3.msra.mxu0 %v7092_v25  ;;  %8174 = vmatprep.subr.mxu1 %v7085_v40 }
  0x52   : > { %8189 = vmatprep.subr.mxu0 %v7091_v26  ;;  %8161 = vmatmul.mubr.msk.f32.vlgmr.msra.gmra.mxu1 %vm556_vm1, %v8942_v11 }
  0x53   : > { %8190 = vmatpush3.msra.mxu0 %v7091_v26  ;;  %8175 = vmatpush3.msra.mxu1 %v7085_v40  ;;  %v9070_v40 = vld [vmem:[%s9034_s18 + $0x6] ss:$0 sm:$0xff] }
  0x54   : > { %8191 = vmatprep.subr.mxu0 %v7090_v27  ;;  %8182 = vmatprep.mubr.msk.f32.mxu1 %vm556_vm1, %v8921_v2 }
  0x55   : > { %8192 = vmatpush3.msra.mxu0 %v7090_v27  ;;  %8176 = vmatprep.subr.mxu1 %v7084_v41 }
  0x56   : > { %8194 = vmatmul.mubr.msk.f32.vlgmr.msra.gmra.mxu0 %vm556_vm1, %v8942_v11  ;;  %8207 = vmatprep.subr.mxu0 %v7109_v28 }
  0x57   : > { %8208 = vmatpush3.msra.mxu0 %v7109_v28  ;;  %8215 = vmatprep.mubr.msk.f32.mxu0 %vm556_vm1, %v8921_v2 }
  0x58   : > { %8209 = vmatprep.subr.mxu0 %v7108_v29  ;;  %8177 = vmatpush3.msra.mxu1 %v7084_v41 }
  0x59   : > { %8210 = vmatpush3.msra.mxu0 %v7108_v29  ;;  %8178 = vmatprep.subr.mxu1 %v7083_v42 }
  0x5a   : > { %8211 = vmatprep.subr.mxu0 %v7107_v30  ;;  %8179 = vmatpush3.msra.mxu1 %v7083_v42 }
  0x5b   : > { %8212 = vmatpush3.msra.mxu0 %v7107_v30  ;;  %8180 = vmatprep.subr.mxu1 %v7082_v43 }
  0x5c   : > { %8213 = vmatprep.subr.mxu0 %v7106_v31  ;;  %8181 = vmatpush3.msra.mxu1 %v7082_v43 }
  0x5d   : > { %8214 = vmatpush3.msra.mxu0 %v7106_v31  ;;  %8196 = vmatprep.subr.mxu1 %v7101_v44 }
  0x5e   : > { %8216 = vmatmul.mubr.msk.f32.vlgmr.msra.gmra.mxu0 %vm556_vm1, %v8942_v11  ;;  %8183 = vmatmul.mubr.msk.f32.vlgmr.msra.gmra.mxu1 %vm556_vm1, %v8942_v11 }
  0x5f   : > { %8197 = vmatpush3.msra.mxu1 %v7101_v44  ;;  %8204 = vmatprep.mubr.msk.f32.mxu1 %vm556_vm1, %v8921_v2 }
  0x60   : > { %8198 = vmatprep.subr.mxu1 %v7100_v45 }
  0x61   : > { %8199 = vmatpush3.msra.mxu1 %v7100_v45 }
  0x62   : > { %8200 = vmatprep.subr.mxu1 %v7099_v46 }
  0x63   : > { %8201 = vmatpush3.msra.mxu1 %v7099_v46 }
  0x64   : > { %8202 = vmatprep.subr.mxu1 %v7098_v47 }
  0x65   : > { %8203 = vmatpush3.msra.mxu1 %v7098_v47  ;;  %v7055_v47 = vld [vmem:[%s9034_s18 + $0x1] ss:$0 sm:$0xff] }
  0x66   : > { %8218 = vmatprep.subr.mxu1 %v7117_v48  ;;  %8205 = vmatmul.mubr.msk.f32.vlgmr.msra.gmra.mxu1 %vm556_vm1, %v8942_v11 }
  0x67   : > { %8219 = vmatpush3.msra.mxu1 %v7117_v48  ;;  %8226 = vmatprep.mubr.msk.f32.mxu1 %vm556_vm1, %v8921_v2 }
  0x68   : > { %8220 = vmatprep.subr.mxu1 %v7116_v49 }
  0x69   : > { %8221 = vmatpush3.msra.mxu1 %v7116_v49 }
  0x6a   : > { %8222 = vmatprep.subr.mxu1 %v7115_v50 }
  0x6b   : > { %8223 = vmatpush3.msra.mxu1 %v7115_v50 }
  0x6c   : > { %8224 = vmatprep.subr.mxu1 %v7114_v51 }
  0x6d   : > { %8225 = vmatpush3.msra.mxu1 %v7114_v51  ;;  %v1822_v51 = vld [vmem:[%s9084_s26] sm:$0xff] }
  0x6e   : > { %8227 = vmatmul.mubr.msk.f32.vlgmr.msra.gmra.mxu1 %vm556_vm1, %v8942_v11 }
  0xf5   : > { %v8118_v53 = vpop.f32.mrf.mxu1 }
  0xf6   : > { %v8107_v54 = vpop.f32.mrf.mxu0  ;;  %v725_v56 = vadd.f32 %v8118_v53, %v7039_v52 }
  0xf7   : > { %v719_v57 = vpop.f32.mrf.mxu1  ;;  %v635_v62 = vadd.f32 %v8107_v54, %v7031_v55 }
  0xf8   : > { %v629_v58 = vpop.f32.mrf.mxu0  ;;  %v720_v59 = vadd.f32 %v7039_v52, %v719_v57  ;;  %8229 = vmatprep.subr.msk.mxu0 %vm1628_vm2, %v725_v56 }
  0xf9   : > { %v630_v60 = vadd.f32 %v7031_v55, %v629_v58  ;;  %8230 = vmatpush3.xpose.msk.msra.mxu0 %vm1628_vm2, %v725_v56 }
  0xfa   : > { %8231 = vmatprep.subr.msk.mxu0 %vm1628_vm2, %v720_v59 }
  0xfb   : > { %8233 = vmatprep.mubr.msk.f32.mxu0 %vm1628_vm2, %v630_v60 }
  0xfd   : > { %8232 = vmatpush3.xpose.msk.msra.mxu0 %vm1628_vm2, %v720_v59 }
  0xfe   : > { %v8129_v63 = vpop.f32.mrf.mxu0 }
  0xff   : > { %v815_v0 = vadd.f32 %v8129_v63, %v7047_v61 }
 0x100   : > { %8234 = vmatmul.mubr.msk.f32.vlgmr.msra.gmra.mxu0 %vm1628_vm2, %v635_v62  ;;  %v809_v1 = vpop.f32.mrf.mxu0 }
 0x101   : > { %v810_v3 = vadd.f32 %v7047_v61, %v809_v1  ;;  %8236 = vmatprep.subr.mxu1 %v815_v0 }
 0x102   : > { %8237 = vmatpush3.msra.mxu1 %v815_v0 }
 0x103   : > { %8238 = vmatprep.subr.mxu1 %v810_v3 }
 0x104   : > { %8239 = vmatpush3.msra.mxu1 %v810_v3  ;;  %v8140_v32 = vpop.f32.mrf.mxu1 }
 0x105   : > { %v905_v52 = vadd.f32 %v8140_v32, %v7055_v47 }
 0x106   : > { %v8151_v5 = vpop.f32.mrf.mxu0  ;;  %v899_v33 = vpop.f32.mrf.mxu1 }
 0x107   : > { %v995_v6 = vadd.f32 %v8151_v5, %v7063_v4  ;;  %v900_v49 = vadd.f32 %v7055_v47, %v899_v33 }
 0x108   : > { %v989_v7 = vpop.f32.mrf.mxu0 }
 0x109   : > { %v9046_v8 = vadd.f32 %v7063_v4, %v989_v7  ;;  %8243 = vmatprep.subr.msk.mxu1 %vm1628_vm2, %v995_v6 }
 0x10e   : > { %v9049_v9 = vpop.f32.mrf.mxu0 }
 0x110   : > { %v9051_v10 = vpop.f32.mrf.mxu0 }
 0x112   : > { %v8162_v34 = vpop.f32.mrf.mxu1 }
 0x113   : > { %v1085_v36 = vadd.f32 %v8162_v34, %v7071_v35 }
 0x114   : > { %v1079_v37 = vpop.f32.mrf.mxu1 }
 0x115   : > { %v1080_v38 = vadd.f32 %v7071_v35, %v1079_v37  ;;  %8250 = vmatprep.subr.mxu0 %v1085_v36 }
 0x116   : > { %v9053_v12 = vpop.f32.mrf.mxu0  ;;  %8251 = vmatpush3.msra.mxu0 %v1085_v36 }
 0x117   : > { %8252 = vmatprep.subr.mxu0 %v1080_v38  ;;  %v1355_v53 = vadd.f32 %v9053_v12, %v7095_v13 }
 0x118   : > { %v1349_v14 = vpop.f32.mrf.mxu0  ;;  %8253 = vmatpush3.msra.mxu0 %v1080_v38 }
 0x119   : > { %v9056_v15 = vadd.f32 %v7095_v13, %v1349_v14  ;;  %v7136_v14 = vld [vmem:[%s9084_s26 + $0x8] sm:$0xff] }
 0x11a   : > { %8257 = vmatprep.subr.mxu0 %v7136_v14 }
 0x11e   : > { %v9058_v16 = vpop.f32.mrf.mxu0  ;;  %v9067_v39 = vpop.f32.mrf.mxu1 }
 0x120   : > { %v9060_v17 = vpop.f32.mrf.mxu0  ;;  %v1259_v41 = vpop.f32.mrf.mxu1 }
 0x121   : > { %v9073_v42 = vadd.f32 %v9070_v40, %v1259_v41 }
 0x126   : > { %v9095_v54 = vpop.f32.mrf.mxu1 }
 0x128   : > { %v1439_v55 = vpop.f32.mrf.mxu1 }
 0x12e   : > { %v9097_v56 = vpop.f32.mrf.mxu1 }
 0x130   : > { %v9099_v57 = vpop.f32.mrf.mxu1 }
 0x1c0   : > { %v8235_v18 = vpop.f32.mrf.mxu0 }
 0x1c1   : > { %v1720_v21 = vsel %vm1716_vm3, %v8235_v18, -inf }
 0x1c2   : > { %v1707_v19 = vpop.f32.mrf.mxu0 }
 0x1c3   : > { %v1717_v20 = vsel %vm1716_vm3, %v1707_v19, -inf }
 0x1c4   : > { %1718 = vmax.xlane.f32.xlu0 %v1717_v20 }
 0x1c8   : > { %1721 = vmax.xlane.f32.xlu0 %v1720_v21 }
 0x24d   : > { %v1719_v22 = vpop.xlane.xlu0 %1718 }
 0x24e   : > { %v1723_v23 = vsub.f32 %v1707_v19, %v1719_v22 }
 0x250   : > { %v1725_v24 = vmul.f32 1.442695, %v1723_v23  ;;  %v1265_v23 = vadd.f32 %v9067_v39, %v9070_v40 }
 0x251   : > { %v1722_v25 = vpop.xlane.xlu0 %1721 }
 0x252   : > { %8572 = vpow2.f32 %v1725_v24  ;;  %v1724_v26 = vsub.f32 %v8235_v18, %v1722_v25  ;;  %v7079_v24 = vld [vmem:[%s9034_s18 + $0x2] ss:$0 sm:$0xff] }
 0x254   : > { %v1727_v27 = vmul.f32 1.442695, %v1724_v26 }
 0x256   : > { %8574 = vpow2.f32 %v1727_v27  ;;  %v1170_v27 = vadd.f32 %v7079_v24, %v9051_v10  ;;  %v1175_v10 = vadd.f32 %v9049_v9, %v7079_v24  ;;  %v7158_v24 = vld [vmem:[%s9084_s26 + $0x18] sm:$0xff] }
 0x25f   : > { %v8573_v28 = vpop.eup %8572 }
 0x260   : > { %v1729_v29 = vsel %vm1716_vm3, %v8573_v28, 0.0 }
 0x261   : > { %1730 = vadd.xlane.f32.xlu1 %v1729_v29 }
 0x263   : > { %v8575_v30 = vpop.eup %8574 }
 0x264   : > { %v1732_v31 = vsel %vm1716_vm3, %v8575_v30, 0.0 }
 0x265   : > { %1733 = vadd.xlane.f32.xlu1 %v1732_v31 }
 0x2ea   : > { %v1731_v43 = vpop.xlane.xlu1 %1730 }
 0x2eb   : > { %8576 = vrcp.f32 %v1731_v43 }
 0x2ee   : > { %v1734_v44 = vpop.xlane.xlu1 %1733 }
 0x2ef   : > { %8578 = vrcp.f32 %v1734_v44 }
 0x2f8   : > { %v8577_v45 = vpop.eup %8576 }
 0x2f9   : > { %v1737_v46 = vmul.f32 %v8577_v45, %v8573_v28  ;;  %v7111_v28 = vld [vmem:[%s9034_s18 + $0x7] ss:$0 sm:$0xff] }
 0x2fa   : > { %v1535_v29 = vadd.f32 %v9058_v16, %v7111_v28  ;;  %v1530_v32 = vadd.f32 %v7111_v28, %v9060_v17 }
 0x2fb   : > { %8240 = vmatprep.mubr.msk.f32.mxu1 %vm1716_vm3, %v1737_v46 }
 0x2fc   : > { %v8579_v48 = vpop.eup %8578 }
 0x2fd   : > { %v1738_v50 = vmul.f32 %v8579_v48, %v8575_v30  ;;  %v7103_v30 = vld [vmem:[%s9034_s18 + $0x3] ss:$0 sm:$0xff] }
 0x2fe   : > { %v1440_v31 = vadd.f32 %v7103_v30, %v1439_v55  ;;  %v1445_v16 = vadd.f32 %v9095_v54, %v7103_v30 }
 0x2ff   : > { %8241 = vmatmul.mubr.msk.f32.vlgmr.msra.gmra.mxu1 %vm1716_vm3, %v1738_v50 }
 0x300   : > { %8244 = vmatpush3.xpose.msk.msra.mxu1 %vm1628_vm2, %v995_v6  ;;  %8247 = vmatprep.mubr.msk.f32.mxu1 %vm1628_vm2, %v900_v49 }
 0x301   : > { %8245 = vmatprep.subr.msk.mxu1 %vm1628_vm2, %v9046_v8 }
 0x304   : > { %8246 = vmatpush3.xpose.msk.msra.mxu1 %vm1628_vm2, %v9046_v8 }
 0x305   : > { %8262 = vmatprep.subr.mxu1 %v1822_v51 }
 0x307   : > { %8248 = vmatmul.mubr.msk.f32.vlgmr.msra.gmra.mxu1 %vm1628_vm2, %v905_v52 }
 0x308   : > { %8263 = vmatpush3.msra.mxu1 %v1822_v51  ;;  %v7148_v51 = vld [vmem:[%s9084_s26 + $0x10] sm:$0xff]  ;;  %s9390_s26 = scalar_lea.vmem %s10003_s8, %s7128_s20 }
 0x309   : > { %8274 = vmatprep.subr.mxu1 %v1355_v53 }
 0x3bf   : > { %v8242_v58 = vpop.f32.mrf.mxu1 }
 0x3c1   : > { %v1811_v59 = vpop.f32.mrf.mxu1 }
 0x3c2   : > { %8264 = vmatprep.mubr.msk.f32.mxu1 %vm1628_vm2, %v1811_v59 }
 0x3c3   : > { %8265 = vmatmul.mubr.msk.f32.vlgmr.msra.gmra.mxu1 %vm1628_vm2, %v8242_v58 }
 0x3c4   : > { %8275 = vmatpush3.msra.mxu1 %v1355_v53 }
 0x3c5   : > { %8276 = vmatprep.subr.mxu1 %v9056_v15 }
 0x3c6   : > { %8277 = vmatpush3.msra.mxu1 %v9056_v15 }
 0x3c7   : > { %v8249_v60 = vpop.f32.mrf.mxu1  ;;  %8281 = vmatprep.subr.mxu1 %v7148_v51 }
 0x3c8   : > { %v1913_v61 = vsel %vm1716_vm3, %v8249_v60, -inf }
 0x3c9   : > { %1914 = vmax.xlane.f32.xlu1 %v1913_v61  ;;  %v1901_v62 = vpop.f32.mrf.mxu1 }
 0x3ca   : > { %v1910_v63 = vsel %vm1716_vm3, %v1901_v62, -inf }
 0x3cb   : > { %1911 = vmax.xlane.f32.xlu0 %v1910_v63 }
 0x452   : > { %v1915_v0 = vpop.xlane.xlu1 %1914 }
 0x453   : > { %v1917_v1 = vsub.f32 %v8249_v60, %v1915_v0  ;;  %v7119_v0 = vld [vmem:[%s9034_s18 + $0xb] ss:$0 sm:$0xff] }
 0x454   : > { %v1912_v3 = vpop.xlane.xlu0 %1911 }
 0x455   : > { %v1920_v4 = vmul.f32 1.442695, %v1917_v1  ;;  %v1916_v5 = vsub.f32 %v1901_v62, %v1912_v3 }
 0x457   : > { %8580 = vpow2.f32 %v1920_v4  ;;  %v1918_v6 = vmul.f32 1.442695, %v1916_v5  ;;  %v1625_v4 = vadd.f32 %v9097_v56, %v7119_v0 }
 0x459   : > { %8582 = vpow2.f32 %v1918_v6 }
 0x464   : > { %v8581_v7 = vpop.eup %8580 }
 0x465   : > { %v1925_v8 = vsel %vm1716_vm3, %v8581_v7, 0.0 }
 0x466   : > { %v8583_v12 = vpop.eup %8582  ;;  %1926 = vadd.xlane.f32.xlu1 %v1925_v8 }
 0x467   : > { %v1922_v13 = vsel %vm1716_vm3, %v8583_v12, 0.0 }
 0x468   : > { %1923 = vadd.xlane.f32.xlu0 %v1922_v13 }
 0x4ef   : > { %v1927_v15 = vpop.xlane.xlu1 %1926 }
 0x4f0   : > { %8584 = vrcp.f32 %v1927_v15 }
 0x4f1   : > { %v1924_v18 = vpop.xlane.xlu0 %1923 }
 0x4f2   : > { %8586 = vrcp.f32 %v1924_v18 }
 0x4fd   : > { %v8585_v19 = vpop.eup %8584 }
 0x4fe   : > { %v1931_v22 = vmul.f32 %v8585_v19, %v8581_v7 }
 0x4ff   : > { %v8587_v20 = vpop.eup %8586 }
 0x500   : > { %v1930_v21 = vmul.f32 %v8587_v20, %v8583_v12 }
 0x502   : > { %8254 = vmatprep.mubr.msk.f32.mxu0 %vm1716_vm3, %v1930_v21 }
 0x503   : > { %8255 = vmatmul.mubr.msk.f32.vlgmr.msra.gmra.mxu0 %vm1716_vm3, %v1931_v22  ;;  %v1620_v22 = vadd.f32 %v7119_v0, %v9099_v57 }
 0x504   : > { %8258 = vmatpush3.msra.mxu0 %v7136_v14  ;;  %v8266_v14 = vpop.f32.mrf.mxu1 }
 0x505   : > { %8267 = vmatprep.subr.msk.mxu0 %vm1628_vm2, %v1265_v23 }
 0x506   : > { %v2169_v15 = vpop.f32.mrf.mxu1 }
 0x5c3   : > { %v8256_v25 = vpop.f32.mrf.mxu0 }
 0x5c5   : > { %v2004_v26 = vpop.f32.mrf.mxu0 }
 0x5c6   : > { %8259 = vmatprep.mubr.msk.f32.mxu0 %vm1628_vm2, %v2004_v26 }
 0x5c7   : > { %8260 = vmatmul.mubr.msk.f32.vlgmr.msra.gmra.mxu0 %vm1628_vm2, %v8256_v25 }
 0x5c8   : > { %8268 = vmatpush3.xpose.msk.msra.mxu0 %vm1628_vm2, %v1265_v23  ;;  %8271 = vmatprep.mubr.msk.f32.mxu0 %vm1628_vm2, %v1170_v27 }
 0x5c9   : > { %8269 = vmatprep.subr.msk.mxu0 %vm1628_vm2, %v9073_v42 }
 0x5cc   : > { %8270 = vmatpush3.xpose.msk.msra.mxu0 %vm1628_vm2, %v9073_v42 }
 0x5cd   : > { %8286 = vmatprep.subr.msk.mxu0 %vm1628_vm2, %v1535_v29 }
 0x5cf   : > { %8272 = vmatmul.mubr.msk.f32.vlgmr.msra.gmra.mxu0 %vm1628_vm2, %v1175_v10 }
 0x5d0   : > { %8287 = vmatpush3.xpose.msk.msra.mxu0 %vm1628_vm2, %v1535_v29  ;;  %8290 = vmatprep.mubr.msk.f32.mxu0 %vm1628_vm2, %v1440_v31 }
 0x5d1   : > { %8288 = vmatprep.subr.msk.mxu0 %vm1628_vm2, %v1530_v32 }
 0x5d4   : > { %8289 = vmatpush3.xpose.msk.msra.mxu0 %vm1628_vm2, %v1530_v32  ;;  %v7161_v32 = vld [vmem:[%s2730_s28] ss:$0 sm:$0xff]  ;;  %s4899_s28 = scalar_lea.vmem %s10004_s9, %s8724_s24 }
 0x5d7   : > { %8291 = vmatmul.mubr.msk.f32.vlgmr.msra.gmra.mxu0 %vm1628_vm2, %v1445_v16 }
 0x687   : > { %v9138_v9 = vpop.f32.mrf.mxu0 }
 0x688   : > { %v2175_v25 = vadd.f32 %v8266_v14, %v9138_v9 }
 0x689   : > { %v9140_v33 = vpop.f32.mrf.mxu0 }
 0x68a   : > { %v2170_v27 = vadd.f32 %v2169_v15, %v9140_v33 }
 0x68f   : > { %v8273_v34 = vpop.f32.mrf.mxu0 }
 0x690   : > { %v2268_v17 = vsel %vm1716_vm3, %v8273_v34, -inf }
 0x691   : > { %2269 = vmax.xlane.f32.xlu1 %v2268_v17  ;;  %v2256_v35 = vpop.f32.mrf.mxu0 }
 0x692   : > { %v2265_v36 = vsel %vm1716_vm3, %v2256_v35, -inf }
 0x693   : > { %2266 = vmax.xlane.f32.xlu0 %v2265_v36 }
 0x697   : > { %v8292_v44 = vpop.f32.mrf.mxu0 }
 0x698   : > { %v2544_v49 = vsel %vm1716_vm3, %v8292_v44, -inf }
 0x699   : > { %v2532_v48 = vpop.f32.mrf.mxu0 }
 0x69a   : > { %v2541_v50 = vsel %vm1716_vm3, %v2532_v48, -inf }
 0x71a   : > { %v2270_v37 = vpop.xlane.xlu1 %2269 }
 0x71b   : > { %v2272_v38 = vsub.f32 %v8273_v34, %v2270_v37 }
 0x71c   : > { %v2267_v39 = vpop.xlane.xlu0 %2266 }
 0x71d   : > { %v2275_v40 = vmul.f32 1.442695, %v2272_v38  ;;  %v2271_v41 = vsub.f32 %v2256_v35, %v2267_v39 }
 0x71f   : > { %8588 = vpow2.f32 %v2275_v40  ;;  %v2273_v42 = vmul.f32 1.442695, %v2271_v41 }
 0x721   : > { %8590 = vpow2.f32 %v2273_v42 }
 0x72c   : > { %v8589_v43 = vpop.eup %8588 }
 0x72d   : > { %v2280_v45 = vsel %vm1716_vm3, %v8589_v43, 0.0 }
 0x72e   : > { %v8591_v46 = vpop.eup %8590  ;;  %2281 = vadd.xlane.f32.xlu1 %v2280_v45 }
 0x72f   : > { %v2277_v47 = vsel %vm1716_vm3, %v8591_v46, 0.0 }
 0x730   : > { %2278 = vadd.xlane.f32.xlu0 %v2277_v47  ;;  %v8742_v47 = vmov 0.0  }
 0x732   : > { %2545 = vmax.xlane.f32.xlu1 %v2544_v49  ;;  %v7169_v49 = vld [vmem:[%s9188_s21 + $0x90] sm:$0xff] }
 0x734   : > { %2542 = vmax.xlane.f32.xlu0 %v2541_v50  ;;  %v7168_v50 = vld [vmem:[%s9188_s21 + $0x88] sm:$0xff] }
 0x7b7   : > { %v2282_v52 = vpop.xlane.xlu1 %2281 }
 0x7b8   : > { %8592 = vrcp.f32 %v2282_v52  ;;  %v2794_v52 = vld [vmem:[%s9188_s21 + $0x18] sm:$0xff] }
 0x7b9   : > { %v2279_v53 = vpop.xlane.xlu0 %2278  ;;  %8305 = vmatprep.subr.mxu0 %v2794_v52 }
 0x7ba   : > { %8594 = vrcp.f32 %v2279_v53  ;;  %v7184_v53 = vld [vmem:[%s9188_s21 + $0x38] sm:$0xff]  ;;  %8306 = vmatpush3.msra.mxu0 %v2794_v52  ;;  %v7241_v52 = vld [vmem:[%s9188_s21 + $0x168] sm:$0xff] }
 0x7bb   : > { %v2546_v54 = vpop.xlane.xlu1 %2545 }
 0x7bc   : > { %v2548_v55 = vsub.f32 %v8292_v44, %v2546_v54  ;;  %v9203_v54 = vld [vmem:[%s8909_s19] sm:$0xff]  ;;  %s2742_s19 = smul.u32 3, %s8724_s24 }
 0x7bd   : > { %v2543_v58 = vpop.xlane.xlu0 %2542 }
 0x7be   : > { %v2551_v59 = vmul.f32 1.442695, %v2548_v55  ;;  %v2547_v60 = vsub.f32 %v2532_v48, %v2543_v58  ;;  %v7170_v48 = vld [vmem:[%s9188_s21 + $0x98] sm:$0xff]  ;;  %v2793_v55 = vld [vmem:[%s9188_s21 + $0x10] sm:$0xff]  ;;  %s9219_s22 = scalar_lea.vmem %s10009_s14, %s2742_s19  ;;  %s9226_s18 = scalar_lea.vmem %s10010_s15, %s2742_s19 }
 0x7bf   : > { %v7183_v58 = vld [vmem:[%s9188_s21 + $0x30] sm:$0xff]  ;;  %8307 = vmatprep.subr.mxu0 %v2793_v55  ;;  %v7163_v15 = vld [vmem:[%s9226_s18] ss:$0 sm:$0xff] }
 0x7c0   : > { %8596 = vpow2.f32 %v2551_v59  ;;  %v2549_v61 = vmul.f32 1.442695, %v2547_v60  ;;  %v2792_v59 = vld [vmem:[%s9188_s21 + $0x8] sm:$0xff]  ;;  %8308 = vmatpush3.msra.mxu0 %v2793_v55 }
 0x7c1   : > { %v7182_v60 = vld [vmem:[%s9188_s21 + $0x28] sm:$0xff]  ;;  %8309 = vmatprep.subr.mxu0 %v2792_v59 }
 0x7c2   : > { %8598 = vpow2.f32 %v2549_v61  ;;  %v2791_v61 = vld [vmem:[%s9188_s21] sm:$0xff]  ;;  %8310 = vmatpush3.msra.mxu0 %v2792_v59 }
 0x7c3   : > { %8311 = vmatprep.subr.mxu0 %v2791_v61  ;;  %v7164_v59 = vld [vmem:[%s9333_s16] ss:$0 sm:$0xff] }
 0x7c4   : > { %8312 = vmatpush3.msra.mxu0 %v2791_v61 }
 0x7c5   : > { %v8593_v62 = vpop.eup %8592  ;;  %8327 = vmatprep.subr.mxu0 %v8742_v47 }
 0x7c6   : > { %v2286_v3 = vmul.f32 %v8593_v62, %v8589_v43  ;;  %v7181_v62 = vld [vmem:[%s9188_s21 + $0x20] sm:$0xff] }
 0x7c7   : > { %v8595_v63 = vpop.eup %8594 }
 0x7c8   : > { %v2285_v1 = vmul.f32 %v8595_v63, %v8591_v46 }
 0x7ca   : > { %8278 = vmatprep.mubr.msk.f32.mxu1 %vm1716_vm3, %v2285_v1 }
 0x7cb   : > { %8279 = vmatmul.mubr.msk.f32.vlgmr.msra.gmra.mxu1 %vm1716_vm3, %v2286_v3 }
 0x7cc   : > { %8282 = vmatpush3.msra.mxu1 %v7148_v51  ;;  %v7167_v51 = vld [vmem:[%s9188_s21 + $0x80] sm:$0xff] }
 0x7cd   : > { %v8597_v5 = vpop.eup %8596  ;;  %8293 = vmatprep.subr.mxu1 %v1625_v4 }
 0x7ce   : > { %v2556_v6 = vsel %vm1716_vm3, %v8597_v5, 0.0 }
 0x7cf   : > { %v8599_v7 = vpop.eup %8598  ;;  %2557 = vadd.xlane.f32.xlu1 %v2556_v6 }
 0x7d0   : > { %v2553_v8 = vsel %vm1716_vm3, %v8599_v7, 0.0 }
 0x7d1   : > { %2554 = vadd.xlane.f32.xlu0 %v2553_v8  ;;  %v7162_v8 = vld [vmem:[%s9219_s22] ss:$0 sm:$0xff] }
 0x858   : > { %v2558_v13 = vpop.xlane.xlu1 %2557 }
 0x85a   : > { %v2555_v12 = vpop.xlane.xlu0 %2554 }
 0x85b   : > { %8600 = vrcp.f32 %v2555_v12 }
 0x85c   : > { %8602 = vrcp.f32 %v2558_v13 }
 0x868   : > { %v8601_v56 = vpop.eup %8600 }
 0x869   : > { %v8603_v20 = vpop.eup %8602  ;;  %v2561_v21 = vmul.f32 %v8601_v56, %v8599_v7 }
 0x86a   : > { %v2562_v23 = vmul.f32 %v8603_v20, %v8597_v5  ;;  %v7177_v20 = vld [vmem:[%s9188_s21 + $0x118] sm:$0xff] }
 0x88b   : > { %v8280_v18 = vpop.f32.mrf.mxu1 }
 0x88d   : > { %v2359_v19 = vpop.f32.mrf.mxu1 }
 0x88e   : > { %8283 = vmatprep.mubr.msk.f32.mxu1 %vm1628_vm2, %v2359_v19 }
 0x88f   : > { %8284 = vmatmul.mubr.msk.f32.vlgmr.msra.gmra.mxu1 %vm1628_vm2, %v8280_v18 }
 0x890   : > { %8294 = vmatpush3.msra.mxu1 %v1625_v4  ;;  %8297 = vmatprep.mubr.msk.f32.mxu1 %vm1716_vm3, %v2561_v21  ;;  %v7199_v21 = vld [vmem:[%s9188_s21 + $0x138] sm:$0xff] }
 0x891   : > { %8295 = vmatprep.subr.mxu1 %v1620_v22 }
 0x892   : > { %8296 = vmatpush3.msra.mxu1 %v1620_v22  ;;  %v7176_v22 = vld [vmem:[%s9188_s21 + $0x110] sm:$0xff] }
 0x893   : > { %8298 = vmatmul.mubr.msk.f32.vlgmr.msra.gmra.mxu1 %vm1716_vm3, %v2562_v23  ;;  %8300 = vmatprep.subr.mxu1 %v7158_v24  ;;  %v7198_v23 = vld [vmem:[%s9188_s21 + $0x130] sm:$0xff] }
 0x894   : > { %8301 = vmatpush3.msra.mxu1 %v7158_v24  ;;  %v7175_v24 = vld [vmem:[%s9188_s21 + $0x108] sm:$0xff] }
 0x895   : > { %8316 = vmatprep.subr.mxu1 %v8742_v47 }
 0x94f   : > { %v8285_v26 = vpop.f32.mrf.mxu1 }
 0x950   : > { %v2453_v57 = vadd.f32 %v8285_v26, %v2175_v25  ;;  %v7197_v25 = vld [vmem:[%s9188_s21 + $0x128] sm:$0xff]  ;;  %v7174_v26 = vld [vmem:[%s9188_s21 + $0x100] sm:$0xff] }
 0x951   : > { %v2443_v28 = vpop.f32.mrf.mxu1 }
 0x952   : > { %v2452_v29 = vadd.f32 %v2443_v28, %v2170_v27  ;;  %v7196_v27 = vld [vmem:[%s9188_s21 + $0x120] sm:$0xff]  ;;  %v7214_v28 = vld [vmem:[%s9188_s21 + $0xd8] sm:$0xff] }
 0x953   : > { %v8299_v30 = vpop.f32.mrf.mxu1 }
 0x955   : > { %v2635_v10 = vpop.f32.mrf.mxu1 }
 0x956   : > { %8302 = vmatprep.mubr.msk.f32.mxu1 %vm1628_vm2, %v2635_v10  ;;  %v7190_v10 = vld [vmem:[%s9188_s21 + $0xa8] sm:$0xff] }
 0x957   : > { %8303 = vmatmul.mubr.msk.f32.vlgmr.msra.gmra.mxu1 %vm1628_vm2, %v8299_v30  ;;  %v7213_v30 = vld [vmem:[%s9188_s21 + $0xd0] sm:$0xff] }
 0x958   : > { %8317 = vmatpush3.msra.mxu1 %v7170_v48  ;;  %8324 = vmatprep.mubr.msk.f32.mxu1 %vm8743_vm4, %v8742_v47 }
 0x959   : > { %8318 = vmatprep.subr.mxu1 %v8742_v47 }
 0x95a   : > { %8319 = vmatpush3.msra.mxu1 %v7169_v49  ;;  %v7233_v49 = vld [vmem:[%s9188_s21 + $0xe0] sm:$0xff] }
 0x95b   : > { %8320 = vmatprep.subr.mxu1 %v8742_v47 }
 0x95c   : > { %8321 = vmatpush3.msra.mxu1 %v7168_v50  ;;  %v7243_v50 = vld [vmem:[%s9188_s21 + $0x178] sm:$0xff] }
 0x95d   : > { %8322 = vmatprep.subr.mxu1 %v8742_v47 }
 0x95e   : > { %8323 = vmatpush3.msra.mxu1 %v7167_v51  ;;  %v7242_v51 = vld [vmem:[%s9188_s21 + $0x170] sm:$0xff] }
 0x95f   : > { %8338 = vmatprep.subr.mxu1 %v7184_v53  ;;  %8325 = vmatmul.mubr.msk.f32.vlgmr.msra.gmra.mxu1 %vm556_vm1, %v9203_v54 }
 0x960   : > { %8339 = vmatpush3.msra.mxu1 %v7184_v53  ;;  %v7240_v53 = vld [vmem:[%s9188_s21 + $0x160] sm:$0xff] }
 0x961   : > { %8340 = vmatprep.subr.mxu1 %v7183_v58 }
 0x962   : > { %8341 = vmatpush3.msra.mxu1 %v7183_v58 }
 0x963   : > { %8342 = vmatprep.subr.mxu1 %v7182_v60 }
 0x964   : > { %8343 = vmatpush3.msra.mxu1 %v7182_v60 }
 0x965   : > { %8344 = vmatprep.subr.mxu1 %v7181_v62 }
 0x966   : > { %8345 = vmatpush3.msra.mxu1 %v7181_v62 }
 0x967   : > { %8360 = vmatprep.subr.mxu1 %v8742_v47 }
 0xa17   : > { %v8304_v31 = vpop.f32.mrf.mxu1 }
 0xa18   : > { %v2729_v16 = vadd.f32 %v8304_v31, %v2453_v57  ;;  %v7192_v57 = vld [vmem:[%s9188_s21 + $0xb8] sm:$0xff]  ;;  %v7212_v31 = vld [vmem:[%s9188_s21 + $0xc8] sm:$0xff] }
 0xa19   : > { %v2719_v9 = vpop.f32.mrf.mxu1 }
 0xa1a   : > { %v2739_v34 = vadd.f32 %v7161_v32, %v2729_v16  ;;  %v2728_v17 = vadd.f32 %v2719_v9, %v2452_v29  ;;  %v7191_v29 = vld [vmem:[%s9188_s21 + $0xb0] sm:$0xff]  ;;  %v7211_v16 = vld [vmem:[%s9188_s21 + $0xc0] sm:$0xff]  ;;  %v7206_v9 = vld [vmem:[%s9188_s21 + $0x58] sm:$0xff] }
 0xa1c   : > { %v2738_v33 = vadd.f32 %v7161_v32, %v2728_v17  ;;  %v2741_v35 = vadd.f32 %v2739_v34, %v8942_v11  ;;  %v7189_v32 = vld [vmem:[%s9188_s21 + $0xa0] sm:$0xff]  ;;  %v7228_v34 = vld [vmem:[%s9188_s21 + $0x78] sm:$0xff]  ;;  %v7205_v17 = vld [vmem:[%s9188_s21 + $0x50] sm:$0xff] }
 0xa1e   : > { %v2750_v36 = vsel %vm556_vm1, %v2741_v35, 0.0  ;;  %v2740_v37 = vadd.f32 %v2738_v33, %v8921_v2  ;;  %v7227_v33 = vld [vmem:[%s9188_s21 + $0x70] sm:$0xff] }
 0xa1f   : > { %2751 = vadd.xlane.f32.xlu1 %v2750_v36  ;;  %v7226_v36 = vld [vmem:[%s9188_s21 + $0x68] sm:$0xff] }
 0xa20   : > { %v2747_v38 = vsel %vm556_vm1, %v2740_v37, 0.0 }
 0xa21   : > { %2748 = vadd.xlane.f32.xlu0 %v2747_v38  ;;  %v7225_v38 = vld [vmem:[%s9188_s21 + $0x60] sm:$0xff] }
 0xaa8   : > { %v2752_v39 = vpop.xlane.xlu1 %2751 }
 0xaa9   : > { %v2755_v40 = vmul.f32 0.03125, %v2752_v39  ;;  %v7221_v39 = vld [vmem:[%s9188_s21 + $0x158] sm:$0xff] }
 0xaaa   : > { %v2749_v41 = vpop.xlane.xlu0 %2748 }
 0xaab   : > { %v9173_v42 = vsub.f32 %v2741_v35, %v2755_v40  ;;  %v2754_v43 = vmul.f32 0.03125, %v2749_v41  ;;  %v7204_v35 = vld [vmem:[%s9188_s21 + $0x48] sm:$0xff]  ;;  %v7220_v40 = vld [vmem:[%s9188_s21 + $0x150] sm:$0xff] }
 0xaac   : > { %v7219_v41 = vld [vmem:[%s9188_s21 + $0x148] sm:$0xff] }
 0xaad   : > { %v9175_v44 = vsub.f32 %v2740_v37, %v2754_v43  ;;  %v2759_v11 = vmul.f32 %v9173_v42, %v9173_v42  ;;  %v7203_v37 = vld [vmem:[%s9188_s21 + $0x40] sm:$0xff]  ;;  %v7236_v43 = vld [vmem:[%s9188_s21 + $0xf8] sm:$0xff] }
 0xaaf   : > { %v2763_v45 = vsel %vm556_vm1, %v2759_v11, 0.0  ;;  %v2758_v2 = vmul.f32 %v9175_v44, %v9175_v44  ;;  %v7234_v11 = vld [vmem:[%s9188_s21 + $0xe8] sm:$0xff] }
 0xab0   : > { %2764 = vadd.xlane.f32.xlu1 %v2763_v45  ;;  %v2966_v45 = vpop.f32.mrf.mxu1 }
 0xab1   : > { %v2760_v46 = vsel %vm556_vm1, %v2758_v2, 0.0  ;;  %v7172_v2 = vld [vmem:[%s9333_s16 + $0x4] ss:$0 sm:$0xff] }
 0xab2   : > { %2761 = vadd.xlane.f32.xlu0 %v2760_v46  ;;  %v8326_v46 = vpop.f32.mrf.mxu1  ;;  %v2967_v48 = vadd.f32 %v7172_v2, %v2966_v45 }
 0xb39   : > { %v2765_v63 = vpop.xlane.xlu1 %2764 }
 0xb3a   : > { %v2767_v0 = vmul.f32 0.03125, %v2765_v63 }
 0xb3b   : > { %v2762_v1 = vpop.xlane.xlu0 %2761 }
 0xb3c   : > { %v2769_v3 = vadd.f32 1e-05, %v2767_v0  ;;  %v2766_v4 = vmul.f32 0.03125, %v2762_v1  ;;  %v7186_v0 = vld [vmem:[%s9333_s16 + $0x1] ss:$0 sm:$0xff] }
 0xb3e   : > { %8604 = vrsqrt.f32 %v2769_v3  ;;  %v2768_v5 = vadd.f32 1e-05, %v2766_v4  ;;  %v7179_v3 = vld [vmem:[%s9333_s16 + $0x8] ss:$0 sm:$0xff] }
 0xb40   : > { %8606 = vrsqrt.f32 %v2768_v5  ;;  %v7201_v5 = vld [vmem:[%s9333_s16 + $0x9] ss:$0 sm:$0xff] }
 0xb4b   : > { %v8605_v6 = vpop.eup %8604 }
 0xb4c   : > { %v2773_v7 = vmul.f32 %v8605_v6, %v9173_v42  ;;  %v7218_v42 = vld [vmem:[%s9188_s21 + $0x140] sm:$0xff] }
 0xb4d   : > { %v8607_v12 = vpop.eup %8606 }
 0xb4e   : > { %v2772_v13 = vmul.f32 %v8607_v12, %v9175_v44  ;;  %v2781_v14 = vmul.f32 %v7162_v8, %v2773_v7  ;;  %v7235_v44 = vld [vmem:[%s9188_s21 + $0xf0] sm:$0xff]  ;;  %s7293_s21 = sshll.u32 %s8724_s24, 11 }
 0xb4f   : > { %s9516_s27 = scalar_lea.vmem %s10007_s12, %s7293_s21 }
 0xb50   : > { %v2780_v56 = vmul.f32 %v7162_v8, %v2772_v13  ;;  %v9232_v19 = vadd.f32 %v7163_v15, %v2781_v14  ;;  %v7194_v13 = vld [vmem:[%s9333_s16 + $0x5] ss:$0 sm:$0xff] }
 0xb52   : > { %v9230_v18 = vadd.f32 %v7163_v15, %v2780_v56 }
 0xb54   : > { %8313 = vmatprep.mubr.msk.f32.mxu0 %vm556_vm1, %v9230_v18  ;;  %8346 = vmatprep.mubr.msk.f32.mxu1 %vm556_vm1, %v9230_v18 }
 0xb55   : > { %8314 = vmatmul.mubr.msk.f32.vlgmr.msra.gmra.mxu0 %vm556_vm1, %v9232_v19  ;;  %8347 = vmatmul.mubr.msk.f32.vlgmr.msra.gmra.mxu1 %vm556_vm1, %v9232_v19 }
 0xb56   : > { %8328 = vmatpush3.msra.mxu0 %v7177_v20  ;;  %8361 = vmatpush3.msra.mxu1 %v7199_v21 }
 0xb57   : > { %8329 = vmatprep.subr.mxu0 %v8742_v47  ;;  %8362 = vmatprep.subr.mxu1 %v8742_v47 }
 0xb58   : > { %8330 = vmatpush3.msra.mxu0 %v7176_v22  ;;  %8363 = vmatpush3.msra.mxu1 %v7198_v23 }
 0xb59   : > { %8331 = vmatprep.subr.mxu0 %v8742_v47  ;;  %8364 = vmatprep.subr.mxu1 %v8742_v47 }
 0xb5a   : > { %8332 = vmatpush3.msra.mxu0 %v7175_v24  ;;  %8365 = vmatpush3.msra.mxu1 %v7197_v25 }
 0xb5b   : > { %8333 = vmatprep.subr.mxu0 %v8742_v47  ;;  %8366 = vmatprep.subr.mxu1 %v8742_v47 }
 0xb5c   : > { %8334 = vmatpush3.msra.mxu0 %v7174_v26  ;;  %8335 = vmatprep.mubr.msk.f32.mxu0 %vm8743_vm4, %v8742_v47 }
 0xb5d   : > { %8367 = vmatpush3.msra.mxu1 %v7196_v27  ;;  %8336 = vmatmul.mubr.msk.f32.vlgmr.msra.gmra.mxu0 %vm556_vm1, %v9203_v54 }
 0xb5e   : > { %8349 = vmatprep.subr.mxu0 %v8742_v47  ;;  %8368 = vmatprep.mubr.msk.f32.mxu1 %vm8743_vm4, %v8742_v47 }
 0xb5f   : > { %8382 = vmatprep.subr.mxu1 %v8742_v47  ;;  %8350 = vmatpush3.msra.mxu0 %v7192_v57 }
 0xb60   : > { %8369 = vmatmul.mubr.msk.f32.vlgmr.msra.gmra.mxu1 %vm556_vm1, %v9203_v54  ;;  %8351 = vmatprep.subr.mxu0 %v8742_v47 }
 0xb61   : > { %8383 = vmatpush3.msra.mxu1 %v7214_v28  ;;  %8352 = vmatpush3.msra.mxu0 %v7191_v29 }
 0xb62   : > { %8384 = vmatprep.subr.mxu1 %v8742_v47  ;;  %8353 = vmatprep.subr.mxu0 %v8742_v47 }
 0xb63   : > { %8385 = vmatpush3.msra.mxu1 %v7213_v30  ;;  %8354 = vmatpush3.msra.mxu0 %v7190_v10 }
 0xb64   : > { %8386 = vmatprep.subr.mxu1 %v8742_v47  ;;  %8355 = vmatprep.subr.mxu0 %v8742_v47 }
 0xb65   : > { %8387 = vmatpush3.msra.mxu1 %v7212_v31  ;;  %8356 = vmatpush3.msra.mxu0 %v7189_v32 }
 0xb66   : > { %8388 = vmatprep.subr.mxu1 %v8742_v47  ;;  %8357 = vmatprep.mubr.msk.f32.mxu0 %vm8743_vm4, %v8742_v47 }
 0xb67   : > { %8389 = vmatpush3.msra.mxu1 %v7211_v16  ;;  %8390 = vmatprep.mubr.msk.f32.mxu1 %vm8743_vm4, %v8742_v47 }
 0xb68   : > { %8358 = vmatmul.mubr.msk.f32.vlgmr.msra.gmra.mxu0 %vm556_vm1, %v9203_v54  ;;  %8371 = vmatprep.subr.mxu0 %v7206_v9 }
 0xb69   : > { %8391 = vmatmul.mubr.msk.f32.vlgmr.msra.gmra.mxu1 %vm556_vm1, %v9203_v54  ;;  %8404 = vmatprep.subr.mxu1 %v7228_v34 }
 0xb6a   : > { %8372 = vmatpush3.msra.mxu0 %v7206_v9  ;;  %8379 = vmatprep.mubr.msk.f32.mxu0 %vm556_vm1, %v9230_v18 }
 0xb6b   : > { %8405 = vmatpush3.msra.mxu1 %v7228_v34  ;;  %8412 = vmatprep.mubr.msk.f32.mxu1 %vm556_vm1, %v9230_v18 }
 0xb6c   : > { %8373 = vmatprep.subr.mxu0 %v7205_v17  ;;  %8406 = vmatprep.subr.mxu1 %v7227_v33 }
 0xb6d   : > { %8374 = vmatpush3.msra.mxu0 %v7205_v17  ;;  %8407 = vmatpush3.msra.mxu1 %v7227_v33 }
 0xb6e   : > { %8375 = vmatprep.subr.mxu0 %v7204_v35  ;;  %8408 = vmatprep.subr.mxu1 %v7226_v36 }
 0xb6f   : > { %8376 = vmatpush3.msra.mxu0 %v7204_v35  ;;  %8409 = vmatpush3.msra.mxu1 %v7226_v36 }
 0xb70   : > { %8377 = vmatprep.subr.mxu0 %v7203_v37  ;;  %8410 = vmatprep.subr.mxu1 %v7225_v38 }
 0xb71   : > { %8378 = vmatpush3.msra.mxu0 %v7203_v37  ;;  %8411 = vmatpush3.msra.mxu1 %v7225_v38 }
 0xb72   : > { %8380 = vmatmul.mubr.msk.f32.vlgmr.msra.gmra.mxu0 %vm556_vm1, %v9232_v19  ;;  %8413 = vmatmul.mubr.msk.f32.vlgmr.msra.gmra.mxu1 %vm556_vm1, %v9232_v19 }
 0xb73   : > { %8393 = vmatprep.subr.mxu0 %v8742_v47  ;;  %8401 = vmatprep.mubr.msk.f32.mxu0 %vm8743_vm4, %v8742_v47 }
 0xb74   : > { %8394 = vmatpush3.msra.mxu0 %v7221_v39  ;;  %8426 = vmatprep.subr.mxu1 %v8742_v47 }
 0xb75   : > { %8395 = vmatprep.subr.mxu0 %v8742_v47  ;;  %8434 = vmatprep.mubr.msk.f32.mxu1 %vm8743_vm4, %v8742_v47 }
 0xb76   : > { %8396 = vmatpush3.msra.mxu0 %v7220_v40  ;;  %8427 = vmatpush3.msra.mxu1 %v7243_v50 }
 0xb77   : > { %8397 = vmatprep.subr.mxu0 %v8742_v47  ;;  %8428 = vmatprep.subr.mxu1 %v8742_v47 }
 0xb78   : > { %8398 = vmatpush3.msra.mxu0 %v7219_v41  ;;  %8429 = vmatpush3.msra.mxu1 %v7242_v51 }
 0xb79   : > { %8399 = vmatprep.subr.mxu0 %v8742_v47  ;;  %8430 = vmatprep.subr.mxu1 %v8742_v47 }
 0xb7a   : > { %8400 = vmatpush3.msra.mxu0 %v7218_v42  ;;  %8431 = vmatpush3.msra.mxu1 %v7241_v52  ;;  %v7216_v52 = vld [vmem:[%s9333_s16 + $0x6] ss:$0 sm:$0xff] }
 0xb7b   : > { %8415 = vmatprep.subr.mxu0 %v8742_v47  ;;  %8402 = vmatmul.mubr.msk.f32.vlgmr.msra.gmra.mxu0 %vm556_vm1, %v9203_v54 }
 0xb7c   : > { %8416 = vmatpush3.msra.mxu0 %v7236_v43  ;;  %8423 = vmatprep.mubr.msk.f32.mxu0 %vm8743_vm4, %v8742_v47 }
 0xb7d   : > { %8417 = vmatprep.subr.mxu0 %v8742_v47  ;;  %8432 = vmatprep.subr.mxu1 %v8742_v47 }
 0xb7e   : > { %8418 = vmatpush3.msra.mxu0 %v7235_v44  ;;  %8433 = vmatpush3.msra.mxu1 %v7240_v53 }
 0xb7f   : > { %8419 = vmatprep.subr.mxu0 %v8742_v47  ;;  %8435 = vmatmul.mubr.msk.f32.vlgmr.msra.gmra.mxu1 %vm556_vm1, %v9203_v54 }
 0xb80   : > { %8420 = vmatpush3.msra.mxu0 %v7234_v11 }
 0xb81   : > { %8421 = vmatprep.subr.mxu0 %v8742_v47 }
 0xb82   : > { %8422 = vmatpush3.msra.mxu0 %v7233_v49 }
 0xb83   : > { %8424 = vmatmul.mubr.msk.f32.vlgmr.msra.gmra.mxu0 %vm556_vm1, %v9203_v54  ;;  %8437 = vmatprep.subr.msk.mxu0 %vm1628_vm2, %v2967_v48 }
 0xb84   : > { %8438 = vmatpush3.xpose.msk.msra.mxu0 %vm1628_vm2, %v2967_v48 }
 0xc15   : > { %v8315_v55 = vpop.f32.mrf.mxu0  ;;  %v8348_v58 = vpop.f32.mrf.mxu1 }
 0xc16   : > { %v2881_v63 = vadd.f32 %v8315_v55, %v7164_v59  ;;  %v3138_v22 = vadd.f32 %v8348_v58, %v7186_v0  ;;  %v7258_v58 = vld [vmem:[%s9390_s26 + $0x8] sm:$0xff] }
 0xc17   : > { %v2875_v60 = vpop.f32.mrf.mxu0  ;;  %v3132_v61 = vpop.f32.mrf.mxu1 }
 0xc18   : > { %v2876_v62 = vadd.f32 %v7164_v59, %v2875_v60  ;;  %v3133_v1 = vadd.f32 %v7186_v0, %v3132_v61 }
 0xc1a   : > { %8439 = vmatprep.mubr.msk.f32.mxu0 %vm1628_vm2, %v2876_v62 }
 0xc1b   : > { %8440 = vmatmul.mubr.msk.f32.vlgmr.msra.gmra.mxu0 %vm1628_vm2, %v2881_v63 }
 0xc1c   : > { %8449 = vmatprep.mubr.msk.f32.mxu0 %vm1628_vm2, %v3133_v1 }
 0xc1d   : > { %v3049_v4 = vpop.f32.mrf.mxu0 }
 0xc1e   : > { %v3050_v54 = vadd.f32 %v7179_v3, %v3049_v4  ;;  %v4003_v4 = vld [vmem:[%s9390_s26] sm:$0xff] }
 0xc1f   : > { %v8337_v6 = vpop.f32.mrf.mxu0 }
 0xc20   : > { %8442 = vmatprep.subr.mxu1 %v3050_v54  ;;  %v3303_v7 = vpop.f32.mrf.mxu1 }
 0xc21   : > { %8443 = vmatpush3.msra.mxu1 %v3050_v54  ;;  %v9357_v8 = vadd.f32 %v7201_v5, %v3303_v7 }
 0xc22   : > { %v8370_v12 = vpop.f32.mrf.mxu1 }
 0xc23   : > { %8452 = vmatprep.subr.mxu1 %v9357_v8  ;;  %v7223_v12 = vld [vmem:[%s9333_s16 + $0xa] ss:$0 sm:$0xff] }
 0xc28   : > { %v3220_v14 = vpop.f32.mrf.mxu0 }
 0xc29   : > { %v3221_v15 = vadd.f32 %v7194_v13, %v3220_v14  ;;  %v3474_v56 = vpop.f32.mrf.mxu1 }
 0xc2a   : > { %v8359_v20 = vpop.f32.mrf.mxu0  ;;  %v3475_v55 = vadd.f32 %v7216_v52, %v3474_v56  ;;  %v7238_v56 = vld [vmem:[%s9333_s16 + $0x7] ss:$0 sm:$0xff] }
 0xc2b   : > { %8447 = vmatprep.subr.msk.mxu0 %vm1628_vm2, %v3221_v15  ;;  %v8392_v21 = vpop.f32.mrf.mxu1 }
 0xc2c   : > { %8448 = vmatpush3.xpose.msk.msra.mxu0 %vm1628_vm2, %v3221_v15 }
 0xc2d   : > { %8457 = vmatprep.subr.mxu0 %v7258_v58 }
 0xc2f   : > { %8450 = vmatmul.mubr.msk.f32.vlgmr.msra.gmra.mxu0 %vm1628_vm2, %v3138_v22 }
 0xc30   : > { %8458 = vmatpush3.msra.mxu0 %v7258_v58 }
 0xc31   : > { %8467 = vmatprep.subr.msk.mxu0 %vm1628_vm2, %v3475_v55 }
 0xc32   : > { %v9364_v23 = vpop.f32.mrf.mxu0  ;;  %v9380_v51 = vpop.f32.mrf.mxu1 }
 0xc34   : > { %v9366_v24 = vpop.f32.mrf.mxu0  ;;  %v9383_v53 = vpop.f32.mrf.mxu1 }
 0xc3b   : > { %v9368_v25 = vpop.f32.mrf.mxu0 }
 0xc3c   : > { %v3558_v15 = vadd.f32 %v7223_v12, %v9368_v25  ;;  %v7208_v25 = vld [vmem:[%s9333_s16 + $0x2] ss:$0 sm:$0xff] }
 0xc3d   : > { %v8403_v26 = vpop.f32.mrf.mxu0 }
 0xc3f   : > { %v3811_v59 = vpop.f32.mrf.mxu1 }
 0xc41   : > { %v8436_v60 = vpop.f32.mrf.mxu1 }
 0xc43   : > { %v9370_v27 = vpop.f32.mrf.mxu0 }
 0xc44   : > { %v3729_v21 = vadd.f32 %v7238_v56, %v9370_v27  ;;  %v3392_v27 = vadd.f32 %v9364_v23, %v7208_v25 }
 0xc45   : > { %v8425_v57 = vpop.f32.mrf.mxu0 }
 0xc46   : > { %v3387_v57 = vadd.f32 %v7208_v25, %v9366_v24 }
 0xcdb   : > { %v8441_v28 = vpop.f32.mrf.mxu0 }
 0xcdc   : > { %v3902_v29 = vsel %vm1628_vm2, %v8441_v28, -inf }
 0xcdd   : > { %3903 = vmax.xlane.f32.xlu1 %v3902_v29  ;;  %v3890_v30 = vpop.f32.mrf.mxu0  ;;  %v7245_v29 = vld [vmem:[%s9333_s16 + $0xb] ss:$0 sm:$0xff] }
 0xcde   : > { %v3899_v10 = vsel %vm1628_vm2, %v3890_v30, -inf }
 0xcdf   : > { %3900 = vmax.xlane.f32.xlu0 %v3899_v10 }
 0xcef   : > { %v8451_v31 = vpop.f32.mrf.mxu0 }
 0xcf0   : > { %v4091_v32 = vsel %vm1628_vm2, %v8451_v31, -inf }
 0xcf1   : > { %4092 = vmax.xlane.f32.xlu1 %v4091_v32  ;;  %v4079_v16 = vpop.f32.mrf.mxu0 }
 0xcf2   : > { %v4088_v9 = vsel %vm1628_vm2, %v4079_v16, -inf }
 0xcf3   : > { %4089 = vmax.xlane.f32.xlu0 %v4088_v9 }
 0xd66   : > { %v3904_v34 = vpop.xlane.xlu1 %3903 }
 0xd67   : > { %v3906_v17 = vsub.f32 %v8441_v28, %v3904_v34  ;;  %v7269_v28 = vld [vmem:[%s9390_s26 + $0x10] sm:$0xff] }
 0xd68   : > { %v3901_v33 = vpop.xlane.xlu0 %3900 }
 0xd69   : > { %v3909_v35 = vmul.f32 1.442695, %v3906_v17  ;;  %v3905_v36 = vsub.f32 %v3890_v30, %v3901_v33  ;;  %v3812_v30 = vadd.f32 %v7245_v29, %v3811_v59  ;;  %v7281_v29 = vld [vmem:[%s4899_s28] ss:$0 sm:$0xff]  ;;  %s7288_s28 = sshll.u32 %s8724_s24, 4 }
 0xd6b   : > { %8608 = vpow2.f32 %v3909_v35  ;;  %v3907_v37 = vmul.f32 1.442695, %v3905_v36 }
 0xd6d   : > { %8610 = vpow2.f32 %v3907_v37 }
 0xd78   : > { %v8609_v38 = vpop.eup %8608 }
 0xd79   : > { %v3914_v39 = vsel %vm1628_vm2, %v8609_v38, 0.0 }
 0xd7a   : > { %v8611_v40 = vpop.eup %8610  ;;  %v4093_v41 = vpop.xlane.xlu1 %4092  ;;  %3915 = vadd.xlane.f32.xlu1 %v3914_v39 }
 0xd7b   : > { %v4095_v42 = vsub.f32 %v8451_v31, %v4093_v41  ;;  %v3911_v43 = vsel %vm1628_vm2, %v8611_v40, 0.0 }
 0xd7c   : > { %v4090_v44 = vpop.xlane.xlu0 %4089  ;;  %3912 = vadd.xlane.f32.xlu0 %v3911_v43 }
 0xd7d   : > { %v4098_v11 = vmul.f32 1.442695, %v4095_v42  ;;  %v4094_v45 = vsub.f32 %v4079_v16, %v4090_v44 }
 0xd7f   : > { %8612 = vpow2.f32 %v4098_v11  ;;  %v4096_v2 = vmul.f32 1.442695, %v4094_v45 }
 0xd81   : > { %8614 = vpow2.f32 %v4096_v2 }
 0xd8c   : > { %v8613_v46 = vpop.eup %8612 }
 0xd8d   : > { %v4103_v48 = vsel %vm1628_vm2, %v8613_v46, 0.0 }
 0xd8e   : > { %v8615_v49 = vpop.eup %8614  ;;  %4104 = vadd.xlane.f32.xlu1 %v4103_v48 }
 0xd8f   : > { %v4100_v50 = vsel %vm1628_vm2, %v8615_v49, 0.0 }
 0xd90   : > { %4101 = vadd.xlane.f32.xlu0 %v4100_v50 }
 0xe03   : > { %v3916_v61 = vpop.xlane.xlu1 %3915 }
 0xe04   : > { %8616 = vrcp.f32 %v3916_v61 }
 0xe05   : > { %v3913_v62 = vpop.xlane.xlu0 %3912 }
 0xe06   : > { %8618 = vrcp.f32 %v3913_v62 }
 0xe11   : > { %v8617_v63 = vpop.eup %8616 }
 0xe12   : > { %v3920_v3 = vmul.f32 %v8617_v63, %v8609_v38 }
 0xe13   : > { %v8619_v0 = vpop.eup %8618 }
 0xe14   : > { %v3919_v1 = vmul.f32 %v8619_v0, %v8611_v40 }
 0xe16   : > { %8444 = vmatprep.mubr.msk.f32.mxu1 %vm1628_vm2, %v3919_v1 }
 0xe17   : > { %v4105_v54 = vpop.xlane.xlu1 %4104  ;;  %8445 = vmatmul.mubr.msk.f32.vlgmr.msra.gmra.mxu1 %vm1628_vm2, %v3920_v3 }
 0xe18   : > { %8453 = vmatpush3.msra.mxu1 %v9357_v8  ;;  %8620 = vrcp.f32 %v4105_v54 }
 0xe19   : > { %v4102_v5 = vpop.xlane.xlu0 %4101  ;;  %8462 = vmatprep.subr.mxu1 %v4003_v4 }
 0xe1a   : > { %8622 = vrcp.f32 %v4102_v5 }
 0xe25   : > { %v8621_v6 = vpop.eup %8620 }
 0xe26   : > { %v4109_v14 = vmul.f32 %v8621_v6, %v8613_v46  ;;  %v7230_v46 = vld [vmem:[%s9333_s16 + $0x3] ss:$0 sm:$0xff]  ;;  %s9604_s16 = scalar_lea.vmem %s10006_s11, %s7288_s28 }
 0xe27   : > { %v8623_v7 = vpop.eup %8622  ;;  %v3646_v50 = vadd.f32 %v9380_v51, %v7230_v46 }
 0xe28   : > { %v4108_v13 = vmul.f32 %v8623_v7, %v8615_v49  ;;  %v3641_v49 = vadd.f32 %v7230_v46, %v9383_v53  ;;  %v4971_v46 = vld [vmem:[%s9462_s23 + $0x50] sm:$0xff] }
 0xe2a   : > { %8454 = vmatprep.mubr.msk.f32.mxu1 %vm1628_vm2, %v4108_v13 }
 0xe2b   : > { %8455 = vmatmul.mubr.msk.f32.vlgmr.msra.gmra.mxu1 %vm1628_vm2, %v4109_v14 }
 0xe2c   : > { %8463 = vmatpush3.msra.mxu1 %v4003_v4 }
 0xe2d   : > { %8472 = vmatprep.subr.mxu1 %v3558_v15 }
 0xed7   : > { %v8446_v8 = vpop.f32.mrf.mxu1 }
 0xed9   : > { %v3993_v20 = vpop.f32.mrf.mxu1 }
 0xeda   : > { %8464 = vmatprep.mubr.msk.f32.mxu1 %vm1628_vm2, %v3993_v20 }
 0xedb   : > { %8465 = vmatmul.mubr.msk.f32.vlgmr.msra.gmra.mxu1 %vm1628_vm2, %v8446_v8 }
 0xedc   : > { %8473 = vmatpush3.msra.mxu1 %v3558_v15 }
 0xedd   : > { %8482 = vmatprep.subr.msk.mxu1 %vm1628_vm2, %v3729_v21 }
 0xeeb   : > { %v8456_v22 = vpop.f32.mrf.mxu1 }
 0xeed   : > { %v4182_v26 = vpop.f32.mrf.mxu1 }
 0xeee   : > { %8459 = vmatprep.mubr.msk.f32.mxu0 %vm1628_vm2, %v4182_v26 }
 0xeef   : > { %8460 = vmatmul.mubr.msk.f32.vlgmr.msra.gmra.mxu0 %vm1628_vm2, %v8456_v22 }
 0xef0   : > { %8468 = vmatpush3.xpose.msk.msra.mxu0 %vm1628_vm2, %v3475_v55  ;;  %8469 = vmatprep.mubr.msk.f32.mxu0 %vm1628_vm2, %v3387_v57 }
 0xef1   : > { %8477 = vmatprep.subr.mxu0 %v7269_v28 }
 0xef3   : > { %8470 = vmatmul.mubr.msk.f32.vlgmr.msra.gmra.mxu0 %vm1628_vm2, %v3392_v27 }
 0xef4   : > { %8478 = vmatpush3.msra.mxu0 %v7269_v28 }
 0xef5   : > { %8487 = vmatprep.subr.mxu0 %v3812_v30 }
 0xf9b   : > { %v8466_v10 = vpop.f32.mrf.mxu1 }
 0xf9d   : > { %v4346_v52 = vpop.f32.mrf.mxu1 }
 0xfaf   : > { %v8461_v24 = vpop.f32.mrf.mxu0 }
 0xfb0   : > { %v9417_v31 = vadd.f32 %v8466_v10, %v8461_v24 }
 0xfb1   : > { %v9419_v32 = vpop.f32.mrf.mxu0 }
 0xfb2   : > { %v4347_v57 = vadd.f32 %v4346_v52, %v9419_v32  ;;  %v4967_v52 = vld [vmem:[%s9462_s23 + $0x30] sm:$0xff] }
 0xfb3   : > { %v8471_v16 = vpop.f32.mrf.mxu0 }
 0xfb4   : > { %v4442_v9 = vsel %vm1628_vm2, %v8471_v16, -inf }
 0xfb5   : > { %4443 = vmax.xlane.f32.xlu1 %v4442_v9  ;;  %v4430_v34 = vpop.f32.mrf.mxu0 }
 0xfb6   : > { %v4439_v17 = vsel %vm1628_vm2, %v4430_v34, -inf }
 0xfb7   : > { %4440 = vmax.xlane.f32.xlu0 %v4439_v17 }
0x103e   : > { %v4444_v23 = vpop.xlane.xlu1 %4443 }
0x103f   : > { %v4446_v33 = vsub.f32 %v8471_v16, %v4444_v23 }
0x1040   : > { %v4441_v35 = vpop.xlane.xlu0 %4440 }
0x1041   : > { %v4449_v36 = vmul.f32 1.442695, %v4446_v33  ;;  %v4445_v37 = vsub.f32 %v4430_v34, %v4441_v35 }
0x1043   : > { %8624 = vpow2.f32 %v4449_v36  ;;  %v4447_v38 = vmul.f32 1.442695, %v4445_v37 }
0x1045   : > { %8626 = vpow2.f32 %v4447_v38 }
0x1050   : > { %v8625_v39 = vpop.eup %8624 }
0x1051   : > { %v4454_v40 = vsel %vm1628_vm2, %v8625_v39, 0.0 }
0x1052   : > { %v8627_v41 = vpop.eup %8626  ;;  %4455 = vadd.xlane.f32.xlu1 %v4454_v40 }
0x1053   : > { %v4451_v42 = vsel %vm1628_vm2, %v8627_v41, 0.0 }
0x1054   : > { %4452 = vadd.xlane.f32.xlu0 %v4451_v42  ;;  %v4976_v42 = vld [vmem:[%s9462_s23 + $0x78] sm:$0xff] }
0x10db   : > { %v4456_v43 = vpop.xlane.xlu1 %4455 }
0x10dc   : > { %8628 = vrcp.f32 %v4456_v43  ;;  %v4973_v43 = vld [vmem:[%s9462_s23 + $0x60] sm:$0xff] }
0x10dd   : > { %v4453_v44 = vpop.xlane.xlu0 %4452 }
0x10de   : > { %8630 = vrcp.f32 %v4453_v44  ;;  %v4975_v44 = vld [vmem:[%s9462_s23 + $0x70] sm:$0xff] }
0x10e9   : > { %v8629_v11 = vpop.eup %8628 }
0x10ea   : > { %v4460_v48 = vmul.f32 %v8629_v11, %v8625_v39  ;;  %v4970_v11 = vld [vmem:[%s9462_s23 + $0x48] sm:$0xff] }
0x10eb   : > { %v8631_v45 = vpop.eup %8630 }
0x10ec   : > { %v4459_v2 = vmul.f32 %v8631_v45, %v8627_v41  ;;  %v4972_v45 = vld [vmem:[%s9462_s23 + $0x58] sm:$0xff] }
0x10ee   : > { %8474 = vmatprep.mubr.msk.f32.mxu1 %vm1628_vm2, %v4459_v2  ;;  %v4969_v2 = vld [vmem:[%s9462_s23 + $0x40] sm:$0xff] }
0x10ef   : > { %8475 = vmatmul.mubr.msk.f32.vlgmr.msra.gmra.mxu1 %vm1628_vm2, %v4460_v48  ;;  %v4966_v48 = vld [vmem:[%s9462_s23 + $0x28] sm:$0xff] }
0x10f0   : > { %8483 = vmatpush3.xpose.msk.msra.mxu1 %vm1628_vm2, %v3729_v21  ;;  %8484 = vmatprep.mubr.msk.f32.mxu1 %vm1628_vm2, %v3641_v49  ;;  %v7278_v21 = vld [vmem:[%s9390_s26 + $0x18] sm:$0xff]  ;;  %s6652_s26 = scalar_lea.vmem %s10008_s13, %s8724_s24 }
0x10f1   : > { %8492 = vmatprep.subr.mxu1 %v7278_v21  ;;  %v4968_v49 = vld [vmem:[%s9462_s23 + $0x38] sm:$0xff] }
0x10f3   : > { %8485 = vmatmul.mubr.msk.f32.vlgmr.msra.gmra.mxu1 %vm1628_vm2, %v3646_v50  ;;  %v4965_v50 = vld [vmem:[%s9462_s23 + $0x20] sm:$0xff] }
0x10f4   : > { %8493 = vmatpush3.msra.mxu1 %v7278_v21  ;;  %v7307_v21 = vld [vmem:[%s9462_s23 + $0xd8] sm:$0xff] }
0x10f5   : > { %5108 = vmatprep.subr.mxu1 %v4976_v42  ;;  %v7346_v42 = vld [vmem:[%s9516_s27 + $0x2d8] sm:$0xff] }
0x11af   : > { %v8476_v55 = vpop.f32.mrf.mxu1 }
0x11b1   : > { %v4533_v58 = vpop.f32.mrf.mxu1 }
0x11b2   : > { %8479 = vmatprep.mubr.msk.f32.mxu0 %vm1628_vm2, %v4533_v58  ;;  %v4964_v58 = vld [vmem:[%s9462_s23 + $0x18] sm:$0xff] }
0x11b3   : > { %8480 = vmatmul.mubr.msk.f32.vlgmr.msra.gmra.mxu0 %vm1628_vm2, %v8476_v55  ;;  %v8486_v53 = vpop.f32.mrf.mxu1  ;;  %v4962_v55 = vld [vmem:[%s9462_s23 + $0x8] sm:$0xff] }
0x11b4   : > { %8488 = vmatpush3.msra.mxu0 %v3812_v30  ;;  %v4714_v59 = vsel %vm1628_vm2, %v8486_v53, -inf }
0x11b5   : > { %4715 = vmax.xlane.f32.xlu1 %v4714_v59  ;;  %v4702_v60 = vpop.f32.mrf.mxu1  ;;  %v4963_v59 = vld [vmem:[%s9462_s23 + $0x10] sm:$0xff] }
0x11b6   : > { %v4711_v61 = vsel %vm1628_vm2, %v4702_v60, -inf }
0x11b7   : > { %4712 = vmax.xlane.f32.xlu0 %v4711_v61  ;;  %v7311_v61 = vld [vmem:[%s9462_s23 + $0xf8] sm:$0xff] }
0x123e   : > { %v4716_v62 = vpop.xlane.xlu1 %4715 }
0x123f   : > { %v4718_v51 = vsub.f32 %v8486_v53, %v4716_v62  ;;  %v4961_v53 = vld [vmem:[%s9462_s23] sm:$0xff] }
0x1240   : > { %v4713_v63 = vpop.xlane.xlu0 %4712 }
0x1241   : > { %v4721_v0 = vmul.f32 1.442695, %v4718_v51  ;;  %v4717_v1 = vsub.f32 %v4702_v60, %v4713_v63  ;;  %v7309_v60 = vld [vmem:[%s9462_s23 + $0xe8] sm:$0xff] }
0x1243   : > { %8632 = vpow2.f32 %v4721_v0  ;;  %v4719_v3 = vmul.f32 1.442695, %v4717_v1 }
0x1245   : > { %8634 = vpow2.f32 %v4719_v3 }
0x1250   : > { %v8633_v4 = vpop.eup %8632 }
0x1251   : > { %v4726_v54 = vsel %vm1628_vm2, %v8633_v4, 0.0 }
0x1252   : > { %v8635_v5 = vpop.eup %8634  ;;  %4727 = vadd.xlane.f32.xlu1 %v4726_v54 }
0x1253   : > { %v4723_v6 = vsel %vm1628_vm2, %v8635_v5, 0.0 }
0x1254   : > { %4724 = vadd.xlane.f32.xlu0 %v4723_v6  ;;  %v7284_v6 = vld [vmem:[%s9219_s22 + $0x1] ss:$0 sm:$0xff] }
0x1273   : > { %v8481_v7 = vpop.f32.mrf.mxu0 }
0x1274   : > { %v4626_v12 = vadd.f32 %v8481_v7, %v9417_v31 }
0x1275   : > { %v4616_v22 = vpop.f32.mrf.mxu0 }
0x1276   : > { %v4625_v27 = vadd.f32 %v4616_v22, %v4347_v57  ;;  %v7304_v22 = vld [vmem:[%s9462_s23 + $0xc0] sm:$0xff]  ;;  %v7301_v57 = vld [vmem:[%s9462_s23 + $0xa8] sm:$0xff] }
0x12db   : > { %v4728_v13 = vpop.xlane.xlu1 %4727 }
0x12dc   : > { %8636 = vrcp.f32 %v4728_v13  ;;  %v7285_v13 = vld [vmem:[%s9226_s18 + $0x1] ss:$0 sm:$0xff] }
0x12dd   : > { %v4725_v14 = vpop.xlane.xlu0 %4724 }
0x12de   : > { %8638 = vrcp.f32 %v4725_v14 }
0x12e9   : > { %v8637_v15 = vpop.eup %8636 }
0x12ea   : > { %v4732_v20 = vmul.f32 %v8637_v15, %v8633_v4  ;;  %v7308_v15 = vld [vmem:[%s9462_s23 + $0xe0] sm:$0xff] }
0x12eb   : > { %v8639_v8 = vpop.eup %8638 }
0x12ec   : > { %v4731_v56 = vmul.f32 %v8639_v8, %v8635_v5  ;;  %v7310_v8 = vld [vmem:[%s9462_s23 + $0xf0] sm:$0xff] }
0x12ee   : > { %8489 = vmatprep.mubr.msk.f32.mxu0 %vm1628_vm2, %v4731_v56 }
0x12ef   : > { %8490 = vmatmul.mubr.msk.f32.vlgmr.msra.gmra.mxu0 %vm1628_vm2, %v4732_v20  ;;  %v7305_v20 = vld [vmem:[%s9462_s23 + $0xc8] sm:$0xff] }
0x12f0   : > { %5071 = vmatprep.mubr.f32.mxu0 %v8742_v47 }
0x13af   : > { %v8491_v25 = vpop.f32.mrf.mxu0 }
0x13b1   : > { %v4805_v26 = vpop.f32.mrf.mxu0 }
0x13b2   : > { %8494 = vmatprep.mubr.msk.f32.mxu1 %vm1628_vm2, %v4805_v26 }
0x13b3   : > { %8495 = vmatmul.mubr.msk.f32.vlgmr.msra.gmra.mxu1 %vm1628_vm2, %v8491_v25  ;;  %v7306_v25 = vld [vmem:[%s9462_s23 + $0xd0] sm:$0xff] }
0x13b4   : > { %5148 = vmatprep.mubr.f32.mxu1 %v8742_v47  ;;  %5109 = vmatpush1.msra.mxu1 %v4975_v44  ;;  %v7330_v44 = vld [vmem:[%s9516_s27 + $0x258] sm:$0xff] }
0x13b5   : > { %5110 = vmatprep.subr.mxu1 %v4972_v45  ;;  %v7345_v45 = vld [vmem:[%s9516_s27 + $0x2d0] sm:$0xff] }
0x13b6   : > { %5111 = vmatpush1.msra.mxu1 %v4971_v46  ;;  %v7329_v46 = vld [vmem:[%s9516_s27 + $0x250] sm:$0xff] }
0x13b7   : > { %5112 = vmatprep.subr.mxu1 %v4968_v49  ;;  %v7344_v49 = vld [vmem:[%s9516_s27 + $0x2c8] sm:$0xff] }
0x13b8   : > { %5113 = vmatpush1.msra.mxu1 %v4967_v52  ;;  %v7328_v52 = vld [vmem:[%s9516_s27 + $0x248] sm:$0xff] }
0x13b9   : > { %5114 = vmatprep.subr.mxu1 %v4964_v58  ;;  %v7343_v58 = vld [vmem:[%s9516_s27 + $0x2c0] sm:$0xff] }
0x13ba   : > { %5115 = vmatpush1.msra.mxu1 %v4963_v59  ;;  %v7327_v59 = vld [vmem:[%s9516_s27 + $0x240] sm:$0xff] }
0x13bb   : > { %5379 = vmatprep.subr.mxu1 %v7311_v61  ;;  %v7342_v61 = vld [vmem:[%s9516_s27 + $0x2b8] sm:$0xff] }
0x1473   : > { %v8496_v28 = vpop.f32.mrf.mxu1 }
0x1474   : > { %v4898_v30 = vadd.f32 %v8496_v28, %v4626_v12  ;;  %v7303_v28 = vld [vmem:[%s9462_s23 + $0xb8] sm:$0xff] }
0x1475   : > { %v4888_v10 = vpop.f32.mrf.mxu1 }
0x1476   : > { %v4908_v24 = vadd.f32 %v7281_v29, %v4898_v30  ;;  %v4897_v31 = vadd.f32 %v4888_v10, %v4625_v27  ;;  %v7302_v27 = vld [vmem:[%s9462_s23 + $0xb0] sm:$0xff]  ;;  %v7297_v30 = vld [vmem:[%s9462_s23 + $0x88] sm:$0xff]  ;;  %v7299_v10 = vld [vmem:[%s9462_s23 + $0x98] sm:$0xff] }
0x1478   : > { %v4907_v16 = vadd.f32 %v7281_v29, %v4897_v31  ;;  %v4910_v9 = vadd.f32 %v4908_v24, %v9232_v19  ;;  %v7300_v29 = vld [vmem:[%s9462_s23 + $0xa0] sm:$0xff]  ;;  %v7298_v31 = vld [vmem:[%s9462_s23 + $0x90] sm:$0xff] }
0x1479   : > { %v7296_v24 = vld [vmem:[%s9462_s23 + $0x80] sm:$0xff] }
0x147a   : > { %v4919_v34 = vsel %vm556_vm1, %v4910_v9, 0.0  ;;  %v4909_v17 = vadd.f32 %v4907_v16, %v9230_v18  ;;  %v4974_v18 = vld [vmem:[%s9462_s23 + $0x68] sm:$0xff]  ;;  %v7350_v16 = vld [vmem:[%s9516_s27 + $0x2f8] sm:$0xff] }
0x147b   : > { %4920 = vadd.xlane.f32.xlu1 %v4919_v34  ;;  %5031 = vmatprep.subr.mxu0 %v4974_v18  ;;  %v7334_v34 = vld [vmem:[%s9516_s27 + $0x278] sm:$0xff]  ;;  %v7363_v18 = vld [vmem:[%s9516_s27 + $0x360] sm:$0xff] }
0x147c   : > { %v4916_v23 = vsel %vm556_vm1, %v4909_v17, 0.0  ;;  %5032 = vmatpush1.msra.mxu0 %v4973_v43  ;;  %v7378_v43 = vld [vmem:[%s9516_s27 + $0x3d8] sm:$0xff] }
0x147d   : > { %4917 = vadd.xlane.f32.xlu0 %v4916_v23  ;;  %5033 = vmatprep.subr.mxu0 %v4970_v11  ;;  %v7349_v23 = vld [vmem:[%s9516_s27 + $0x2f0] sm:$0xff]  ;;  %v7362_v11 = vld [vmem:[%s9516_s27 + $0x358] sm:$0xff] }
0x147e   : > { %5034 = vmatpush1.msra.mxu0 %v4969_v2  ;;  %v7377_v2 = vld [vmem:[%s9516_s27 + $0x3d0] sm:$0xff] }
0x147f   : > { %5035 = vmatprep.subr.mxu0 %v4966_v48  ;;  %v7361_v48 = vld [vmem:[%s9516_s27 + $0x350] sm:$0xff] }
0x1480   : > { %5036 = vmatpush1.msra.mxu0 %v4965_v50  ;;  %v7376_v50 = vld [vmem:[%s9516_s27 + $0x3c8] sm:$0xff] }
0x1481   : > { %5037 = vmatprep.subr.mxu0 %v4962_v55  ;;  %v7360_v55 = vld [vmem:[%s9516_s27 + $0x348] sm:$0xff] }
0x1482   : > { %5038 = vmatpush1.msra.mxu0 %v4961_v53  ;;  %v7375_v53 = vld [vmem:[%s9516_s27 + $0x3c0] sm:$0xff] }
0x1483   : > { %5302 = vmatprep.subr.mxu0 %v7309_v60  ;;  %v7359_v60 = vld [vmem:[%s9516_s27 + $0x340] sm:$0xff] }
0x1504   : > { %v4921_v32 = vpop.xlane.xlu1 %4920 }
0x1505   : > { %v4923_v33 = vmul.f32 0.03125, %v4921_v32  ;;  %v7381_v32 = vld [vmem:[%s9516_s27 + $0x3f0] sm:$0xff] }
0x1506   : > { %v4918_v35 = vpop.xlane.xlu0 %4917 }
0x1507   : > { %v4925_v36 = vsub.f32 %v4910_v9, %v4923_v33  ;;  %v4922_v37 = vmul.f32 0.03125, %v4918_v35  ;;  %v7382_v9 = vld [vmem:[%s9516_s27 + $0x3f8] sm:$0xff]  ;;  %v7333_v33 = vld [vmem:[%s9516_s27 + $0x270] sm:$0xff] }
0x1508   : > { %v7365_v35 = vld [vmem:[%s9516_s27 + $0x370] sm:$0xff] }
0x1509   : > { %v4924_v38 = vsub.f32 %v4909_v17, %v4922_v37  ;;  %v4927_v39 = vmul.f32 %v4925_v36, %v4925_v36  ;;  %v7366_v17 = vld [vmem:[%s9516_s27 + $0x378] sm:$0xff]  ;;  %v7380_v37 = vld [vmem:[%s9516_s27 + $0x3e8] sm:$0xff] }
0x150b   : > { %v4931_v40 = vsel %vm556_vm1, %v4927_v39, 0.0  ;;  %v4926_v41 = vmul.f32 %v4924_v38, %v4924_v38  ;;  %v7364_v39 = vld [vmem:[%s9516_s27 + $0x368] sm:$0xff] }
0x150c   : > { %4932 = vadd.xlane.f32.xlu1 %v4931_v40  ;;  %v7347_v40 = vld [vmem:[%s9516_s27 + $0x2e0] sm:$0xff] }
0x150d   : > { %v4928_v19 = vsel %vm556_vm1, %v4926_v41, 0.0  ;;  %v7379_v41 = vld [vmem:[%s9516_s27 + $0x3e0] sm:$0xff] }
0x150e   : > { %4929 = vadd.xlane.f32.xlu0 %v4928_v19  ;;  %v7331_v19 = vld [vmem:[%s9516_s27 + $0x260] sm:$0xff] }
0x1595   : > { %v4933_v62 = vpop.xlane.xlu1 %4932 }
0x1596   : > { %v4935_v51 = vmul.f32 0.03125, %v4933_v62  ;;  %v7374_v62 = vld [vmem:[%s9516_s27 + $0x3b8] sm:$0xff] }
0x1597   : > { %v4930_v63 = vpop.xlane.xlu0 %4929 }
0x1598   : > { %v4937_v0 = vadd.f32 1e-05, %v4935_v51  ;;  %v4934_v1 = vmul.f32 0.03125, %v4930_v63  ;;  %v7326_v51 = vld [vmem:[%s9516_s27 + $0x238] sm:$0xff] }
0x1599   : > { %v7358_v63 = vld [vmem:[%s9516_s27 + $0x338] sm:$0xff] }
0x159a   : > { %v4936_v3 = vadd.f32 1e-05, %v4934_v1  ;;  %8640 = vrsqrt.f32 %v4937_v0  ;;  %v7341_v0 = vld [vmem:[%s9516_s27 + $0x2b0] sm:$0xff] }
0x159b   : > { %v7373_v1 = vld [vmem:[%s9516_s27 + $0x3b0] sm:$0xff] }
0x159c   : > { %8642 = vrsqrt.f32 %v4936_v3  ;;  %v7325_v3 = vld [vmem:[%s9516_s27 + $0x230] sm:$0xff] }
0x15a7   : > { %v8641_v4 = vpop.eup %8640 }
0x15a8   : > { %v4941_v7 = vmul.f32 %v8641_v4, %v4925_v36  ;;  %v7348_v36 = vld [vmem:[%s9516_s27 + $0x2e8] sm:$0xff]  ;;  %v7357_v4 = vld [vmem:[%s9516_s27 + $0x330] sm:$0xff] }
0x15a9   : > { %v8643_v54 = vpop.eup %8642 }
0x15aa   : > { %v4940_v5 = vmul.f32 %v8643_v54, %v4924_v38  ;;  %v4949_v56 = vmul.f32 %v7284_v6, %v4941_v7  ;;  %v7332_v38 = vld [vmem:[%s9516_s27 + $0x268] sm:$0xff] }
0x15ab   : > { %v7340_v54 = vld [vmem:[%s9516_s27 + $0x2a8] sm:$0xff] }
0x15ac   : > { %v4948_v12 = vmul.f32 %v7284_v6, %v4940_v5  ;;  %v9496_v26 = vadd.f32 %v7285_v13, %v4949_v56  ;;  %v7372_v5 = vld [vmem:[%s9516_s27 + $0x3a8] sm:$0xff]  ;;  %v7338_v56 = vld [vmem:[%s9516_s27 + $0x298] sm:$0xff] }
0x15ad   : > { %v7324_v6 = vld [vmem:[%s9516_s27 + $0x228] sm:$0xff] }
0x15ae   : > { %v9484_v14 = vadd.f32 %v7285_v13, %v4948_v12  ;;  %v7356_v7 = vld [vmem:[%s9516_s27 + $0x328] sm:$0xff]  ;;  %v7339_v12 = vld [vmem:[%s9516_s27 + $0x2a0] sm:$0xff] }
0x15af   : > { %v7371_v13 = vld [vmem:[%s9516_s27 + $0x3a0] sm:$0xff] }
0x15b0   : > { %7289 = vmatmul.mubr.msk.f32.vlgmr.msra.gmra.mxu0 %vm556_vm1, %v9484_v14  ;;  %7291 = vmatmul.mubr.msk.f32.vlgmr.msra.gmra.mxu1 %vm556_vm1, %v9484_v14 }
0x15b1   : > { %5303 = vmatpush1.msra.mxu0 %v7308_v15  ;;  %5380 = vmatpush1.msra.mxu1 %v7310_v8  ;;  %v7323_v15 = vld [vmem:[%s9516_s27 + $0x220] sm:$0xff] }
0x15b2   : > { %5304 = vmatprep.subr.mxu0 %v7305_v20  ;;  %5381 = vmatprep.subr.mxu1 %v7307_v21  ;;  %v7355_v8 = vld [vmem:[%s9516_s27 + $0x320] sm:$0xff]  ;;  %v7370_v20 = vld [vmem:[%s9516_s27 + $0x398] sm:$0xff] }
0x15b3   : > { %5077 = vmatprep.mubr.f32.mxu0 %v8742_v47  ;;  %5154 = vmatprep.mubr.f32.mxu1 %v8742_v47  ;;  %v7322_v21 = vld [vmem:[%s9516_s27 + $0x218] sm:$0xff] }
0x15b4   : > { %5305 = vmatpush1.msra.mxu0 %v7304_v22  ;;  %5382 = vmatpush1.msra.mxu1 %v7306_v25  ;;  %v7354_v22 = vld [vmem:[%s9516_s27 + $0x318] sm:$0xff]  ;;  %v7337_v25 = vld [vmem:[%s9516_s27 + $0x290] sm:$0xff] }
0x15b5   : > { %7290 = vmatmul.mubr.msk.f32.gmra.mxu0 %vm556_vm1, %v9496_v26  ;;  %7292 = vmatmul.mubr.msk.f32.gmra.mxu1 %vm556_vm1, %v9496_v26 }
0x15b6   : > { %5306 = vmatprep.subr.mxu0 %v7301_v57  ;;  %5383 = vmatprep.subr.mxu1 %v7303_v28  ;;  %v7369_v57 = vld [vmem:[%s9516_s27 + $0x390] sm:$0xff] }
0x15b7   : > { %5307 = vmatpush1.msra.mxu0 %v7300_v29  ;;  %5384 = vmatpush1.msra.mxu1 %v7302_v27  ;;  %v7321_v28 = vld [vmem:[%s9516_s27 + $0x210] sm:$0xff]  ;;  %v7336_v27 = vld [vmem:[%s9516_s27 + $0x288] sm:$0xff] }
0x15b8   : > { %5308 = vmatprep.subr.mxu0 %v7297_v30  ;;  %5385 = vmatprep.subr.mxu1 %v7299_v10  ;;  %v7353_v29 = vld [vmem:[%s9516_s27 + $0x310] sm:$0xff]  ;;  %v7368_v30 = vld [vmem:[%s9516_s27 + $0x388] sm:$0xff] }
0x15b9   : > { %5309 = vmatpush1.msra.mxu0 %v7296_v24  ;;  %5342 = vmatprep.mubr.f32.mxu0 %v8742_v47  ;;  %v7320_v10 = vld [vmem:[%s9516_s27 + $0x208] sm:$0xff] }
0x15ba   : > { %5386 = vmatpush1.msra.mxu1 %v7298_v31  ;;  %5419 = vmatprep.mubr.f32.mxu1 %v8742_v47  ;;  %v7352_v24 = vld [vmem:[%s9516_s27 + $0x308] sm:$0xff]  ;;  %v7335_v31 = vld [vmem:[%s9516_s27 + $0x280] sm:$0xff] }
0x15bb   : > { %7314 = vmatmul.mubr.msk.f32.vlgmr.msra.gmra.mxu0 %vm556_vm1, %v9484_v14  ;;  %7316 = vmatmul.mubr.msk.f32.vlgmr.msra.gmra.mxu1 %vm556_vm1, %v9484_v14 }
0x15bc   : > { %5348 = vmatprep.mubr.f32.mxu0 %v8742_v47  ;;  %5425 = vmatprep.mubr.f32.mxu1 %v8742_v47 }
0x15bd   : > { %7793 = vmatprep.subr.mxu0 %v7350_v16  ;;  %7831 = vmatprep.subr.mxu1 %v7382_v9  ;;  %v7367_v16 = vld [vmem:[%s9516_s27 + $0x380] sm:$0xff] }
0x15be   : > { %7794 = vmatpush3.msra.mxu0 %v7334_v34  ;;  %7832 = vmatpush3.msra.mxu1 %v7366_v17  ;;  %v7319_v9 = vld [vmem:[%s9516_s27 + $0x200] sm:$0xff]  ;;  %v5202_v17 = vld [vmem:[%s9516_s27 + $0xf8] sm:$0xff] }
0x15bf   : > { %7315 = vmatmul.mubr.msk.f32.gmra.mxu0 %vm556_vm1, %v9496_v26  ;;  %7317 = vmatmul.mubr.msk.f32.gmra.mxu1 %vm556_vm1, %v9496_v26  ;;  %v7351_v34 = vld [vmem:[%s9516_s27 + $0x300] sm:$0xff] }
0x15c0   : > { %7795 = vmatprep.subr.mxu0 %v7349_v23  ;;  %7833 = vmatprep.subr.mxu1 %v7381_v32  ;;  %v5234_v23 = vld [vmem:[%s9516_s27 + $0x1f8] sm:$0xff]  ;;  %v4981_v32 = vlaneseq }
0x15c1   : > { %7796 = vmatpush3.msra.mxu0 %v7333_v33  ;;  %7834 = vmatpush3.msra.mxu1 %v7365_v35 }
0x15c2   : > { %7797 = vmatprep.subr.mxu0 %v7348_v36  ;;  %7835 = vmatprep.subr.mxu1 %v7380_v37 }
0x15c3   : > { %7798 = vmatpush3.msra.mxu0 %v7332_v38  ;;  %7836 = vmatpush3.msra.mxu1 %v7364_v39  ;;  %v4982_v38 = vshrl.u32 %v4981_v32, 7 }
0x15c4   : > { %7799 = vmatprep.subr.mxu0 %v7347_v40  ;;  %7837 = vmatprep.subr.mxu1 %v7379_v41  ;;  %v7313_v41 = vld [vmem:[%s9604_s16 + $0x4] sm:$0xf] }
0x15c5   : > { %7800 = vmatpush3.msra.mxu0 %v7331_v19  ;;  %7838 = vmatpush3.msra.mxu1 %v7363_v18  ;;  %v9611_v19 = vsub.s32 0, %v4982_v38  ;;  %v9613_v18 = vsub.s32 2, %v4982_v38 }
0x15c6   : > { %7801 = vmatprep.subr.mxu0 %v7346_v42  ;;  %7839 = vmatprep.subr.mxu1 %v7378_v43 }
0x15c7   : > { %7802 = vmatpush3.msra.mxu0 %v7330_v44  ;;  %7840 = vmatpush3.msra.mxu1 %v7362_v11  ;;  %v9619_v44 = vsub.s32 1, %v4982_v38  ;;  %v9621_v11 = vsub.s32 3, %v4982_v38  ;;  %v5198_v38 = vld [vmem:[%s9516_s27 + $0xd8] sm:$0xff] }
0x15c8   : > { %7803 = vmatprep.subr.mxu0 %v7345_v45  ;;  %7841 = vmatprep.subr.mxu1 %v7377_v2  ;;  %v5261_v45 = vrot.slane %v7313_v41, %v9611_v19  ;;  %v5269_v2 = vrot.slane %v7313_v41, %v9613_v18 }
0x15c9   : > { %7804 = vmatpush3.msra.mxu0 %v7329_v46  ;;  %7842 = vmatpush3.msra.mxu1 %v7361_v48  ;;  %v5265_v46 = vrot.slane %v7313_v41, %v9619_v44  ;;  %v5273_v48 = vrot.slane %v7313_v41, %v9621_v11  ;;  %v5230_v41 = vld [vmem:[%s9516_s27 + $0x1d8] sm:$0xff] }
0x15ca   : > { %7805 = vmatprep.subr.mxu0 %v7344_v49  ;;  %7843 = vmatprep.subr.mxu1 %v7376_v50 }
0x15cb   : > { %7806 = vmatpush3.msra.mxu0 %v7328_v52  ;;  %7844 = vmatpush3.msra.mxu1 %v7360_v55 }
0x15cc   : > { %7807 = vmatprep.subr.mxu0 %v7343_v58  ;;  %7845 = vmatprep.subr.mxu1 %v7375_v53 }
0x15cd   : > { %7808 = vmatpush3.msra.mxu0 %v7327_v59  ;;  %7846 = vmatpush3.msra.mxu1 %v7359_v60 }
0x15ce   : > { %7809 = vmatprep.subr.mxu0 %v7342_v61  ;;  %7847 = vmatprep.subr.mxu1 %v7374_v62 }
0x15cf   : > { %7810 = vmatpush3.msra.mxu0 %v7326_v51  ;;  %7848 = vmatpush3.msra.mxu1 %v7358_v63  ;;  %v9628_v51 = vld [vmem:[%s9604_s16] sm:$0xf] }
0x15d0   : > { %7811 = vmatprep.subr.mxu0 %v7341_v0  ;;  %7849 = vmatprep.subr.mxu1 %v7373_v1  ;;  %v9632_v1 = vrot.slane %v9628_v51, %v9619_v44 }
0x15d1   : > { %7812 = vmatpush3.msra.mxu0 %v7325_v3  ;;  %7850 = vmatpush3.msra.mxu1 %v7357_v4 }
0x15d2   : > { %7813 = vmatprep.subr.mxu0 %v7340_v54  ;;  %7851 = vmatprep.subr.mxu1 %v7372_v5 }
0x15d3   : > { %7814 = vmatpush3.msra.mxu0 %v7324_v6  ;;  %7852 = vmatpush3.msra.mxu1 %v7356_v7  ;;  %v5186_v6 = vld [vmem:[%s9516_s27 + $0x78] sm:$0xff] }
0x15d4   : > { %7815 = vmatprep.subr.mxu0 %v7339_v12  ;;  %7853 = vmatprep.subr.mxu1 %v7371_v13  ;;  %v5218_v7 = vld [vmem:[%s9516_s27 + $0x178] sm:$0xff]  ;;  %v9638_v12 = vrot.slane %v9628_v51, %v9621_v11 }
0x15d5   : > { %7816 = vmatpush3.msra.mxu0 %v7323_v15  ;;  %7854 = vmatpush3.msra.mxu1 %v7355_v8  ;;  %v5201_v8 = vld [vmem:[%s9516_s27 + $0xf0] sm:$0xff] }
0x15d6   : > { %7817 = vmatprep.subr.mxu0 %v7338_v56  ;;  %7855 = vmatprep.subr.mxu1 %v7370_v20  ;;  %v5233_v56 = vld [vmem:[%s9516_s27 + $0x1f0] sm:$0xff] }
0x15d7   : > { %7818 = vmatpush3.msra.mxu0 %v7322_v21  ;;  %7856 = vmatpush3.msra.mxu1 %v7354_v22  ;;  %v5185_v22 = vld [vmem:[%s9516_s27 + $0x70] sm:$0xff] }
0x15d8   : > { %7819 = vmatprep.subr.mxu0 %v7337_v25  ;;  %7857 = vmatprep.subr.mxu1 %v7369_v57  ;;  %v5217_v25 = vld [vmem:[%s9516_s27 + $0x170] sm:$0xff] }
0x15d9   : > { %7820 = vmatpush3.msra.mxu0 %v7321_v28  ;;  %7858 = vmatpush3.msra.mxu1 %v7353_v29 }
0x15da   : > { %7821 = vmatprep.subr.mxu0 %v7336_v27  ;;  %7859 = vmatprep.subr.mxu1 %v7368_v30  ;;  %v5200_v27 = vld [vmem:[%s9516_s27 + $0xe8] sm:$0xff] }
0x15db   : > { %7822 = vmatpush3.msra.mxu0 %v7320_v10  ;;  %7860 = vmatpush3.msra.mxu1 %v7352_v24  ;;  %v5232_v30 = vld [vmem:[%s9516_s27 + $0x1e8] sm:$0xff] }
0x15dc   : > { %7823 = vmatprep.subr.mxu0 %v7335_v31  ;;  %7861 = vmatprep.subr.mxu1 %v7367_v16  ;;  %v5184_v16 = vld [vmem:[%s9516_s27 + $0x68] sm:$0xff] }
0x15dd   : > { %7824 = vmatpush3.msra.mxu0 %v7319_v9  ;;  %7862 = vmatpush3.msra.mxu1 %v7351_v34  ;;  %v5216_v9 = vld [vmem:[%s9516_s27 + $0x168] sm:$0xff]  ;;  %v5199_v34 = vld [vmem:[%s9516_s27 + $0xe0] sm:$0xff] }
0x15de   : > { %7869 = vmatprep.subr.mxu0 %v5202_v17  ;;  %7907 = vmatprep.subr.mxu1 %v5234_v23  ;;  %v5231_v23 = vld [vmem:[%s9516_s27 + $0x1e0] sm:$0xff] }
0x1670   : > { %v9596_v33 = vpop.f32.mrf.mxu0  ;;  %v9598_v35 = vpop.f32.mrf.mxu1 }
0x1672   : > { %v5075_v36 = vpop.f32.mrf.mxu0  ;;  %v5152_v37 = vpop.f32.mrf.mxu1 }
0x1673   : > { %v5076_v29 = vadd.f32 %v5075_v36, %v9632_v1  ;;  %v5153_v10 = vadd.f32 %v5152_v37, %v9638_v12  ;;  %v5183_v36 = vld [vmem:[%s9516_s27 + $0x60] sm:$0xff] }
0x1674   : > { %v5215_v37 = vld [vmem:[%s9516_s27 + $0x160] sm:$0xff] }
0x1675   : > { %v9606_v39 = vpop.f32.mrf.mxu0  ;;  %v9608_v40 = vpop.f32.mrf.mxu1  ;;  %v5162_v17 = vmax.f32 %v5076_v29, 0.0  ;;  %v5164_v32 = vmax.f32 %v5153_v10, 0.0  ;;  %v4984_v29 = vrot.slane %v9628_v51, %v9611_v19  ;;  %v5206_v10 = vld [vmem:[%s9516_s27 + $0x118] sm:$0xff] }
0x1677   : > { %v9615_v42 = vpop.f32.mrf.mxu0  ;;  %v9617_v43 = vpop.f32.mrf.mxu1 }
0x167b   : > { %v5344_v49 = vpop.f32.mrf.mxu0  ;;  %v5421_v50 = vpop.f32.mrf.mxu1 }
0x167c   : > { %v5345_v52 = vadd.f32 %v5344_v49, %v5261_v45  ;;  %v5422_v55 = vadd.f32 %v5421_v50, %v5269_v2  ;;  %v5181_v49 = vld [vmem:[%s9516_s27 + $0x50] sm:$0xff] }
0x167d   : > { %v5346_v58 = vpop.f32.mrf.mxu0  ;;  %v5423_v53 = vpop.f32.mrf.mxu1  ;;  %v5213_v50 = vld [vmem:[%s9516_s27 + $0x150] sm:$0xff] }
0x167e   : > { %v5347_v59 = vadd.f32 %v5346_v58, %v5265_v46  ;;  %v5424_v60 = vadd.f32 %v5423_v53, %v5273_v48  ;;  %v5432_v3 = vmax.f32 %v5345_v52, 0.0  ;;  %v5434_v4 = vmax.f32 %v5422_v55, 0.0  ;;  %v5196_v52 = vld [vmem:[%s9516_s27 + $0xc8] sm:$0xff] }
0x167f   : > { %v5350_v61 = vpop.f32.mrf.mxu0  ;;  %v5427_v62 = vpop.f32.mrf.mxu1  ;;  %v5228_v55 = vld [vmem:[%s9516_s27 + $0x1c8] sm:$0xff] }
0x1680   : > { %v5433_v63 = vmax.f32 %v5347_v59, 0.0  ;;  %v5435_v0 = vmax.f32 %v5424_v60, 0.0  ;;  %v5351_v20 = vadd.f32 %v5350_v61, %v5261_v45  ;;  %v5428_v21 = vadd.f32 %v5427_v62, %v5269_v2  ;;  %v5182_v45 = vld [vmem:[%s9516_s27 + $0x58] sm:$0xff]  ;;  %v5180_v58 = vld [vmem:[%s9516_s27 + $0x48] sm:$0xff]  ;;  %v5195_v59 = vld [vmem:[%s9516_s27 + $0xc0] sm:$0xff] }
0x1681   : > { %v5352_v54 = vpop.f32.mrf.mxu0  ;;  %v5429_v5 = vpop.f32.mrf.mxu1  ;;  %v5214_v2 = vld [vmem:[%s9516_s27 + $0x158] sm:$0xff]  ;;  %v5212_v53 = vld [vmem:[%s9516_s27 + $0x148] sm:$0xff]  ;;  %v5227_v60 = vld [vmem:[%s9516_s27 + $0x1c0] sm:$0xff] }
0x1682   : > { %v5353_v13 = vadd.f32 %v5352_v54, %v5265_v46  ;;  %v5430_v15 = vadd.f32 %v5429_v5, %v5273_v48  ;;  %5570 = vmatprep.mubr.f32.mxu0 %v5433_v63  ;;  %5645 = vmatprep.mubr.f32.mxu1 %v5435_v0  ;;  %v5436_v24 = vmax.f32 %v5351_v20, 0.0  ;;  %v5438_v31 = vmax.f32 %v5428_v21, 0.0  ;;  %v5197_v46 = vld [vmem:[%s9516_s27 + $0xd0] sm:$0xff]  ;;  %v5179_v61 = vld [vmem:[%s9516_s27 + $0x40] sm:$0xff]  ;;  %v5194_v63 = vld [vmem:[%s9516_s27 + $0xb8] sm:$0xff] }
0x1683   : > { %5571 = vmatmul.mubr.f32.vlgmr.msra.gmra.mxu0 %v5432_v3  ;;  %5646 = vmatmul.mubr.f32.vlgmr.msra.gmra.mxu1 %v5434_v4  ;;  %v5229_v48 = vld [vmem:[%s9516_s27 + $0x1d0] sm:$0xff]  ;;  %v5211_v62 = vld [vmem:[%s9516_s27 + $0x140] sm:$0xff]  ;;  %v5226_v0 = vld [vmem:[%s9516_s27 + $0x1b8] sm:$0xff] }
0x1684   : > { %v5437_v57 = vmax.f32 %v5353_v13, 0.0  ;;  %v5439_v28 = vmax.f32 %v5430_v15, 0.0  ;;  %7870 = vmatpush3.msra.mxu0 %v5186_v6  ;;  %7908 = vmatpush3.msra.mxu1 %v5218_v7  ;;  %v5178_v3 = vld [vmem:[%s9516_s27 + $0x38] sm:$0xff]  ;;  %v5193_v54 = vld [vmem:[%s9516_s27 + $0xb0] sm:$0xff]  ;;  %v5192_v13 = vld [vmem:[%s9516_s27 + $0xa8] sm:$0xff] }
0x1685   : > { %7871 = vmatprep.subr.mxu0 %v5201_v8  ;;  %7909 = vmatprep.subr.mxu1 %v5233_v56  ;;  %v5210_v4 = vld [vmem:[%s9516_s27 + $0x138] sm:$0xff]  ;;  %v5225_v5 = vld [vmem:[%s9516_s27 + $0x1b0] sm:$0xff]  ;;  %v5224_v15 = vld [vmem:[%s9516_s27 + $0x1a8] sm:$0xff] }
0x1686   : > { %7872 = vmatpush3.msra.mxu0 %v5185_v22  ;;  %7910 = vmatpush3.msra.mxu1 %v5217_v25  ;;  %v5177_v6 = vld [vmem:[%s9516_s27 + $0x30] sm:$0xff]  ;;  %v5176_v8 = vld [vmem:[%s9516_s27 + $0x28] sm:$0xff]  ;;  %v5191_v20 = vld [vmem:[%s9516_s27 + $0xa0] sm:$0xff] }
0x1687   : > { %5575 = vmatprep.mubr.f32.mxu0 %v5437_v57  ;;  %5650 = vmatprep.mubr.f32.mxu1 %v5439_v28  ;;  %v5209_v7 = vld [vmem:[%s9516_s27 + $0x130] sm:$0xff]  ;;  %v5208_v56 = vld [vmem:[%s9516_s27 + $0x128] sm:$0xff]  ;;  %v5223_v21 = vld [vmem:[%s9516_s27 + $0x1a0] sm:$0xff] }
0x1688   : > { %7873 = vmatprep.subr.mxu0 %v5200_v27  ;;  %7911 = vmatprep.subr.mxu1 %v5232_v30  ;;  %v5175_v22 = vld [vmem:[%s9516_s27 + $0x20] sm:$0xff]  ;;  %v5190_v57 = vld [vmem:[%s9516_s27 + $0x98] sm:$0xff]  ;;  %v4992_v27 = vrot.slane %v9628_v51, %v9613_v18  ;;  %v5188_v51 = vld [vmem:[%s9516_s27 + $0x88] sm:$0xff] }
0x1689   : > { %5576 = vmatmul.mubr.f32.gmra.mxu0 %v5436_v24  ;;  %5651 = vmatmul.mubr.f32.gmra.mxu1 %v5438_v31  ;;  %v5207_v25 = vld [vmem:[%s9516_s27 + $0x120] sm:$0xff]  ;;  %v5222_v28 = vld [vmem:[%s9516_s27 + $0x198] sm:$0xff]  ;;  %v5189_v24 = vld [vmem:[%s9516_s27 + $0x90] sm:$0xff] }
0x168a   : > { %7874 = vmatpush3.msra.mxu0 %v5184_v16  ;;  %7912 = vmatpush3.msra.mxu1 %v5216_v9  ;;  %v5174_v30 = vld [vmem:[%s9516_s27 + $0x18] sm:$0xff]  ;;  %v5221_v31 = vld [vmem:[%s9516_s27 + $0x190] sm:$0xff] }
0x168b   : > { %7875 = vmatprep.subr.mxu0 %v5199_v34  ;;  %5720 = vmatprep.mubr.f32.mxu0 %v5162_v17  ;;  %v5173_v16 = vld [vmem:[%s9516_s27 + $0x10] sm:$0xff]  ;;  %v5220_v34 = vld [vmem:[%s9516_s27 + $0x188] sm:$0xff]  ;;  %v5074_v17 = vadd.f32 %v9596_v33, %v4984_v29  ;;  %v5171_v33 = vld [vmem:[%s9516_s27] sm:$0xff] }
0x168c   : > { %7913 = vmatprep.subr.mxu1 %v5231_v23  ;;  %5795 = vmatprep.mubr.f32.mxu1 %v5164_v32  ;;  %v5205_v9 = vld [vmem:[%s9516_s27 + $0x110] sm:$0xff]  ;;  %v5151_v23 = vadd.f32 %v9598_v35, %v4992_v27  ;;  %v5172_v32 = vld [vmem:[%s9516_s27 + $0x8] sm:$0xff]  ;;  %v5203_v35 = vld [vmem:[%s9516_s27 + $0x100] sm:$0xff] }
0x168d   : > { %7876 = vmatpush3.msra.mxu0 %v5183_v36  ;;  %7914 = vmatpush3.msra.mxu1 %v5215_v37  ;;  %v5204_v36 = vld [vmem:[%s9516_s27 + $0x108] sm:$0xff]  ;;  %v5187_v37 = vld [vmem:[%s9516_s27 + $0x80] sm:$0xff] }
0x168e   : > { %7877 = vmatprep.subr.mxu0 %v5198_v38  ;;  %7915 = vmatprep.subr.mxu1 %v5230_v41  ;;  %v5219_v38 = vld [vmem:[%s9516_s27 + $0x180] sm:$0xff]  ;;  %v5082_v41 = vadd.f32 %v9615_v42, %v9632_v1  ;;  %v5080_v42 = vadd.f32 %v9606_v39, %v4984_v29  ;;  %v7395_v39 = vld [vmem:[%s9462_s23 + $0x150] sm:$0xff] }
0x168f   : > { %7878 = vmatpush3.msra.mxu0 %v5182_v45  ;;  %7916 = vmatpush3.msra.mxu1 %v5214_v2  ;;  %v5159_v45 = vadd.f32 %v9617_v43, %v9638_v12  ;;  %v5161_v2 = vmax.f32 %v5074_v17, 0.0  ;;  %v5157_v43 = vadd.f32 %v9608_v40, %v4992_v27  ;;  %v7468_v29 = vld [vmem:[%s9516_s27 + $0x5e0] sm:$0xff]  ;;  %v7450_v17 = vld [vmem:[%s9516_s27 + $0x550] sm:$0xff] }
0x1690   : > { %7879 = vmatprep.subr.mxu0 %v5197_v46  ;;  %7917 = vmatprep.subr.mxu1 %v5229_v48  ;;  %v5163_v46 = vmax.f32 %v5151_v23, 0.0  ;;  %v7398_v48 = vld [vmem:[%s9462_s23 + $0x168] sm:$0xff]  ;;  %v5166_v1 = vmax.f32 %v5082_v41, 0.0  ;;  %v5165_v40 = vmax.f32 %v5080_v42, 0.0  ;;  %v7420_v27 = vld [vmem:[%s9516_s27 + $0x460] sm:$0xff]  ;;  %v7462_v42 = vld [vmem:[%s9516_s27 + $0x5b0] sm:$0xff] }
0x1691   : > { %7880 = vmatpush3.msra.mxu0 %v5181_v49  ;;  %7918 = vmatpush3.msra.mxu1 %v5213_v50  ;;  %v7400_v49 = vld [vmem:[%s9462_s23 + $0x178] sm:$0xff]  ;;  %v5168_v12 = vmax.f32 %v5159_v45, 0.0  ;;  %v7397_v50 = vld [vmem:[%s9462_s23 + $0x160] sm:$0xff]  ;;  %v7433_v23 = vld [vmem:[%s9516_s27 + $0x4c8] sm:$0xff] }
0x1692   : > { %7881 = vmatprep.subr.mxu0 %v5196_v52  ;;  %7919 = vmatprep.subr.mxu1 %v5228_v55  ;;  %v7399_v52 = vld [vmem:[%s9462_s23 + $0x170] sm:$0xff]  ;;  %v7394_v55 = vld [vmem:[%s9462_s23 + $0x148] sm:$0xff]  ;;  %v7464_v41 = vld [vmem:[%s9516_s27 + $0x5c0] sm:$0xff] }
0x1693   : > { %7882 = vmatpush3.msra.mxu0 %v5180_v58  ;;  %7920 = vmatpush3.msra.mxu1 %v5212_v53  ;;  %v7396_v58 = vld [vmem:[%s9462_s23 + $0x158] sm:$0xff]  ;;  %v7393_v53 = vld [vmem:[%s9462_s23 + $0x140] sm:$0xff] }
0x1694   : > { %7883 = vmatprep.subr.mxu0 %v5195_v59  ;;  %7921 = vmatprep.subr.mxu1 %v5227_v60  ;;  %v5167_v59 = vmax.f32 %v5157_v43, 0.0  ;;  %v7390_v60 = vld [vmem:[%s9462_s23 + $0x128] sm:$0xff]  ;;  %v7416_v45 = vld [vmem:[%s9516_s27 + $0x440] sm:$0xff]  ;;  %v7414_v43 = vld [vmem:[%s9516_s27 + $0x430] sm:$0xff] }
0x1695   : > { %7884 = vmatpush3.msra.mxu0 %v5179_v61  ;;  %7922 = vmatpush3.msra.mxu1 %v5211_v62  ;;  %v7392_v61 = vld [vmem:[%s9462_s23 + $0x138] sm:$0xff]  ;;  %v7389_v62 = vld [vmem:[%s9462_s23 + $0x120] sm:$0xff] }
0x1696   : > { %7885 = vmatprep.subr.mxu0 %v5194_v63  ;;  %7923 = vmatprep.subr.mxu1 %v5226_v0  ;;  %v7391_v63 = vld [vmem:[%s9462_s23 + $0x130] sm:$0xff]  ;;  %v7386_v0 = vld [vmem:[%s9462_s23 + $0x108] sm:$0xff] }
0x1697   : > { %7886 = vmatpush3.msra.mxu0 %v5178_v3  ;;  %7924 = vmatpush3.msra.mxu1 %v5210_v4  ;;  %v7388_v3 = vld [vmem:[%s9462_s23 + $0x118] sm:$0xff]  ;;  %v7385_v4 = vld [vmem:[%s9462_s23 + $0x100] sm:$0xff] }
0x1698   : > { %7887 = vmatprep.subr.mxu0 %v5193_v54  ;;  %7925 = vmatprep.subr.mxu1 %v5225_v5  ;;  %v7387_v54 = vld [vmem:[%s9462_s23 + $0x110] sm:$0xff]  ;;  %v7439_v5 = vld [vmem:[%s9516_s27 + $0x4f8] sm:$0xff] }
0x1699   : > { %7888 = vmatpush3.msra.mxu0 %v5177_v6  ;;  %7926 = vmatpush3.msra.mxu1 %v5209_v7  ;;  %v7471_v6 = vld [vmem:[%s9516_s27 + $0x5f8] sm:$0xff] }
0x169a   : > { %7889 = vmatprep.subr.mxu0 %v5192_v13  ;;  %7927 = vmatprep.subr.mxu1 %v5224_v15  ;;  %v7423_v7 = vld [vmem:[%s9516_s27 + $0x478] sm:$0xff]  ;;  %v7438_v15 = vld [vmem:[%s9516_s27 + $0x4f0] sm:$0xff] }
0x169b   : > { %7890 = vmatpush3.msra.mxu0 %v5176_v8  ;;  %7928 = vmatpush3.msra.mxu1 %v5208_v56  ;;  %v7455_v13 = vld [vmem:[%s9516_s27 + $0x578] sm:$0xff]  ;;  %v7470_v8 = vld [vmem:[%s9516_s27 + $0x5f0] sm:$0xff] }
0x169c   : > { %7891 = vmatprep.subr.mxu0 %v5191_v20  ;;  %7929 = vmatprep.subr.mxu1 %v5223_v21  ;;  %v7422_v56 = vld [vmem:[%s9516_s27 + $0x470] sm:$0xff]  ;;  %v7437_v21 = vld [vmem:[%s9516_s27 + $0x4e8] sm:$0xff] }
0x169d   : > { %7892 = vmatpush3.msra.mxu0 %v5175_v22  ;;  %7930 = vmatpush3.msra.mxu1 %v5207_v25  ;;  %v7454_v20 = vld [vmem:[%s9516_s27 + $0x570] sm:$0xff]  ;;  %v7469_v22 = vld [vmem:[%s9516_s27 + $0x5e8] sm:$0xff] }
0x169e   : > { %7893 = vmatprep.subr.mxu0 %v5190_v57  ;;  %7931 = vmatprep.subr.mxu1 %v5222_v28  ;;  %v7421_v25 = vld [vmem:[%s9516_s27 + $0x468] sm:$0xff]  ;;  %v7436_v28 = vld [vmem:[%s9516_s27 + $0x4e0] sm:$0xff] }
0x169f   : > { %7894 = vmatpush3.msra.mxu0 %v5174_v30  ;;  %7932 = vmatpush3.msra.mxu1 %v5206_v10  ;;  %v7453_v57 = vld [vmem:[%s9516_s27 + $0x568] sm:$0xff]  ;;  %v7452_v30 = vld [vmem:[%s9516_s27 + $0x560] sm:$0xff]  ;;  %v7435_v10 = vld [vmem:[%s9516_s27 + $0x4d8] sm:$0xff] }
0x16a0   : > { %7895 = vmatprep.subr.mxu0 %v5189_v24  ;;  %7933 = vmatprep.subr.mxu1 %v5221_v31  ;;  %v7467_v24 = vld [vmem:[%s9516_s27 + $0x5d8] sm:$0xff] }
0x16a1   : > { %7896 = vmatpush3.msra.mxu0 %v5173_v16  ;;  %7934 = vmatpush3.msra.mxu1 %v5205_v9  ;;  %v7419_v31 = vld [vmem:[%s9516_s27 + $0x458] sm:$0xff]  ;;  %v7434_v9 = vld [vmem:[%s9516_s27 + $0x4d0] sm:$0xff] }
0x16a2   : > { %7897 = vmatprep.subr.mxu0 %v5188_v51  ;;  %7935 = vmatprep.subr.mxu1 %v5220_v34  ;;  %v7451_v16 = vld [vmem:[%s9516_s27 + $0x558] sm:$0xff]  ;;  %v7466_v51 = vld [vmem:[%s9516_s27 + $0x5d0] sm:$0xff] }
0x16a3   : > { %7898 = vmatpush3.msra.mxu0 %v5172_v32  ;;  %7936 = vmatpush3.msra.mxu1 %v5204_v36  ;;  %v7418_v34 = vld [vmem:[%s9516_s27 + $0x450] sm:$0xff]  ;;  %v7465_v32 = vld [vmem:[%s9516_s27 + $0x5c8] sm:$0xff] }
0x16a4   : > { %7899 = vmatprep.subr.mxu0 %v5187_v37  ;;  %7937 = vmatprep.subr.mxu1 %v5219_v38  ;;  %v7417_v36 = vld [vmem:[%s9516_s27 + $0x448] sm:$0xff]  ;;  %v7432_v38 = vld [vmem:[%s9516_s27 + $0x4c0] sm:$0xff] }
0x16a5   : > { %7900 = vmatpush3.msra.mxu0 %v5171_v33  ;;  %7938 = vmatpush3.msra.mxu1 %v5203_v35  ;;  %v7449_v37 = vld [vmem:[%s9516_s27 + $0x548] sm:$0xff]  ;;  %v7448_v33 = vld [vmem:[%s9516_s27 + $0x540] sm:$0xff]  ;;  %v7431_v35 = vld [vmem:[%s9516_s27 + $0x4b8] sm:$0xff] }
0x16a6   : > { %5721 = vmatmul.mubr.f32.vlgmr.msra.gmra.mxu0 %v5161_v2  ;;  %5796 = vmatmul.mubr.f32.vlgmr.msra.gmra.mxu1 %v5163_v46  ;;  %v7463_v2 = vld [vmem:[%s9516_s27 + $0x5b8] sm:$0xff] }
0x16a7   : > { %5873 = vmatprep.subr.mxu0 %v7398_v48  ;;  %5950 = vmatprep.subr.mxu1 %v7400_v49  ;;  %v7415_v46 = vld [vmem:[%s9516_s27 + $0x438] sm:$0xff]  ;;  %v7430_v49 = vld [vmem:[%s9516_s27 + $0x4b0] sm:$0xff] }
0x16a8   : > { %5725 = vmatprep.mubr.f32.mxu0 %v5166_v1  ;;  %5800 = vmatprep.mubr.f32.mxu1 %v5168_v12  ;;  %v7447_v48 = vld [vmem:[%s9516_s27 + $0x538] sm:$0xff]  ;;  %v7446_v1 = vld [vmem:[%s9516_s27 + $0x530] sm:$0xff]  ;;  %v7429_v12 = vld [vmem:[%s9516_s27 + $0x4a8] sm:$0xff] }
0x16a9   : > { %5874 = vmatpush1.msra.mxu0 %v7397_v50  ;;  %5951 = vmatpush1.msra.mxu1 %v7399_v52  ;;  %v7461_v50 = vld [vmem:[%s9516_s27 + $0x5a8] sm:$0xff] }
0x16aa   : > { %5875 = vmatprep.subr.mxu0 %v7394_v55  ;;  %5952 = vmatprep.subr.mxu1 %v7396_v58  ;;  %v7413_v52 = vld [vmem:[%s9516_s27 + $0x428] sm:$0xff]  ;;  %v7428_v58 = vld [vmem:[%s9516_s27 + $0x4a0] sm:$0xff] }
0x16ab   : > { %5876 = vmatpush1.msra.mxu0 %v7393_v53  ;;  %5953 = vmatpush1.msra.mxu1 %v7395_v39  ;;  %v7445_v55 = vld [vmem:[%s9516_s27 + $0x528] sm:$0xff]  ;;  %v7460_v53 = vld [vmem:[%s9516_s27 + $0x5a0] sm:$0xff] }
0x16ac   : > { %5726 = vmatmul.mubr.f32.gmra.mxu0 %v5165_v40  ;;  %5801 = vmatmul.mubr.f32.gmra.mxu1 %v5167_v59  ;;  %v7412_v39 = vld [vmem:[%s9516_s27 + $0x420] sm:$0xff]  ;;  %v7427_v59 = vld [vmem:[%s9516_s27 + $0x498] sm:$0xff] }
0x16ad   : > { %5877 = vmatprep.subr.mxu0 %v7390_v60  ;;  %5954 = vmatprep.subr.mxu1 %v7392_v61  ;;  %v7444_v40 = vld [vmem:[%s9516_s27 + $0x520] sm:$0xff]  ;;  %v7459_v60 = vld [vmem:[%s9516_s27 + $0x598] sm:$0xff] }
0x16ae   : > { %5878 = vmatpush1.msra.mxu0 %v7389_v62  ;;  %5955 = vmatpush1.msra.mxu1 %v7391_v63  ;;  %v7411_v61 = vld [vmem:[%s9516_s27 + $0x418] sm:$0xff]  ;;  %v7426_v63 = vld [vmem:[%s9516_s27 + $0x490] sm:$0xff] }
0x16af   : > { %5879 = vmatprep.subr.mxu0 %v7386_v0  ;;  %5956 = vmatprep.subr.mxu1 %v7388_v3  ;;  %v7443_v62 = vld [vmem:[%s9516_s27 + $0x518] sm:$0xff]  ;;  %v7458_v0 = vld [vmem:[%s9516_s27 + $0x590] sm:$0xff] }
0x16b0   : > { %5880 = vmatpush1.msra.mxu0 %v7385_v4  ;;  %5913 = vmatprep.mubr.f32.mxu0 %v8742_v47  ;;  %v7410_v3 = vld [vmem:[%s9516_s27 + $0x410] sm:$0xff] }
0x16b1   : > { %5957 = vmatpush1.msra.mxu1 %v7387_v54  ;;  %5990 = vmatprep.mubr.f32.mxu1 %v8742_v47  ;;  %v7442_v4 = vld [vmem:[%s9516_s27 + $0x510] sm:$0xff]  ;;  %v7425_v54 = vld [vmem:[%s9516_s27 + $0x488] sm:$0xff] }
0x16b2   : > { %7403 = vmatmul.mubr.msk.f32.vlgmr.msra.gmra.mxu0 %vm556_vm1, %v9484_v14  ;;  %7405 = vmatmul.mubr.msk.f32.vlgmr.msra.gmra.mxu1 %vm556_vm1, %v9484_v14 }
0x16b3   : > { %5919 = vmatprep.mubr.f32.mxu0 %v8742_v47  ;;  %5996 = vmatprep.mubr.f32.mxu1 %v8742_v47 }
0x16b4   : > { %7945 = vmatprep.subr.mxu0 %v7439_v5  ;;  %7983 = vmatprep.subr.mxu1 %v7471_v6  ;;  %v7457_v5 = vld [vmem:[%s9516_s27 + $0x588] sm:$0xff] }
0x16b5   : > { %7946 = vmatpush3.msra.mxu0 %v7423_v7  ;;  %7984 = vmatpush3.msra.mxu1 %v7455_v13  ;;  %v7409_v6 = vld [vmem:[%s9516_s27 + $0x408] sm:$0xff]  ;;  %v7424_v13 = vld [vmem:[%s9516_s27 + $0x480] sm:$0xff] }
0x16b6   : > { %7404 = vmatmul.mubr.msk.f32.gmra.mxu0 %vm556_vm1, %v9496_v26  ;;  %7406 = vmatmul.mubr.msk.f32.gmra.mxu1 %vm556_vm1, %v9496_v26  ;;  %v7441_v7 = vld [vmem:[%s9516_s27 + $0x508] sm:$0xff] }
0x16b7   : > { %7947 = vmatprep.subr.mxu0 %v7438_v15  ;;  %7985 = vmatprep.subr.mxu1 %v7470_v8  ;;  %v7456_v15 = vld [vmem:[%s9516_s27 + $0x580] sm:$0xff] }
0x16b8   : > { %7948 = vmatpush3.msra.mxu0 %v7422_v56  ;;  %7986 = vmatpush3.msra.mxu1 %v7454_v20  ;;  %v7408_v8 = vld [vmem:[%s9516_s27 + $0x400] sm:$0xff]  ;;  %v7487_v20 = vld [vmem:[%s9462_s23 + $0x1e8] sm:$0xff] }
0x16b9   : > { %7949 = vmatprep.subr.mxu0 %v7437_v21  ;;  %7987 = vmatprep.subr.mxu1 %v7469_v22  ;;  %v7440_v56 = vld [vmem:[%s9516_s27 + $0x500] sm:$0xff]  ;;  %v7489_v21 = vld [vmem:[%s9462_s23 + $0x1f8] sm:$0xff] }
0x16ba   : > { %7950 = vmatpush3.msra.mxu0 %v7421_v25  ;;  %7988 = vmatpush3.msra.mxu1 %v7453_v57 }
0x16bb   : > { %7951 = vmatprep.subr.mxu0 %v7436_v28  ;;  %7989 = vmatprep.subr.mxu1 %v7468_v29 }
0x16bc   : > { %7952 = vmatpush3.msra.mxu0 %v7420_v27  ;;  %7990 = vmatpush3.msra.mxu1 %v7452_v30 }
0x16bd   : > { %7953 = vmatprep.subr.mxu0 %v7435_v10  ;;  %7991 = vmatprep.subr.mxu1 %v7467_v24 }
0x16be   : > { %7954 = vmatpush3.msra.mxu0 %v7419_v31  ;;  %7992 = vmatpush3.msra.mxu1 %v7451_v16 }
0x16bf   : > { %7955 = vmatprep.subr.mxu0 %v7434_v9  ;;  %7993 = vmatprep.subr.mxu1 %v7466_v51 }
0x16c0   : > { %7956 = vmatpush3.msra.mxu0 %v7418_v34  ;;  %7994 = vmatpush3.msra.mxu1 %v7450_v17 }
0x16c1   : > { %7957 = vmatprep.subr.mxu0 %v7433_v23  ;;  %7995 = vmatprep.subr.mxu1 %v7465_v32 }
0x16c2   : > { %7958 = vmatpush3.msra.mxu0 %v7417_v36  ;;  %7996 = vmatpush3.msra.mxu1 %v7449_v37 }
0x16c3   : > { %7959 = vmatprep.subr.mxu0 %v7432_v38  ;;  %7997 = vmatprep.subr.mxu1 %v7464_v41 }
0x16c4   : > { %7960 = vmatpush3.msra.mxu0 %v7416_v45  ;;  %7998 = vmatpush3.msra.mxu1 %v7448_v33 }
0x16c5   : > { %7961 = vmatprep.subr.mxu0 %v7431_v35  ;;  %7999 = vmatprep.subr.mxu1 %v7463_v2  ;;  %v7402_v2 = vld [vmem:[%s9604_s16 + $0x8] sm:$0xf] }
0x16c6   : > { %7962 = vmatpush3.msra.mxu0 %v7415_v46  ;;  %8000 = vmatpush3.msra.mxu1 %v7447_v48 }
0x16c7   : > { %7963 = vmatprep.subr.mxu0 %v7430_v49  ;;  %8001 = vmatprep.subr.mxu1 %v7462_v42 }
0x16c8   : > { %7964 = vmatpush3.msra.mxu0 %v7414_v43  ;;  %8002 = vmatpush3.msra.mxu1 %v7446_v1  ;;  %v5832_v43 = vrot.slane %v7402_v2, %v9611_v19  ;;  %v5840_v1 = vrot.slane %v7402_v2, %v9613_v18 }
0x16c9   : > { %7965 = vmatprep.subr.mxu0 %v7429_v12  ;;  %8003 = vmatprep.subr.mxu1 %v7461_v50  ;;  %v5836_v50 = vrot.slane %v7402_v2, %v9619_v44 }
0x16ca   : > { %7966 = vmatpush3.msra.mxu0 %v7413_v52  ;;  %8004 = vmatpush3.msra.mxu1 %v7445_v55  ;;  %v5844_v52 = vrot.slane %v7402_v2, %v9621_v11  ;;  %v7543_v2 = vld [vmem:[%s9516_s27 + $0x770] sm:$0xff] }
0x16cb   : > { %7967 = vmatprep.subr.mxu0 %v7428_v58  ;;  %8005 = vmatprep.subr.mxu1 %v7460_v53 }
0x16cc   : > { %7968 = vmatpush3.msra.mxu0 %v7412_v39  ;;  %8006 = vmatpush3.msra.mxu1 %v7444_v40 }
0x16cd   : > { %7969 = vmatprep.subr.mxu0 %v7427_v59  ;;  %8007 = vmatprep.subr.mxu1 %v7459_v60 }
0x16ce   : > { %7970 = vmatpush3.msra.mxu0 %v7411_v61  ;;  %8008 = vmatpush3.msra.mxu1 %v7443_v62 }
0x16cf   : > { %7971 = vmatprep.subr.mxu0 %v7426_v63  ;;  %8009 = vmatprep.subr.mxu1 %v7458_v0 }
0x16d0   : > { %7972 = vmatpush3.msra.mxu0 %v7410_v3  ;;  %8010 = vmatpush3.msra.mxu1 %v7442_v4 }
0x16d1   : > { %7973 = vmatprep.subr.mxu0 %v7425_v54  ;;  %8011 = vmatprep.subr.mxu1 %v7457_v5 }
0x16d2   : > { %7974 = vmatpush3.msra.mxu0 %v7409_v6  ;;  %8012 = vmatpush3.msra.mxu1 %v7441_v7 }
0x16d3   : > { %7975 = vmatprep.subr.mxu0 %v7424_v13  ;;  %8013 = vmatprep.subr.mxu1 %v7456_v15  ;;  %v7486_v15 = vld [vmem:[%s9462_s23 + $0x1e0] sm:$0xff] }
0x16d4   : > { %7976 = vmatpush3.msra.mxu0 %v7408_v8  ;;  %8014 = vmatpush3.msra.mxu1 %v7440_v56  ;;  %v7488_v8 = vld [vmem:[%s9462_s23 + $0x1f0] sm:$0xff] }
0x16d5   : > { %6296 = vmatprep.subr.mxu0 %v7487_v20  ;;  %6373 = vmatprep.subr.mxu1 %v7489_v21 }
0x1743   : > { %v7825_v22 = vpop.f32.mrf.mxu0  ;;  %v7863_v25 = vpop.f32.mrf.mxu1 }
0x1745   : > { %v7826_v57 = vpop.f32.mrf.mxu0  ;;  %v7864_v28 = vpop.f32.mrf.mxu1 }
0x1746   : > { %v7827_v29 = vadd.f32 %v7826_v57, %v7825_v22  ;;  %v7865_v27 = vadd.f32 %v7864_v28, %v7863_v25  ;;  %v7483_v22 = vld [vmem:[%s9462_s23 + $0x1c8] sm:$0xff]  ;;  %v7485_v25 = vld [vmem:[%s9462_s23 + $0x1d8] sm:$0xff] }
0x1748   : > { %v5648_v30 = vadd.f32 %v7865_v27, %v7827_v29  ;;  %v7482_v29 = vld [vmem:[%s9462_s23 + $0x1c0] sm:$0xff]  ;;  %v7484_v27 = vld [vmem:[%s9462_s23 + $0x1d0] sm:$0xff] }
0x1749   : > { %v7828_v10 = vpop.f32.mrf.mxu0  ;;  %v7866_v24 = vpop.f32.mrf.mxu1 }
0x174b   : > { %v7829_v31 = vpop.f32.mrf.mxu0  ;;  %v7867_v16 = vpop.f32.mrf.mxu1 }
0x174c   : > { %v7830_v9 = vadd.f32 %v7829_v31, %v7828_v10  ;;  %v7868_v51 = vadd.f32 %v7867_v16, %v7866_v24  ;;  %v7479_v24 = vld [vmem:[%s9462_s23 + $0x1a8] sm:$0xff]  ;;  %v7481_v31 = vld [vmem:[%s9462_s23 + $0x1b8] sm:$0xff]  ;;  %v7478_v16 = vld [vmem:[%s9462_s23 + $0x1a0] sm:$0xff] }
0x174e   : > { %v5653_v34 = vadd.f32 %v7868_v51, %v7830_v9  ;;  %v7480_v9 = vld [vmem:[%s9462_s23 + $0x1b0] sm:$0xff]  ;;  %v7475_v51 = vld [vmem:[%s9462_s23 + $0x188] sm:$0xff] }
0x1766   : > { %v7901_v17 = vpop.f32.mrf.mxu0  ;;  %v7939_v23 = vpop.f32.mrf.mxu1 }
0x1768   : > { %v7902_v32 = vpop.f32.mrf.mxu0  ;;  %v7940_v36 = vpop.f32.mrf.mxu1 }
0x1769   : > { %v7903_v37 = vadd.f32 %v7902_v32, %v7901_v17  ;;  %v7941_v38 = vadd.f32 %v7940_v36, %v7939_v23  ;;  %v7474_v17 = vld [vmem:[%s9462_s23 + $0x180] sm:$0xff]  ;;  %v7476_v23 = vld [vmem:[%s9462_s23 + $0x190] sm:$0xff]  ;;  %v7528_v32 = vld [vmem:[%s9516_s27 + $0x6f8] sm:$0xff] }
0x176a   : > { %v7560_v36 = vld [vmem:[%s9516_s27 + $0x7f8] sm:$0xff] }
0x176b   : > { %v5723_v41 = vadd.f32 %v7903_v37, %v5648_v30  ;;  %v7512_v37 = vld [vmem:[%s9516_s27 + $0x678] sm:$0xff] }
0x176c   : > { %v7904_v45 = vpop.f32.mrf.mxu0  ;;  %v7942_v33 = vpop.f32.mrf.mxu1 }
0x176d   : > { %v9808_v35 = vadd.f32 %v7941_v38, %v5723_v41  ;;  %v7544_v38 = vld [vmem:[%s9516_s27 + $0x778] sm:$0xff]  ;;  %v7527_v41 = vld [vmem:[%s9516_s27 + $0x6f0] sm:$0xff] }
0x176e   : > { %v7905_v46 = vpop.f32.mrf.mxu0  ;;  %v7943_v48 = vpop.f32.mrf.mxu1 }
0x176f   : > { %v7906_v49 = vadd.f32 %v7905_v46, %v7904_v45  ;;  %v7944_v42 = vadd.f32 %v7943_v48, %v7942_v33  ;;  %v7559_v45 = vld [vmem:[%s9516_s27 + $0x7f0] sm:$0xff]  ;;  %v7558_v46 = vld [vmem:[%s9516_s27 + $0x7e8] sm:$0xff] }
0x1770   : > { %v7511_v33 = vld [vmem:[%s9516_s27 + $0x670] sm:$0xff]  ;;  %v7510_v48 = vld [vmem:[%s9516_s27 + $0x668] sm:$0xff] }
0x1771   : > { %v5728_v12 = vadd.f32 %v7906_v49, %v5653_v34  ;;  %v7477_v34 = vld [vmem:[%s9462_s23 + $0x198] sm:$0xff]  ;;  %v7542_v49 = vld [vmem:[%s9516_s27 + $0x768] sm:$0xff] }
0x1772   : > { %v5915_v55 = vpop.f32.mrf.mxu0  ;;  %v5992_v58 = vpop.f32.mrf.mxu1 }
0x1773   : > { %v9815_v53 = vadd.f32 %v7944_v42, %v5728_v12  ;;  %v5916_v39 = vadd.f32 %v5915_v55, %v5832_v43  ;;  %v5993_v40 = vadd.f32 %v5992_v58, %v5840_v1  ;;  %v7525_v42 = vld [vmem:[%s9516_s27 + $0x6e0] sm:$0xff]  ;;  %v7508_v55 = vld [vmem:[%s9516_s27 + $0x658] sm:$0xff] }
0x1774   : > { %v5917_v59 = vpop.f32.mrf.mxu0  ;;  %v5994_v60 = vpop.f32.mrf.mxu1  ;;  %v7541_v12 = vld [vmem:[%s9516_s27 + $0x760] sm:$0xff]  ;;  %v7540_v58 = vld [vmem:[%s9516_s27 + $0x758] sm:$0xff] }
0x1775   : > { %v5918_v61 = vadd.f32 %v5917_v59, %v5836_v50  ;;  %v5995_v62 = vadd.f32 %v5994_v60, %v5844_v52  ;;  %v6003_v54 = vmax.f32 %v5916_v39, 0.0  ;;  %v6005_v5 = vmax.f32 %v5993_v40, 0.0  ;;  %v7523_v39 = vld [vmem:[%s9516_s27 + $0x6d0] sm:$0xff] }
0x1776   : > { %v5921_v63 = vpop.f32.mrf.mxu0  ;;  %v5998_v0 = vpop.f32.mrf.mxu1  ;;  %v7555_v40 = vld [vmem:[%s9516_s27 + $0x7d0] sm:$0xff] }
0x1777   : > { %v6004_v3 = vmax.f32 %v5918_v61, 0.0  ;;  %v6006_v4 = vmax.f32 %v5995_v62, 0.0  ;;  %v5922_v6 = vadd.f32 %v5921_v63, %v5832_v43  ;;  %v5999_v56 = vadd.f32 %v5998_v0, %v5840_v1  ;;  %v7557_v43 = vld [vmem:[%s9516_s27 + $0x7e0] sm:$0xff]  ;;  %v7507_v59 = vld [vmem:[%s9516_s27 + $0x650] sm:$0xff]  ;;  %v7522_v61 = vld [vmem:[%s9516_s27 + $0x6c8] sm:$0xff] }
0x1778   : > { %v5923_v7 = vpop.f32.mrf.mxu0  ;;  %v6000_v13 = vpop.f32.mrf.mxu1  ;;  %v7509_v1 = vld [vmem:[%s9516_s27 + $0x660] sm:$0xff]  ;;  %v7539_v60 = vld [vmem:[%s9516_s27 + $0x750] sm:$0xff]  ;;  %v7554_v62 = vld [vmem:[%s9516_s27 + $0x7c8] sm:$0xff] }
0x1779   : > { %v5924_v20 = vadd.f32 %v5923_v7, %v5836_v50  ;;  %v6001_v21 = vadd.f32 %v6000_v13, %v5844_v52  ;;  %6141 = vmatprep.mubr.f32.mxu0 %v6004_v3  ;;  %6216 = vmatprep.mubr.f32.mxu1 %v6006_v4  ;;  %v6007_v30 = vmax.f32 %v5922_v6, 0.0  ;;  %v6009_v10 = vmax.f32 %v5999_v56, 0.0  ;;  %v7524_v50 = vld [vmem:[%s9516_s27 + $0x6d8] sm:$0xff]  ;;  %v7506_v63 = vld [vmem:[%s9516_s27 + $0x648] sm:$0xff]  ;;  %v7521_v3 = vld [vmem:[%s9516_s27 + $0x6c0] sm:$0xff] }
0x177a   : > { %6142 = vmatmul.mubr.f32.vlgmr.msra.gmra.mxu0 %v6003_v54  ;;  %6217 = vmatmul.mubr.f32.vlgmr.msra.gmra.mxu1 %v6005_v5  ;;  %v7556_v52 = vld [vmem:[%s9516_s27 + $0x7d8] sm:$0xff]  ;;  %v7538_v0 = vld [vmem:[%s9516_s27 + $0x748] sm:$0xff]  ;;  %v7553_v4 = vld [vmem:[%s9516_s27 + $0x7c0] sm:$0xff] }
0x177b   : > { %v6008_v57 = vmax.f32 %v5924_v20, 0.0  ;;  %v6010_v28 = vmax.f32 %v6001_v21, 0.0  ;;  %6297 = vmatpush1.msra.mxu0 %v7486_v15  ;;  %6374 = vmatpush1.msra.mxu1 %v7488_v8  ;;  %v7505_v54 = vld [vmem:[%s9516_s27 + $0x640] sm:$0xff]  ;;  %v7520_v6 = vld [vmem:[%s9516_s27 + $0x6b8] sm:$0xff]  ;;  %v7519_v8 = vld [vmem:[%s9516_s27 + $0x6b0] sm:$0xff] }
0x177c   : > { %6298 = vmatprep.subr.mxu0 %v7483_v22  ;;  %6375 = vmatprep.subr.mxu1 %v7485_v25  ;;  %v7537_v5 = vld [vmem:[%s9516_s27 + $0x740] sm:$0xff]  ;;  %v7552_v7 = vld [vmem:[%s9516_s27 + $0x7b8] sm:$0xff]  ;;  %v7551_v56 = vld [vmem:[%s9516_s27 + $0x7b0] sm:$0xff] }
0x177d   : > { %6146 = vmatprep.mubr.f32.mxu0 %v6008_v57  ;;  %6221 = vmatprep.mubr.f32.mxu1 %v6010_v28  ;;  %v7504_v13 = vld [vmem:[%s9516_s27 + $0x638] sm:$0xff]  ;;  %v7503_v20 = vld [vmem:[%s9516_s27 + $0x630] sm:$0xff]  ;;  %v7518_v22 = vld [vmem:[%s9516_s27 + $0x6a8] sm:$0xff] }
0x177e   : > { %6299 = vmatpush1.msra.mxu0 %v7482_v29  ;;  %6376 = vmatpush1.msra.mxu1 %v7484_v27  ;;  %v7536_v15 = vld [vmem:[%s9516_s27 + $0x738] sm:$0xff]  ;;  %v7535_v21 = vld [vmem:[%s9516_s27 + $0x730] sm:$0xff]  ;;  %v7550_v25 = vld [vmem:[%s9516_s27 + $0x7a8] sm:$0xff] }
0x177f   : > { %6147 = vmatmul.mubr.f32.gmra.mxu0 %v6007_v30  ;;  %6222 = vmatmul.mubr.f32.gmra.mxu1 %v6009_v10  ;;  %v7502_v57 = vld [vmem:[%s9516_s27 + $0x628] sm:$0xff]  ;;  %v7517_v29 = vld [vmem:[%s9516_s27 + $0x6a0] sm:$0xff] }
0x1780   : > { %6300 = vmatprep.subr.mxu0 %v7479_v24  ;;  %6377 = vmatprep.subr.mxu1 %v7481_v31  ;;  %v7534_v28 = vld [vmem:[%s9516_s27 + $0x728] sm:$0xff]  ;;  %v7549_v27 = vld [vmem:[%s9516_s27 + $0x7a0] sm:$0xff]  ;;  %v7516_v24 = vld [vmem:[%s9516_s27 + $0x698] sm:$0xff] }
0x1781   : > { %6301 = vmatpush1.msra.mxu0 %v7478_v16  ;;  %6378 = vmatpush1.msra.mxu1 %v7480_v9  ;;  %v7501_v30 = vld [vmem:[%s9516_s27 + $0x620] sm:$0xff]  ;;  %v7548_v31 = vld [vmem:[%s9516_s27 + $0x798] sm:$0xff] }
0x1782   : > { %6302 = vmatprep.subr.mxu0 %v7475_v51  ;;  %6379 = vmatprep.subr.mxu1 %v7477_v34  ;;  %v7533_v10 = vld [vmem:[%s9516_s27 + $0x720] sm:$0xff]  ;;  %v7500_v16 = vld [vmem:[%s9516_s27 + $0x618] sm:$0xff]  ;;  %v7515_v51 = vld [vmem:[%s9516_s27 + $0x690] sm:$0xff] }
0x1783   : > { %6303 = vmatpush1.msra.mxu0 %v7474_v17  ;;  %6336 = vmatprep.mubr.f32.mxu0 %v8742_v47  ;;  %v7532_v9 = vld [vmem:[%s9516_s27 + $0x718] sm:$0xff]  ;;  %v7547_v34 = vld [vmem:[%s9516_s27 + $0x790] sm:$0xff] }
0x1784   : > { %6380 = vmatpush1.msra.mxu1 %v7476_v23  ;;  %6413 = vmatprep.mubr.f32.mxu1 %v8742_v47  ;;  %v7499_v17 = vld [vmem:[%s9516_s27 + $0x610] sm:$0xff] }
0x1785   : > { %7492 = vmatmul.mubr.msk.f32.vlgmr.msra.gmra.mxu0 %vm556_vm1, %v9484_v14  ;;  %7494 = vmatmul.mubr.msk.f32.vlgmr.msra.gmra.mxu1 %vm556_vm1, %v9484_v14  ;;  %v7531_v23 = vld [vmem:[%s9516_s27 + $0x710] sm:$0xff] }
0x1786   : > { %6342 = vmatprep.mubr.f32.mxu0 %v8742_v47  ;;  %6419 = vmatprep.mubr.f32.mxu1 %v8742_v47  ;;  %v7526_v47 = vld [vmem:[%s9516_s27 + $0x6e8] sm:$0xff] }
0x1787   : > { %8021 = vmatprep.subr.mxu0 %v7528_v32  ;;  %8059 = vmatprep.subr.mxu1 %v7560_v36  ;;  %v7514_v32 = vld [vmem:[%s9516_s27 + $0x688] sm:$0xff] }
0x1788   : > { %8022 = vmatpush3.msra.mxu0 %v7512_v37  ;;  %8060 = vmatpush3.msra.mxu1 %v7544_v38  ;;  %v7546_v36 = vld [vmem:[%s9516_s27 + $0x788] sm:$0xff] }
0x1789   : > { %7493 = vmatmul.mubr.msk.f32.gmra.mxu0 %vm556_vm1, %v9496_v26  ;;  %7495 = vmatmul.mubr.msk.f32.gmra.mxu1 %vm556_vm1, %v9496_v26  ;;  %v7498_v37 = vld [vmem:[%s9516_s27 + $0x608] sm:$0xff] }
0x178a   : > { %8023 = vmatprep.subr.mxu0 %v7527_v41  ;;  %8061 = vmatprep.subr.mxu1 %v7559_v45  ;;  %v7530_v38 = vld [vmem:[%s9516_s27 + $0x708] sm:$0xff]  ;;  %v7513_v41 = vld [vmem:[%s9516_s27 + $0x680] sm:$0xff] }
0x178b   : > { %8024 = vmatpush3.msra.mxu0 %v7511_v33  ;;  %8062 = vmatpush3.msra.mxu1 %v7543_v2  ;;  %v7545_v45 = vld [vmem:[%s9516_s27 + $0x780] sm:$0xff] }
0x178c   : > { %8025 = vmatprep.subr.mxu0 %v7526_v47  ;;  %8063 = vmatprep.subr.mxu1 %v7558_v46  ;;  %v7497_v33 = vld [vmem:[%s9516_s27 + $0x600] sm:$0xff] }
0x178d   : > { %8026 = vmatpush3.msra.mxu0 %v7510_v48  ;;  %8064 = vmatpush3.msra.mxu1 %v7542_v49  ;;  %v7529_v2 = vld [vmem:[%s9516_s27 + $0x700] sm:$0xff] }
0x178e   : > { %8027 = vmatprep.subr.mxu0 %v7525_v42  ;;  %8065 = vmatprep.subr.mxu1 %v7557_v43 }
0x178f   : > { %8028 = vmatpush3.msra.mxu0 %v7509_v1  ;;  %8066 = vmatpush3.msra.mxu1 %v7541_v12 }
0x1790   : > { %8029 = vmatprep.subr.mxu0 %v7524_v50  ;;  %8067 = vmatprep.subr.mxu1 %v7556_v52  ;;  %v7491_v52 = vld [vmem:[%s9604_s16 + $0xc] sm:$0xf] }
0x1791   : > { %8030 = vmatpush3.msra.mxu0 %v7508_v55  ;;  %8068 = vmatpush3.msra.mxu1 %v7540_v58 }
0x1792   : > { %8031 = vmatprep.subr.mxu0 %v7523_v39  ;;  %8069 = vmatprep.subr.mxu1 %v7555_v40 }
0x1793   : > { %8032 = vmatpush3.msra.mxu0 %v7507_v59  ;;  %8070 = vmatpush3.msra.mxu1 %v7539_v60  ;;  %v6255_v60 = vrot.slane %v7491_v52, %v9611_v19 }
0x1794   : > { %8033 = vmatprep.subr.mxu0 %v7522_v61  ;;  %8071 = vmatprep.subr.mxu1 %v7554_v62  ;;  %v6263_v61 = vrot.slane %v7491_v52, %v9613_v18 }
0x1795   : > { %8034 = vmatpush3.msra.mxu0 %v7506_v63  ;;  %8072 = vmatpush3.msra.mxu1 %v7538_v0  ;;  %v6259_v63 = vrot.slane %v7491_v52, %v9619_v44  ;;  %v6267_v0 = vrot.slane %v7491_v52, %v9621_v11 }
0x1796   : > { %8035 = vmatprep.subr.mxu0 %v7521_v3  ;;  %8073 = vmatprep.subr.mxu1 %v7553_v4 }
0x1797   : > { %8036 = vmatpush3.msra.mxu0 %v7505_v54  ;;  %8074 = vmatpush3.msra.mxu1 %v7537_v5 }
0x1798   : > { %8037 = vmatprep.subr.mxu0 %v7520_v6  ;;  %8075 = vmatprep.subr.mxu1 %v7552_v7 }
0x1799   : > { %8038 = vmatpush3.msra.mxu0 %v7504_v13  ;;  %8076 = vmatpush3.msra.mxu1 %v7536_v15 }
0x179a   : > { %8039 = vmatprep.subr.mxu0 %v7519_v8  ;;  %8077 = vmatprep.subr.mxu1 %v7551_v56 }
0x179b   : > { %8040 = vmatpush3.msra.mxu0 %v7503_v20  ;;  %8078 = vmatpush3.msra.mxu1 %v7535_v21 }
0x179c   : > { %8041 = vmatprep.subr.mxu0 %v7518_v22  ;;  %8079 = vmatprep.subr.mxu1 %v7550_v25 }
0x179d   : > { %8042 = vmatpush3.msra.mxu0 %v7502_v57  ;;  %8080 = vmatpush3.msra.mxu1 %v7534_v28 }
0x179e   : > { %8043 = vmatprep.subr.mxu0 %v7517_v29  ;;  %8081 = vmatprep.subr.mxu1 %v7549_v27 }
0x179f   : > { %8044 = vmatpush3.msra.mxu0 %v7501_v30  ;;  %8082 = vmatpush3.msra.mxu1 %v7533_v10 }
0x17a0   : > { %8045 = vmatprep.subr.mxu0 %v7516_v24  ;;  %8083 = vmatprep.subr.mxu1 %v7548_v31 }
0x17a1   : > { %8046 = vmatpush3.msra.mxu0 %v7500_v16  ;;  %8084 = vmatpush3.msra.mxu1 %v7532_v9 }
0x17a2   : > { %8047 = vmatprep.subr.mxu0 %v7515_v51  ;;  %8085 = vmatprep.subr.mxu1 %v7547_v34 }
0x17a3   : > { %8048 = vmatpush3.msra.mxu0 %v7499_v17  ;;  %8086 = vmatpush3.msra.mxu1 %v7531_v23 }
0x17a4   : > { %8049 = vmatprep.subr.mxu0 %v7514_v32  ;;  %8087 = vmatprep.subr.mxu1 %v7546_v36 }
0x17a5   : > { %8050 = vmatpush3.msra.mxu0 %v7498_v37  ;;  %8088 = vmatpush3.msra.mxu1 %v7530_v38  ;;  %v7561_v37 = vld [vmem:[%s6652_s26] ss:$0 sm:$0xff] }
0x17a6   : > { %8051 = vmatprep.subr.mxu0 %v7513_v41  ;;  %8089 = vmatprep.subr.mxu1 %v7545_v45 }
0x17a7   : > { %8052 = vmatpush3.msra.mxu0 %v7497_v33  ;;  %8090 = vmatpush3.msra.mxu1 %v7529_v2 }
0x183a   : > { %v7977_v47 = vpop.f32.mrf.mxu0  ;;  %v8015_v46 = vpop.f32.mrf.mxu1 }
0x183c   : > { %v7978_v48 = vpop.f32.mrf.mxu0  ;;  %v8016_v49 = vpop.f32.mrf.mxu1 }
0x183d   : > { %v7979_v42 = vadd.f32 %v7978_v48, %v7977_v47  ;;  %v8017_v43 = vadd.f32 %v8016_v49, %v8015_v46 }
0x183f   : > { %v6219_v1 = vadd.f32 %v8017_v43, %v7979_v42  ;;  %v7980_v12 = vpop.f32.mrf.mxu0  ;;  %v8018_v50 = vpop.f32.mrf.mxu1 }
0x1841   : > { %v6227_v55 = vadd.f32 %v6219_v1, %v9808_v35  ;;  %v7981_v58 = vpop.f32.mrf.mxu0  ;;  %v8019_v39 = vpop.f32.mrf.mxu1 }
0x1842   : > { %v7982_v40 = vadd.f32 %v7981_v58, %v7980_v12  ;;  %v8020_v59 = vadd.f32 %v8019_v39, %v8018_v50 }
0x1844   : > { %v6224_v62 = vadd.f32 %v8020_v59, %v7982_v40 }
0x1845   : > { %v6338_v3 = vpop.f32.mrf.mxu0  ;;  %v6415_v4 = vpop.f32.mrf.mxu1 }
0x1846   : > { %v6228_v54 = vadd.f32 %v6224_v62, %v9815_v53  ;;  %v6339_v5 = vadd.f32 %v6338_v3, %v6255_v60  ;;  %v6416_v6 = vadd.f32 %v6415_v4, %v6263_v61  ;;  %v7564_v4 = vld [vmem:[%s9219_s22 + $0x2] ss:$0 sm:$0xff] }
0x1847   : > { %v6340_v35 = vpop.f32.mrf.mxu0  ;;  %v6417_v7 = vpop.f32.mrf.mxu1 }
0x1848   : > { %v6341_v13 = vadd.f32 %v6340_v35, %v6259_v63  ;;  %v6418_v15 = vadd.f32 %v6417_v7, %v6267_v0  ;;  %v6426_v18 = vmax.f32 %v6339_v5, 0.0  ;;  %v6428_v21 = vmax.f32 %v6416_v6, 0.0  ;;  %v7565_v5 = vld [vmem:[%s9226_s18 + $0x2] ss:$0 sm:$0xff] }
0x1849   : > { %v6344_v8 = vpop.f32.mrf.mxu0  ;;  %v6421_v56 = vpop.f32.mrf.mxu1 }
0x184a   : > { %v6427_v19 = vmax.f32 %v6341_v13, 0.0  ;;  %v6429_v20 = vmax.f32 %v6418_v15, 0.0  ;;  %v6345_v22 = vadd.f32 %v6344_v8, %v6255_v60  ;;  %v6422_v44 = vadd.f32 %v6421_v56, %v6263_v61 }
0x184b   : > { %v6346_v25 = vpop.f32.mrf.mxu0  ;;  %v6423_v11 = vpop.f32.mrf.mxu1 }
0x184c   : > { %v6347_v57 = vadd.f32 %v6346_v25, %v6259_v63  ;;  %v6424_v28 = vadd.f32 %v6423_v11, %v6267_v0  ;;  %6564 = vmatprep.mubr.f32.mxu0 %v6427_v19  ;;  %6639 = vmatprep.mubr.f32.mxu1 %v6429_v20  ;;  %v6430_v27 = vmax.f32 %v6345_v22, 0.0  ;;  %v6432_v30 = vmax.f32 %v6422_v44, 0.0 }
0x184d   : > { %6565 = vmatmul.mubr.f32.vlgmr.msra.gmra.mxu0 %v6426_v18  ;;  %6640 = vmatmul.mubr.f32.vlgmr.msra.gmra.mxu1 %v6428_v21 }
0x184e   : > { %v6431_v53 = vmax.f32 %v6347_v57, 0.0  ;;  %v6433_v29 = vmax.f32 %v6424_v28, 0.0 }
0x1850   : > { %6569 = vmatprep.mubr.f32.mxu0 %v6431_v53  ;;  %6644 = vmatprep.mubr.f32.mxu1 %v6433_v29 }
0x1851   : > { %6570 = vmatmul.mubr.f32.gmra.mxu0 %v6430_v27  ;;  %6645 = vmatmul.mubr.f32.gmra.mxu1 %v6432_v30 }
0x190d   : > { %v8053_v10 = vpop.f32.mrf.mxu0  ;;  %v8091_v24 = vpop.f32.mrf.mxu1 }
0x190f   : > { %v8054_v31 = vpop.f32.mrf.mxu0  ;;  %v8092_v16 = vpop.f32.mrf.mxu1 }
0x1910   : > { %v8055_v9 = vadd.f32 %v8054_v31, %v8053_v10  ;;  %v8093_v51 = vadd.f32 %v8092_v16, %v8091_v24 }
0x1911   : > { %v8056_v34 = vpop.f32.mrf.mxu0  ;;  %v8094_v17 = vpop.f32.mrf.mxu1 }
0x1912   : > { %v6642_v23 = vadd.f32 %v8093_v51, %v8055_v9 }
0x1913   : > { %v8057_v32 = vpop.f32.mrf.mxu0  ;;  %v8095_v36 = vpop.f32.mrf.mxu1 }
0x1914   : > { %v6650_v38 = vadd.f32 %v6642_v23, %v6227_v55  ;;  %v8058_v41 = vadd.f32 %v8057_v32, %v8056_v34  ;;  %v8096_v45 = vadd.f32 %v8095_v36, %v8094_v17 }
0x1916   : > { %v6647_v33 = vadd.f32 %v8096_v45, %v8058_v41  ;;  %v6660_v2 = vadd.f32 %v7561_v37, %v6650_v38 }
0x1918   : > { %v6651_v47 = vadd.f32 %v6647_v33, %v6228_v54  ;;  %v6662_v46 = vadd.f32 %v6660_v2, %v9484_v14 }
0x191a   : > { %v6669_v48 = vsel %vm556_vm1, %v6662_v46, 0.0  ;;  %v6661_v49 = vadd.f32 %v7561_v37, %v6651_v47 }
0x191b   : > { %6670 = vadd.xlane.f32.xlu0 %v6669_v48 }
0x191c   : > { %v6663_v42 = vadd.f32 %v6661_v49, %v9496_v26 }
0x191e   : > { %v6672_v43 = vsel %vm556_vm1, %v6663_v42, 0.0 }
0x191f   : > { %6673 = vadd.xlane.f32.xlu1 %v6672_v43 }
0x19a4   : > { %v6671_v1 = vpop.xlane.xlu0 %6670 }
0x19a5   : > { %v6675_v12 = vmul.f32 0.03125, %v6671_v1 }
0x19a7   : > { %v6677_v50 = vsub.f32 %v6662_v46, %v6675_v12 }
0x19a8   : > { %v6674_v52 = vpop.xlane.xlu1 %6673 }
0x19a9   : > { %v6676_v55 = vmul.f32 0.03125, %v6674_v52  ;;  %v6679_v58 = vmul.f32 %v6677_v50, %v6677_v50 }
0x19ab   : > { %v6678_v39 = vsub.f32 %v6663_v42, %v6676_v55  ;;  %v6681_v40 = vsel %vm556_vm1, %v6679_v58, 0.0 }
0x19ac   : > { %6682 = vadd.xlane.f32.xlu0 %v6681_v40 }
0x19ad   : > { %v6680_v14 = vmul.f32 %v6678_v39, %v6678_v39 }
0x19af   : > { %v6684_v59 = vsel %vm556_vm1, %v6680_v14, 0.0 }
0x19b0   : > { %6685 = vadd.xlane.f32.xlu1 %v6684_v59 }
0x1a35   : > { %v6683_v26 = vpop.xlane.xlu0 %6682 }
0x1a36   : > { %v6687_v60 = vmul.f32 0.03125, %v6683_v26 }
0x1a38   : > { %v6689_v61 = vadd.f32 1e-05, %v6687_v60 }
0x1a39   : > { %v6686_v62 = vpop.xlane.xlu1 %6685 }
0x1a3a   : > { %8644 = vrsqrt.f32 %v6689_v61  ;;  %v6688_v63 = vmul.f32 0.03125, %v6686_v62 }
0x1a3c   : > { %v6690_v0 = vadd.f32 1e-05, %v6688_v63 }
0x1a3e   : > { %8646 = vrsqrt.f32 %v6690_v0 }
0x1a47   : > { %v8645_v3 = vpop.eup %8644 }
0x1a48   : > { %v6693_v54 = vmul.f32 %v8645_v3, %v6677_v50 }
0x1a4a   : > { %v6701_v6 = vmul.f32 %v7564_v4, %v6693_v54 }
0x1a4b   : > { %v8647_v35 = vpop.eup %8646 }
0x1a4c   : > { %v6709_v7 = vadd.f32 %v7565_v5, %v6701_v6  ;;  %v6694_v13 = vmul.f32 %v8647_v35, %v6678_v39 }
0x1a4e   : > { %6711 = vst.msk [vmem:[#allocation2] sm:$0xff] %vm556_vm1, %v6709_v7  ;;  %v6702_v15 = vmul.f32 %v7564_v4, %v6694_v13  ;;  %6716 = sbr.rel (%p7566_p0) target bundleno = 6740 (0x1a54), region = 92 }
0x1a50   : > { %v6710_v8 = vadd.f32 %v7565_v5, %v6702_v15 }
0x1a52   : > { %6712 = vst.msk [vmem:[#allocation2 + $0x8] sm:$0xff] %vm556_vm1, %v6710_v8 }
0x1a53   : > { %6717 = vst.msk [vmem:[%s8911_s17] sm:$0xff] %vm556_vm1, %v6709_v7  ;;  %6718 = vst.msk [vmem:[%s8911_s17 + $0x8] sm:$0xff] %vm556_vm1, %v6710_v8 }
0x1a54 PF: > { %s7576_s20 = sshll.u32 %s8728_s25, 8  ;;  %s10044_s29 = sld [smem:[#allocation18_spill]] }
0x1a55   : > { %s6733_s16 = sshll.u32 %s8911_s17, 4  ;;  %s9944_s24 = scalar_lea.sflag [#allocation4], %s522_s30  ;;  %s9940_s16 = int_to_ptr.vmem [resolvable:$true] %s6733_s16 }
0x1a56   : > { %s8648_s23 = scalar_lea.vmem %s9940_s16, 256  ;;  %s8744_s25 = smov [#allocation3]  }
0x1a57   : > { %p8649_p1 = scmp.ne.s32.totalorder %s9940_s16, %s8648_s23  ;;  %s8652_s21 = sshll.u32 %s8744_s25, 4  ;;  %s8653_s21 = int_to_ptr.vmem [resolvable:$false] %s8652_s21 }
0x1a58   : > { %s8654_s26 = scalar_lea.vmem %s8653_s21, 512  ;;  %p8655_p5 = scmp.lt.s32.totalorder %s9940_s16, %s8653_s21 }
0x1a59   : > { %p8650_p2 = pnand %p8649_p1, %p8881_p3  ;;  %p8656_p6 = scmp.lt.s32.totalorder %s8654_s26, %s8648_s23 }
0x1a5a   : > { %s9937_s19 = scalar_lea.hbm %s10044_s29, %s7576_s20 }
0x1a5b   : > { %p8651_p4 = pneg %p8650_p2  ;;  %p8657_p7 = por %p8656_p6, %p8655_p5 }
0x1a5d   : > { %p8658_p8 = pnand %p8657_p7, %p8651_p4 }
0x1a5f   : > { %8661 = shalt.err (!%p8658_p8)
}
0x1a60   : > { %s8662_s17 = scalar_lea.hbm %s9937_s19, 256  ;;  %s8666_s20 = scalar_lea.hbm %s10044_s29, 512 }
0x1a61   : > { %p8663_p10 = scmp.ne.s32.totalorder %s9937_s19, %s8662_s17  ;;  %p8667_p13 = scmp.lt.s32.totalorder %s9937_s19, %s10044_s29 }
0x1a62   : > { %p8668_p0 = scmp.lt.s32.totalorder %s8666_s20, %s8662_s17 }
0x1a63   : > { %p8664_p11 = pnand %p8663_p10, %p8881_p3 }
0x1a64   : > { %p8669_p1 = por %p8668_p0, %p8667_p13 }
0x1a65   : > { %p8665_p12 = pneg %p8664_p11 }
0x1a67   : > { %p8670_p2 = pnand %p8669_p1, %p8665_p12 }
0x1a69   : > { %8673 = shalt.err (!%p8670_p2)
}
0x1a6a   : > { %s8745_s23 = smov 128   ;;  %s8746_s25 = smov 8  }
0x1a6b   : > { %8497 = dma.vmem_to_hbm [thread:$0]  (%p8881_p3), %s9940_s16, 256, %s9937_s19, %s9944_s24, %s8745_s23, %s8745_s23, %s8746_s25  }
0x1a6c PF: > { %s10045_s21 = sld [smem:[#allocation11_spill]] }
0x1a6d   : > { %s10046_s26 = sld [smem:[#allocation6_spill]] }
0x1a72   : > { %p8503_p4 = scmp.ge.s32.totalorder %s10045_s21, 2 }
0x1a73   : > { %s6748_s22 = sand.u32 1, %s10046_s26  }
0x1a74   : > { %p8500_p5 = pnand %p8503_p4, %p8891_p9  ;;  %s6749_s17 = scalar_lea.sflag [#allocation4], %s6748_s22 }
0x1a76   : > { %p8501_p6 = pneg %p8500_p5 }
0x1a78   : > { %8707 = dma.done.wait (%p8501_p6), %s6749_s17, 256  }
0x1a79   : > { %8709 = vsyncadd (%p8501_p6), %s6749_s17, 4294967040  ;;  %s29_s28 = sadd.s32 1, %s10045_s21   ;;  %s10048_s21 = sld [smem:[#allocation7_spill]] }
0x1a7a   : > { %p26_p7 = scmp.ge.s32.totalorder %s29_s28, 6   ;;  %s10049_s22 = sld [smem:[#allocation8_spill]] }
0x1a7b   : > { %s10050_s23 = sld [smem:[#allocation16_spill]] }
0x1a7c   : > { %s10051_s24 = sld [smem:[#allocation9_spill]]  ;;  %28 = sbr.rel (!%p26_p7) target bundleno = 8 (0x8), region = 204 }
0x1a7d   : > { %s10052_s25 = sld [smem:[#allocation10_spill]] }
0x1a7e   : > { %s10053_s26 = sld [smem:[#allocation12_spill]] }
0x1a7f   : > { %s10054_s27 = sld [smem:[#allocation14_spill]] }
0x1a81   :  { %6754 = vsyncpa [#allocation4], 1 }
0x1a82   :  { %6756 = vsyncpa [#allocation4 + $0x1], 1 }

</bundles_post_ra>
